<compile_context>
chip_gen: v7x
topology: tpu7x:2x2x1
jax: 0.10.0
libtpu: 0.0.40
codegen_flags: <defaults>
</compile_context>

<pallas_src>
import random

import jax
import jax.numpy as jnp
from jax.experimental import pallas as pl
from jax.experimental.pallas import tpu as pltpu

HID = 32          # LSTM hidden size
EMB = 16          # embedding dim
SRC_VOCAB = 24    # encoder vocab
TRG_VOCAB = 20    # decoder vocab (== decoder.fc_out.out_features)
N_LAYERS = 2      # stacked LSTM layers
SRC_LEN = 7
TRG_LEN = 8
BATCH = 2
LOGIT_PAD = 128   # lane-dense padded logits width (>= TRG_VOCAB)
PAD_B = 8         # sublane-dense padded batch for the output slab


# ------------------------------ fused kernel -------------------------------- #
def _seq2seq_kernel(src_ref, trg_ref, tf_ref,
                    enc_proj_ref, enc_whh0_ref, enc_w1_ref, enc_b1_ref,
                    dec_proj_ref, dec_whh0_ref, dec_w1_ref, dec_b1_ref,
                    fcw_ref, fcb_ref, out_ref):
    f32 = jnp.float32
    B = BATCH

    def lstm_cell(gates, c):
        # Full-width activations (one sigmoid + one tanh over all 128 lanes),
        # then cheap 32-lane selects. Gate order: (i, f, g, o).
        sig = jax.nn.sigmoid(gates)
        th = jnp.tanh(gates)
        i_g = sig[:, 0 * HID:1 * HID]
        f_g = sig[:, 1 * HID:2 * HID]
        g_g = th[:, 2 * HID:3 * HID]
        o_g = sig[:, 3 * HID:4 * HID]
        c_new = f_g * c + i_g * g_g
        h_new = o_g * jnp.tanh(c_new)
        return h_new, c_new

    # --------------------------- encoder --------------------------------- #
    # Hoisted layer-0 input projection for ALL src timesteps in one matmul.
    # enc_proj already contains (emb @ W_ih0 + b0), so onehot @ enc_proj
    # == emb(tok) @ W_ih0 + b0 (one-hot rows sum to 1).
    src_tok = src_ref[...]                                        # (S*B, 1) int32
    ids_src = jax.lax.broadcasted_iota(jnp.int32, (SRC_LEN * B, SRC_VOCAB), 1)
    onehot_src = (ids_src == src_tok).astype(f32)                 # (S*B, V_src)
    x0_all = jnp.dot(onehot_src, enc_proj_ref[...],
                     preferred_element_type=f32)                  # (S*B, 4H)

    h0 = jnp.zeros((B, HID), f32)
    c0 = jnp.zeros((B, HID), f32)
    h1 = jnp.zeros((B, HID), f32)
    c1 = jnp.zeros((B, HID), f32)

    for t in range(SRC_LEN):                                      # unrolled recurrence
        g0 = (x0_all[t * B:(t + 1) * B, :]
              + jnp.dot(h0, enc_whh0_ref[...], preferred_element_type=f32))
        h0, c0 = lstm_cell(g0, c0)
        xh = jnp.concatenate([h0, h1], axis=1)                    # (B, 2H)
        g1 = jnp.dot(xh, enc_w1_ref[...], preferred_element_type=f32) + enc_b1_ref[...]
        h1, c1 = lstm_cell(g1, c1)

    # --------------------------- decoder --------------------------------- #
    # h0/c0/h1/c1 carry straight from the encoder (never leave VMEM/vregs).
    pad_rows = jnp.zeros((PAD_B - B, LOGIT_PAD), f32)
    out_ref[0] = jnp.zeros((PAD_B, LOGIT_PAD), f32)               # outputs[0] stays 0
    col = jax.lax.broadcasted_iota(jnp.int32, (B, LOGIT_PAD), 1).astype(f32)
    ids_trg = jax.lax.broadcasted_iota(jnp.int32, (B, TRG_VOCAB), 1)

    tok = trg_ref[0]                                              # (B, 1) int32
    for t in range(1, TRG_LEN):
        onehot = (ids_trg == tok).astype(f32)                     # (B, V_trg)
        g0 = (jnp.dot(onehot, dec_proj_ref[...], preferred_element_type=f32)
              + jnp.dot(h0, dec_whh0_ref[...], preferred_element_type=f32))
        h0, c0 = lstm_cell(g0, c0)
        xh = jnp.concatenate([h0, h1], axis=1)
        g1 = jnp.dot(xh, dec_w1_ref[...], preferred_element_type=f32) + dec_b1_ref[...]
        h1, c1 = lstm_cell(g1, c1)

        logits = (jnp.dot(h1, fcw_ref[...], preferred_element_type=f32)
                  + fcb_ref[...])                                 # (B, 128)
        # Dense (8,128) sublane/lane-full store.
        out_ref[t] = jnp.concatenate([logits, pad_rows], axis=0)

        # Greedy top-1 (first index of max, matching torch.argmax); padded
        # lanes carry bias -1e30 so they never win.
        mx = jnp.max(logits, axis=1, keepdims=True)               # (B, 1)
        top1 = jnp.min(jnp.where(logits == mx, col, float(LOGIT_PAD)),
                       axis=1, keepdims=True).astype(jnp.int32)   # (B, 1)

        # Teacher forcing: flag is a scalar from SMEM (same for whole batch,
        # matching random.random() in the PyTorch loop).
        tf = tf_ref[t - 1]
        tok = jnp.where(tf != 0, trg_ref[t], top1)


# ------------------------------ parameters ---------------------------------- #
def init_params(key):
    def nrm(k, shape, scale=0.1):
        return (scale * jax.random.normal(k, shape)).astype(jnp.float32)

    keys = iter(jax.random.split(key, 32))
    enc_emb = nrm(next(keys), (SRC_VOCAB, EMB))
    dec_emb = nrm(next(keys), (TRG_VOCAB, EMB))

    # Encoder LSTM (weights stored transposed vs PyTorch; b = b_ih + b_hh fused).
    enc_wih0 = nrm(next(keys), (EMB, 4 * HID))
    enc_whh0 = nrm(next(keys), (HID, 4 * HID))
    enc_b0 = nrm(next(keys), (1, 4 * HID))
    enc_wih1 = nrm(next(keys), (HID, 4 * HID))
    enc_whh1 = nrm(next(keys), (HID, 4 * HID))
    enc_b1 = nrm(next(keys), (1, 4 * HID))

    # Decoder LSTM.
    dec_wih0 = nrm(next(keys), (EMB, 4 * HID))
    dec_whh0 = nrm(next(keys), (HID, 4 * HID))
    dec_b0 = nrm(next(keys), (1, 4 * HID))
    dec_wih1 = nrm(next(keys), (HID, 4 * HID))
    dec_whh1 = nrm(next(keys), (HID, 4 * HID))
    dec_b1 = nrm(next(keys), (1, 4 * HID))

    fc_w = nrm(next(keys), (HID, TRG_VOCAB))
    fc_b = nrm(next(keys), (1, TRG_VOCAB))

    return {
        # Embedding folded into the layer-0 input projection (+ fused bias):
        # onehot(tok) @ enc_proj == emb(tok) @ W_ih0 + b0.
        "enc_proj": (enc_emb @ enc_wih0 + enc_b0).astype(jnp.float32),
        "enc_whh0": enc_whh0,
        "enc_w1": jnp.concatenate([enc_wih1, enc_whh1], axis=0),   # (2H, 4H)
        "enc_b1": enc_b1,
        "dec_proj": (dec_emb @ dec_wih0 + dec_b0).astype(jnp.float32),
        "dec_whh0": dec_whh0,
        "dec_w1": jnp.concatenate([dec_wih1, dec_whh1], axis=0),
        "dec_b1": dec_b1,
        # fc_out padded to 128 lanes; padded bias = -1e30 so argmax ignores it.
        "fc_w_pad": jnp.zeros((HID, LOGIT_PAD), jnp.float32).at[:, :TRG_VOCAB].set(fc_w),
        "fc_b_pad": jnp.full((1, LOGIT_PAD), -1e30, jnp.float32).at[:, :TRG_VOCAB].set(fc_b),
    }


# ----------------------------- model forward -------------------------------- #
def seq2seq_forward(src, trg, tf_flags, params):
    """Mirrors Seq2Seq.forward: outputs[0] stays zeros; whole decode on-device.

    src: (src_len, batch) int32, trg: (trg_len, batch) int32,
    tf_flags: (trg_len-1,) int32 teacher-forcing coin flips.
    """
    # TODO(synk): nn.Dropout inside encoder/decoder treated as identity (eval mode).
    src_len, batch = src.shape
    trg_len, _ = trg.shape
    src_flat = src.reshape(src_len * batch, 1).astype(jnp.int32)
    trg3 = trg[:, :, None].astype(jnp.int32)
    tf_flags = tf_flags.astype(jnp.int32)

    vmem = pl.BlockSpec(memory_space=pltpu.MemorySpace.VMEM)
    smem = pl.BlockSpec(memory_space=pltpu.MemorySpace.SMEM)

    out_pad = pl.pallas_call(
        _seq2seq_kernel,
        out_shape=jax.ShapeDtypeStruct((trg_len, PAD_B, LOGIT_PAD), jnp.float32),
        in_specs=[
            vmem,   # src tokens (S*B, 1)
            vmem,   # trg tokens (T, B, 1)
            smem,   # teacher-forcing flags (T-1,)
            vmem,   # enc_proj   (SRC_VOCAB, 4H)
            vmem,   # enc_whh0   (HID, 4H)
            vmem,   # enc_w1     (2H, 4H)
            vmem,   # enc_b1     (1, 4H)
            vmem,   # dec_proj   (TRG_VOCAB, 4H)
            vmem,   # dec_whh0   (HID, 4H)
            vmem,   # dec_w1     (2H, 4H)
            vmem,   # dec_b1     (1, 4H)
            vmem,   # fc_w_pad   (HID, 128)
            vmem,   # fc_b_pad   (1, 128)
        ],
        out_specs=pl.BlockSpec(memory_space=pltpu.MemorySpace.VMEM),
    )(src_flat, trg3, tf_flags,
      params["enc_proj"], params["enc_whh0"], params["enc_w1"], params["enc_b1"],
      params["dec_proj"], params["dec_whh0"], params["dec_w1"], params["dec_b1"],
      params["fc_w_pad"], params["fc_b_pad"])

    # Slice padded batch sublanes and padded vocab lanes back off.
    return out_pad[:, :batch, :TRG_VOCAB]                          # (trg_len, B, V)


# ---------------------------------- main ------------------------------------ #
if __name__ == "__main__":
    key = jax.random.PRNGKey(0)
    k_par, k_src, k_trg = jax.random.split(key, 3)

    params = init_params(k_par)
    src = jax.random.randint(k_src, (SRC_LEN, BATCH), 0, SRC_VOCAB, dtype=jnp.int32)
    trg = jax.random.randint(k_trg, (TRG_LEN, BATCH), 0, TRG_VOCAB, dtype=jnp.int32)

    # Teacher-forcing coin flips drawn host-side (deterministic stand-in for
    # random.random() in the PyTorch reference; one draw per t in 1..trg_len-1).
    teacher_forcing_ratio = 0.5
    rng = random.Random(0)
    tf_flags = jnp.asarray(
        [1 if rng.random() < teacher_forcing_ratio else 0 for _ in range(1, TRG_LEN)],
        dtype=jnp.int32)

    fwd = jax.jit(seq2seq_forward)
    outputs = jax.block_until_ready(fwd(src, trg, tf_flags, params))

    assert outputs.shape == (TRG_LEN, BATCH, TRG_VOCAB), outputs.shape
    assert outputs.dtype == jnp.float32
    assert bool(jnp.all(jnp.isfinite(outputs)))
    assert bool(jnp.all(outputs[0] == 0.0))   # outputs[0] never written, as in PyTorch
    print("KERNEL_OK")
</pallas_src>

<mosaic_0001>
module attributes {stable_mosaic.version = 11 : i64} {
  func.func @_seq2seq_kernel(%arg0: memref<14x1xi32, #tpu.memory_space<vmem>>, %arg1: memref<8x2x1xi32, #tpu.memory_space<vmem>>, %arg2: memref<7xi32, #tpu.memory_space<smem>>, %arg3: memref<24x128xf32, #tpu.memory_space<vmem>>, %arg4: memref<32x128xf32, #tpu.memory_space<vmem>>, %arg5: memref<64x128xf32, #tpu.memory_space<vmem>>, %arg6: memref<1x128xf32, #tpu.memory_space<vmem>>, %arg7: memref<20x128xf32, #tpu.memory_space<vmem>>, %arg8: memref<32x128xf32, #tpu.memory_space<vmem>>, %arg9: memref<64x128xf32, #tpu.memory_space<vmem>>, %arg10: memref<1x128xf32, #tpu.memory_space<vmem>>, %arg11: memref<32x128xf32, #tpu.memory_space<vmem>>, %arg12: memref<1x128xf32, #tpu.memory_space<vmem>>, %arg13: memref<8x8x128xf32, #tpu.memory_space<vmem>>) attributes {dimension_semantics = [], scalar_prefetch = 0 : i64, scratch_operands = 0 : i64, tpu.core_type = #tpu.core_type<tc>} {
    %c0 = arith.constant 0 : index
    %c0_0 = arith.constant 0 : index
    %0 = vector.load %arg0[%c0, %c0_0] : memref<14x1xi32, #tpu.memory_space<vmem>>, vector<14x1xi32>
    %1 = tpu.iota {dimensions = array<i32: 1>} : vector<14x24xi32>
    %2 = vector.broadcast %0 : vector<14x1xi32> to vector<14x24xi32>
    %3 = arith.cmpi eq, %1, %2 : vector<14x24xi32>
    %4 = arith.extui %3 : vector<14x24xi1> to vector<14x24xi32>
    %5 = arith.sitofp %4 : vector<14x24xi32> to vector<14x24xf32>
    %c0_1 = arith.constant 0 : index
    %c0_2 = arith.constant 0 : index
    %6 = vector.load %arg3[%c0_1, %c0_2] : memref<24x128xf32, #tpu.memory_space<vmem>>, vector<24x128xf32>
    %cst = arith.constant dense<0.000000e+00> : vector<14x128xf32>
    %7 = tpu.matmul %5, %6, %cst {dimension_numbers = #tpu.dot_dimension_numbers<[1], [0], [0], [1], [0, 0, 1, 1], [], []>} : vector<14x24xf32>, vector<24x128xf32>, vector<14x128xf32> -> vector<14x128xf32>
    %cst_3 = arith.constant 0.000000e+00 : f32
    %8 = vector.broadcast %cst_3 : f32 to vector<2x32xf32>
    %cst_4 = arith.constant 0.000000e+00 : f32
    %9 = vector.broadcast %cst_4 : f32 to vector<2x32xf32>
    %cst_5 = arith.constant 0.000000e+00 : f32
    %10 = vector.broadcast %cst_5 : f32 to vector<2x32xf32>
    %cst_6 = arith.constant 0.000000e+00 : f32
    %11 = vector.broadcast %cst_6 : f32 to vector<2x32xf32>
    %12 = vector.extract_strided_slice %7 {offsets = [0, 0], sizes = [2, 128], strides = [1, 1]} : vector<14x128xf32> to vector<2x128xf32>
    %c0_7 = arith.constant 0 : index
    %c0_8 = arith.constant 0 : index
    %13 = vector.load %arg4[%c0_7, %c0_8] : memref<32x128xf32, #tpu.memory_space<vmem>>, vector<32x128xf32>
    %cst_9 = arith.constant dense<0.000000e+00> : vector<2x128xf32>
    %14 = tpu.matmul %8, %13, %cst_9 {dimension_numbers = #tpu.dot_dimension_numbers<[1], [0], [0], [1], [0, 0, 1, 1], [], []>} : vector<2x32xf32>, vector<32x128xf32>, vector<2x128xf32> -> vector<2x128xf32>
    %15 = arith.addf %12, %14 : vector<2x128xf32>
    %16 = arith.negf %15 : vector<2x128xf32>
    %17 = math.exp %16 : vector<2x128xf32>
    %cst_10 = arith.constant 1.000000e+00 : f32
    %18 = vector.broadcast %cst_10 : f32 to vector<2x128xf32>
    %19 = arith.addf %18, %17 : vector<2x128xf32>
    %20 = arith.divf %18, %19 : vector<2x128xf32>
    %21 = math.tanh %15 : vector<2x128xf32>
    %22 = vector.extract_strided_slice %20 {offsets = [0, 0], sizes = [2, 32], strides = [1, 1]} : vector<2x128xf32> to vector<2x32xf32>
    %23 = vector.extract_strided_slice %20 {offsets = [0, 32], sizes = [2, 32], strides = [1, 1]} : vector<2x128xf32> to vector<2x32xf32>
    %24 = vector.extract_strided_slice %21 {offsets = [0, 64], sizes = [2, 32], strides = [1, 1]} : vector<2x128xf32> to vector<2x32xf32>
    %25 = vector.extract_strided_slice %20 {offsets = [0, 96], sizes = [2, 32], strides = [1, 1]} : vector<2x128xf32> to vector<2x32xf32>
    %26 = arith.mulf %23, %9 : vector<2x32xf32>
    %27 = arith.mulf %22, %24 : vector<2x32xf32>
    %28 = arith.addf %26, %27 : vector<2x32xf32>
    %29 = math.tanh %28 : vector<2x32xf32>
    %30 = arith.mulf %25, %29 : vector<2x32xf32>
    %31 = tpu.concatenate %30, %10 in 1 : vector<2x32xf32>, vector<2x32xf32> -> vector<2x64xf32>
    %c0_11 = arith.constant 0 : index
    %c0_12 = arith.constant 0 : index
    %32 = vector.load %arg5[%c0_11, %c0_12] : memref<64x128xf32, #tpu.memory_space<vmem>>, vector<64x128xf32>
    %cst_13 = arith.constant dense<0.000000e+00> : vector<2x128xf32>
    %33 = tpu.matmul %31, %32, %cst_13 {dimension_numbers = #tpu.dot_dimension_numbers<[1], [0], [0], [1], [0, 0, 1, 1], [], []>} : vector<2x64xf32>, vector<64x128xf32>, vector<2x128xf32> -> vector<2x128xf32>
    %c0_14 = arith.constant 0 : index
    %c0_15 = arith.constant 0 : index
    %34 = vector.load %arg6[%c0_14, %c0_15] : memref<1x128xf32, #tpu.memory_space<vmem>>, vector<1x128xf32>
    %35 = vector.broadcast %34 : vector<1x128xf32> to vector<2x128xf32>
    %36 = arith.addf %33, %35 : vector<2x128xf32>
    %37 = arith.negf %36 : vector<2x128xf32>
    %38 = math.exp %37 : vector<2x128xf32>
    %cst_16 = arith.constant 1.000000e+00 : f32
    %39 = vector.broadcast %cst_16 : f32 to vector<2x128xf32>
    %40 = arith.addf %39, %38 : vector<2x128xf32>
    %41 = arith.divf %39, %40 : vector<2x128xf32>
    %42 = math.tanh %36 : vector<2x128xf32>
    %43 = vector.extract_strided_slice %41 {offsets = [0, 0], sizes = [2, 32], strides = [1, 1]} : vector<2x128xf32> to vector<2x32xf32>
    %44 = vector.extract_strided_slice %41 {offsets = [0, 32], sizes = [2, 32], strides = [1, 1]} : vector<2x128xf32> to vector<2x32xf32>
    %45 = vector.extract_strided_slice %42 {offsets = [0, 64], sizes = [2, 32], strides = [1, 1]} : vector<2x128xf32> to vector<2x32xf32>
    %46 = vector.extract_strided_slice %41 {offsets = [0, 96], sizes = [2, 32], strides = [1, 1]} : vector<2x128xf32> to vector<2x32xf32>
    %47 = arith.mulf %44, %11 : vector<2x32xf32>
    %48 = arith.mulf %43, %45 : vector<2x32xf32>
    %49 = arith.addf %47, %48 : vector<2x32xf32>
    %50 = math.tanh %49 : vector<2x32xf32>
    %51 = arith.mulf %46, %50 : vector<2x32xf32>
    %52 = vector.extract_strided_slice %7 {offsets = [2, 0], sizes = [2, 128], strides = [1, 1]} : vector<14x128xf32> to vector<2x128xf32>
    %c0_17 = arith.constant 0 : index
    %c0_18 = arith.constant 0 : index
    %53 = vector.load %arg4[%c0_17, %c0_18] : memref<32x128xf32, #tpu.memory_space<vmem>>, vector<32x128xf32>
    %cst_19 = arith.constant dense<0.000000e+00> : vector<2x128xf32>
    %54 = tpu.matmul %30, %53, %cst_19 {dimension_numbers = #tpu.dot_dimension_numbers<[1], [0], [0], [1], [0, 0, 1, 1], [], []>} : vector<2x32xf32>, vector<32x128xf32>, vector<2x128xf32> -> vector<2x128xf32>
    %55 = arith.addf %52, %54 : vector<2x128xf32>
    %56 = arith.negf %55 : vector<2x128xf32>
    %57 = math.exp %56 : vector<2x128xf32>
    %cst_20 = arith.constant 1.000000e+00 : f32
    %58 = vector.broadcast %cst_20 : f32 to vector<2x128xf32>
    %59 = arith.addf %58, %57 : vector<2x128xf32>
    %60 = arith.divf %58, %59 : vector<2x128xf32>
    %61 = math.tanh %55 : vector<2x128xf32>
    %62 = vector.extract_strided_slice %60 {offsets = [0, 0], sizes = [2, 32], strides = [1, 1]} : vector<2x128xf32> to vector<2x32xf32>
    %63 = vector.extract_strided_slice %60 {offsets = [0, 32], sizes = [2, 32], strides = [1, 1]} : vector<2x128xf32> to vector<2x32xf32>
    %64 = vector.extract_strided_slice %61 {offsets = [0, 64], sizes = [2, 32], strides = [1, 1]} : vector<2x128xf32> to vector<2x32xf32>
    %65 = vector.extract_strided_slice %60 {offsets = [0, 96], sizes = [2, 32], strides = [1, 1]} : vector<2x128xf32> to vector<2x32xf32>
    %66 = arith.mulf %63, %28 : vector<2x32xf32>
    %67 = arith.mulf %62, %64 : vector<2x32xf32>
    %68 = arith.addf %66, %67 : vector<2x32xf32>
    %69 = math.tanh %68 : vector<2x32xf32>
    %70 = arith.mulf %65, %69 : vector<2x32xf32>
    %71 = tpu.concatenate %70, %51 in 1 : vector<2x32xf32>, vector<2x32xf32> -> vector<2x64xf32>
    %c0_21 = arith.constant 0 : index
    %c0_22 = arith.constant 0 : index
    %72 = vector.load %arg5[%c0_21, %c0_22] : memref<64x128xf32, #tpu.memory_space<vmem>>, vector<64x128xf32>
    %cst_23 = arith.constant dense<0.000000e+00> : vector<2x128xf32>
    %73 = tpu.matmul %71, %72, %cst_23 {dimension_numbers = #tpu.dot_dimension_numbers<[1], [0], [0], [1], [0, 0, 1, 1], [], []>} : vector<2x64xf32>, vector<64x128xf32>, vector<2x128xf32> -> vector<2x128xf32>
    %c0_24 = arith.constant 0 : index
    %c0_25 = arith.constant 0 : index
    %74 = vector.load %arg6[%c0_24, %c0_25] : memref<1x128xf32, #tpu.memory_space<vmem>>, vector<1x128xf32>
    %75 = vector.broadcast %74 : vector<1x128xf32> to vector<2x128xf32>
    %76 = arith.addf %73, %75 : vector<2x128xf32>
    %77 = arith.negf %76 : vector<2x128xf32>
    %78 = math.exp %77 : vector<2x128xf32>
    %cst_26 = arith.constant 1.000000e+00 : f32
    %79 = vector.broadcast %cst_26 : f32 to vector<2x128xf32>
    %80 = arith.addf %79, %78 : vector<2x128xf32>
    %81 = arith.divf %79, %80 : vector<2x128xf32>
    %82 = math.tanh %76 : vector<2x128xf32>
    %83 = vector.extract_strided_slice %81 {offsets = [0, 0], sizes = [2, 32], strides = [1, 1]} : vector<2x128xf32> to vector<2x32xf32>
    %84 = vector.extract_strided_slice %81 {offsets = [0, 32], sizes = [2, 32], strides = [1, 1]} : vector<2x128xf32> to vector<2x32xf32>
    %85 = vector.extract_strided_slice %82 {offsets = [0, 64], sizes = [2, 32], strides = [1, 1]} : vector<2x128xf32> to vector<2x32xf32>
    %86 = vector.extract_strided_slice %81 {offsets = [0, 96], sizes = [2, 32], strides = [1, 1]} : vector<2x128xf32> to vector<2x32xf32>
    %87 = arith.mulf %84, %49 : vector<2x32xf32>
    %88 = arith.mulf %83, %85 : vector<2x32xf32>
    %89 = arith.addf %87, %88 : vector<2x32xf32>
    %90 = math.tanh %89 : vector<2x32xf32>
    %91 = arith.mulf %86, %90 : vector<2x32xf32>
    %92 = vector.extract_strided_slice %7 {offsets = [4, 0], sizes = [2, 128], strides = [1, 1]} : vector<14x128xf32> to vector<2x128xf32>
    %c0_27 = arith.constant 0 : index
    %c0_28 = arith.constant 0 : index
    %93 = vector.load %arg4[%c0_27, %c0_28] : memref<32x128xf32, #tpu.memory_space<vmem>>, vector<32x128xf32>
    %cst_29 = arith.constant dense<0.000000e+00> : vector<2x128xf32>
    %94 = tpu.matmul %70, %93, %cst_29 {dimension_numbers = #tpu.dot_dimension_numbers<[1], [0], [0], [1], [0, 0, 1, 1], [], []>} : vector<2x32xf32>, vector<32x128xf32>, vector<2x128xf32> -> vector<2x128xf32>
    %95 = arith.addf %92, %94 : vector<2x128xf32>
    %96 = arith.negf %95 : vector<2x128xf32>
    %97 = math.exp %96 : vector<2x128xf32>
    %cst_30 = arith.constant 1.000000e+00 : f32
    %98 = vector.broadcast %cst_30 : f32 to vector<2x128xf32>
    %99 = arith.addf %98, %97 : vector<2x128xf32>
    %100 = arith.divf %98, %99 : vector<2x128xf32>
    %101 = math.tanh %95 : vector<2x128xf32>
    %102 = vector.extract_strided_slice %100 {offsets = [0, 0], sizes = [2, 32], strides = [1, 1]} : vector<2x128xf32> to vector<2x32xf32>
    %103 = vector.extract_strided_slice %100 {offsets = [0, 32], sizes = [2, 32], strides = [1, 1]} : vector<2x128xf32> to vector<2x32xf32>
    %104 = vector.extract_strided_slice %101 {offsets = [0, 64], sizes = [2, 32], strides = [1, 1]} : vector<2x128xf32> to vector<2x32xf32>
    %105 = vector.extract_strided_slice %100 {offsets = [0, 96], sizes = [2, 32], strides = [1, 1]} : vector<2x128xf32> to vector<2x32xf32>
    %106 = arith.mulf %103, %68 : vector<2x32xf32>
    %107 = arith.mulf %102, %104 : vector<2x32xf32>
    %108 = arith.addf %106, %107 : vector<2x32xf32>
    %109 = math.tanh %108 : vector<2x32xf32>
    %110 = arith.mulf %105, %109 : vector<2x32xf32>
    %111 = tpu.concatenate %110, %91 in 1 : vector<2x32xf32>, vector<2x32xf32> -> vector<2x64xf32>
    %c0_31 = arith.constant 0 : index
    %c0_32 = arith.constant 0 : index
    %112 = vector.load %arg5[%c0_31, %c0_32] : memref<64x128xf32, #tpu.memory_space<vmem>>, vector<64x128xf32>
    %cst_33 = arith.constant dense<0.000000e+00> : vector<2x128xf32>
    %113 = tpu.matmul %111, %112, %cst_33 {dimension_numbers = #tpu.dot_dimension_numbers<[1], [0], [0], [1], [0, 0, 1, 1], [], []>} : vector<2x64xf32>, vector<64x128xf32>, vector<2x128xf32> -> vector<2x128xf32>
    %c0_34 = arith.constant 0 : index
    %c0_35 = arith.constant 0 : index
    %114 = vector.load %arg6[%c0_34, %c0_35] : memref<1x128xf32, #tpu.memory_space<vmem>>, vector<1x128xf32>
    %115 = vector.broadcast %114 : vector<1x128xf32> to vector<2x128xf32>
    %116 = arith.addf %113, %115 : vector<2x128xf32>
    %117 = arith.negf %116 : vector<2x128xf32>
    %118 = math.exp %117 : vector<2x128xf32>
    %cst_36 = arith.constant 1.000000e+00 : f32
    %119 = vector.broadcast %cst_36 : f32 to vector<2x128xf32>
    %120 = arith.addf %119, %118 : vector<2x128xf32>
    %121 = arith.divf %119, %120 : vector<2x128xf32>
    %122 = math.tanh %116 : vector<2x128xf32>
    %123 = vector.extract_strided_slice %121 {offsets = [0, 0], sizes = [2, 32], strides = [1, 1]} : vector<2x128xf32> to vector<2x32xf32>
    %124 = vector.extract_strided_slice %121 {offsets = [0, 32], sizes = [2, 32], strides = [1, 1]} : vector<2x128xf32> to vector<2x32xf32>
    %125 = vector.extract_strided_slice %122 {offsets = [0, 64], sizes = [2, 32], strides = [1, 1]} : vector<2x128xf32> to vector<2x32xf32>
    %126 = vector.extract_strided_slice %121 {offsets = [0, 96], sizes = [2, 32], strides = [1, 1]} : vector<2x128xf32> to vector<2x32xf32>
    %127 = arith.mulf %124, %89 : vector<2x32xf32>
    %128 = arith.mulf %123, %125 : vector<2x32xf32>
    %129 = arith.addf %127, %128 : vector<2x32xf32>
    %130 = math.tanh %129 : vector<2x32xf32>
    %131 = arith.mulf %126, %130 : vector<2x32xf32>
    %132 = vector.extract_strided_slice %7 {offsets = [6, 0], sizes = [2, 128], strides = [1, 1]} : vector<14x128xf32> to vector<2x128xf32>
    %c0_37 = arith.constant 0 : index
    %c0_38 = arith.constant 0 : index
    %133 = vector.load %arg4[%c0_37, %c0_38] : memref<32x128xf32, #tpu.memory_space<vmem>>, vector<32x128xf32>
    %cst_39 = arith.constant dense<0.000000e+00> : vector<2x128xf32>
    %134 = tpu.matmul %110, %133, %cst_39 {dimension_numbers = #tpu.dot_dimension_numbers<[1], [0], [0], [1], [0, 0, 1, 1], [], []>} : vector<2x32xf32>, vector<32x128xf32>, vector<2x128xf32> -> vector<2x128xf32>
    %135 = arith.addf %132, %134 : vector<2x128xf32>
    %136 = arith.negf %135 : vector<2x128xf32>
    %137 = math.exp %136 : vector<2x128xf32>
    %cst_40 = arith.constant 1.000000e+00 : f32
    %138 = vector.broadcast %cst_40 : f32 to vector<2x128xf32>
    %139 = arith.addf %138, %137 : vector<2x128xf32>
    %140 = arith.divf %138, %139 : vector<2x128xf32>
    %141 = math.tanh %135 : vector<2x128xf32>
    %142 = vector.extract_strided_slice %140 {offsets = [0, 0], sizes = [2, 32], strides = [1, 1]} : vector<2x128xf32> to vector<2x32xf32>
    %143 = vector.extract_strided_slice %140 {offsets = [0, 32], sizes = [2, 32], strides = [1, 1]} : vector<2x128xf32> to vector<2x32xf32>
    %144 = vector.extract_strided_slice %141 {offsets = [0, 64], sizes = [2, 32], strides = [1, 1]} : vector<2x128xf32> to vector<2x32xf32>
    %145 = vector.extract_strided_slice %140 {offsets = [0, 96], sizes = [2, 32], strides = [1, 1]} : vector<2x128xf32> to vector<2x32xf32>
    %146 = arith.mulf %143, %108 : vector<2x32xf32>
    %147 = arith.mulf %142, %144 : vector<2x32xf32>
    %148 = arith.addf %146, %147 : vector<2x32xf32>
    %149 = math.tanh %148 : vector<2x32xf32>
    %150 = arith.mulf %145, %149 : vector<2x32xf32>
    %151 = tpu.concatenate %150, %131 in 1 : vector<2x32xf32>, vector<2x32xf32> -> vector<2x64xf32>
    %c0_41 = arith.constant 0 : index
    %c0_42 = arith.constant 0 : index
    %152 = vector.load %arg5[%c0_41, %c0_42] : memref<64x128xf32, #tpu.memory_space<vmem>>, vector<64x128xf32>
    %cst_43 = arith.constant dense<0.000000e+00> : vector<2x128xf32>
    %153 = tpu.matmul %151, %152, %cst_43 {dimension_numbers = #tpu.dot_dimension_numbers<[1], [0], [0], [1], [0, 0, 1, 1], [], []>} : vector<2x64xf32>, vector<64x128xf32>, vector<2x128xf32> -> vector<2x128xf32>
    %c0_44 = arith.constant 0 : index
    %c0_45 = arith.constant 0 : index
    %154 = vector.load %arg6[%c0_44, %c0_45] : memref<1x128xf32, #tpu.memory_space<vmem>>, vector<1x128xf32>
    %155 = vector.broadcast %154 : vector<1x128xf32> to vector<2x128xf32>
    %156 = arith.addf %153, %155 : vector<2x128xf32>
    %157 = arith.negf %156 : vector<2x128xf32>
    %158 = math.exp %157 : vector<2x128xf32>
    %cst_46 = arith.constant 1.000000e+00 : f32
    %159 = vector.broadcast %cst_46 : f32 to vector<2x128xf32>
    %160 = arith.addf %159, %158 : vector<2x128xf32>
    %161 = arith.divf %159, %160 : vector<2x128xf32>
    %162 = math.tanh %156 : vector<2x128xf32>
    %163 = vector.extract_strided_slice %161 {offsets = [0, 0], sizes = [2, 32], strides = [1, 1]} : vector<2x128xf32> to vector<2x32xf32>
    %164 = vector.extract_strided_slice %161 {offsets = [0, 32], sizes = [2, 32], strides = [1, 1]} : vector<2x128xf32> to vector<2x32xf32>
    %165 = vector.extract_strided_slice %162 {offsets = [0, 64], sizes = [2, 32], strides = [1, 1]} : vector<2x128xf32> to vector<2x32xf32>
    %166 = vector.extract_strided_slice %161 {offsets = [0, 96], sizes = [2, 32], strides = [1, 1]} : vector<2x128xf32> to vector<2x32xf32>
    %167 = arith.mulf %164, %129 : vector<2x32xf32>
    %168 = arith.mulf %163, %165 : vector<2x32xf32>
    %169 = arith.addf %167, %168 : vector<2x32xf32>
    %170 = math.tanh %169 : vector<2x32xf32>
    %171 = arith.mulf %166, %170 : vector<2x32xf32>
    %172 = vector.extract_strided_slice %7 {offsets = [8, 0], sizes = [2, 128], strides = [1, 1]} : vector<14x128xf32> to vector<2x128xf32>
    %c0_47 = arith.constant 0 : index
    %c0_48 = arith.constant 0 : index
    %173 = vector.load %arg4[%c0_47, %c0_48] : memref<32x128xf32, #tpu.memory_space<vmem>>, vector<32x128xf32>
    %cst_49 = arith.constant dense<0.000000e+00> : vector<2x128xf32>
    %174 = tpu.matmul %150, %173, %cst_49 {dimension_numbers = #tpu.dot_dimension_numbers<[1], [0], [0], [1], [0, 0, 1, 1], [], []>} : vector<2x32xf32>, vector<32x128xf32>, vector<2x128xf32> -> vector<2x128xf32>
    %175 = arith.addf %172, %174 : vector<2x128xf32>
    %176 = arith.negf %175 : vector<2x128xf32>
    %177 = math.exp %176 : vector<2x128xf32>
    %cst_50 = arith.constant 1.000000e+00 : f32
    %178 = vector.broadcast %cst_50 : f32 to vector<2x128xf32>
    %179 = arith.addf %178, %177 : vector<2x128xf32>
    %180 = arith.divf %178, %179 : vector<2x128xf32>
    %181 = math.tanh %175 : vector<2x128xf32>
    %182 = vector.extract_strided_slice %180 {offsets = [0, 0], sizes = [2, 32], strides = [1, 1]} : vector<2x128xf32> to vector<2x32xf32>
    %183 = vector.extract_strided_slice %180 {offsets = [0, 32], sizes = [2, 32], strides = [1, 1]} : vector<2x128xf32> to vector<2x32xf32>
    %184 = vector.extract_strided_slice %181 {offsets = [0, 64], sizes = [2, 32], strides = [1, 1]} : vector<2x128xf32> to vector<2x32xf32>
    %185 = vector.extract_strided_slice %180 {offsets = [0, 96], sizes = [2, 32], strides = [1, 1]} : vector<2x128xf32> to vector<2x32xf32>
    %186 = arith.mulf %183, %148 : vector<2x32xf32>
    %187 = arith.mulf %182, %184 : vector<2x32xf32>
    %188 = arith.addf %186, %187 : vector<2x32xf32>
    %189 = math.tanh %188 : vector<2x32xf32>
    %190 = arith.mulf %185, %189 : vector<2x32xf32>
    %191 = tpu.concatenate %190, %171 in 1 : vector<2x32xf32>, vector<2x32xf32> -> vector<2x64xf32>
    %c0_51 = arith.constant 0 : index
    %c0_52 = arith.constant 0 : index
    %192 = vector.load %arg5[%c0_51, %c0_52] : memref<64x128xf32, #tpu.memory_space<vmem>>, vector<64x128xf32>
    %cst_53 = arith.constant dense<0.000000e+00> : vector<2x128xf32>
    %193 = tpu.matmul %191, %192, %cst_53 {dimension_numbers = #tpu.dot_dimension_numbers<[1], [0], [0], [1], [0, 0, 1, 1], [], []>} : vector<2x64xf32>, vector<64x128xf32>, vector<2x128xf32> -> vector<2x128xf32>
    %c0_54 = arith.constant 0 : index
    %c0_55 = arith.constant 0 : index
    %194 = vector.load %arg6[%c0_54, %c0_55] : memref<1x128xf32, #tpu.memory_space<vmem>>, vector<1x128xf32>
    %195 = vector.broadcast %194 : vector<1x128xf32> to vector<2x128xf32>
    %196 = arith.addf %193, %195 : vector<2x128xf32>
    %197 = arith.negf %196 : vector<2x128xf32>
    %198 = math.exp %197 : vector<2x128xf32>
    %cst_56 = arith.constant 1.000000e+00 : f32
    %199 = vector.broadcast %cst_56 : f32 to vector<2x128xf32>
    %200 = arith.addf %199, %198 : vector<2x128xf32>
    %201 = arith.divf %199, %200 : vector<2x128xf32>
    %202 = math.tanh %196 : vector<2x128xf32>
    %203 = vector.extract_strided_slice %201 {offsets = [0, 0], sizes = [2, 32], strides = [1, 1]} : vector<2x128xf32> to vector<2x32xf32>
    %204 = vector.extract_strided_slice %201 {offsets = [0, 32], sizes = [2, 32], strides = [1, 1]} : vector<2x128xf32> to vector<2x32xf32>
    %205 = vector.extract_strided_slice %202 {offsets = [0, 64], sizes = [2, 32], strides = [1, 1]} : vector<2x128xf32> to vector<2x32xf32>
    %206 = vector.extract_strided_slice %201 {offsets = [0, 96], sizes = [2, 32], strides = [1, 1]} : vector<2x128xf32> to vector<2x32xf32>
    %207 = arith.mulf %204, %169 : vector<2x32xf32>
    %208 = arith.mulf %203, %205 : vector<2x32xf32>
    %209 = arith.addf %207, %208 : vector<2x32xf32>
    %210 = math.tanh %209 : vector<2x32xf32>
    %211 = arith.mulf %206, %210 : vector<2x32xf32>
    %212 = vector.extract_strided_slice %7 {offsets = [10, 0], sizes = [2, 128], strides = [1, 1]} : vector<14x128xf32> to vector<2x128xf32>
    %c0_57 = arith.constant 0 : index
    %c0_58 = arith.constant 0 : index
    %213 = vector.load %arg4[%c0_57, %c0_58] : memref<32x128xf32, #tpu.memory_space<vmem>>, vector<32x128xf32>
    %cst_59 = arith.constant dense<0.000000e+00> : vector<2x128xf32>
    %214 = tpu.matmul %190, %213, %cst_59 {dimension_numbers = #tpu.dot_dimension_numbers<[1], [0], [0], [1], [0, 0, 1, 1], [], []>} : vector<2x32xf32>, vector<32x128xf32>, vector<2x128xf32> -> vector<2x128xf32>
    %215 = arith.addf %212, %214 : vector<2x128xf32>
    %216 = arith.negf %215 : vector<2x128xf32>
    %217 = math.exp %216 : vector<2x128xf32>
    %cst_60 = arith.constant 1.000000e+00 : f32
    %218 = vector.broadcast %cst_60 : f32 to vector<2x128xf32>
    %219 = arith.addf %218, %217 : vector<2x128xf32>
    %220 = arith.divf %218, %219 : vector<2x128xf32>
    %221 = math.tanh %215 : vector<2x128xf32>
    %222 = vector.extract_strided_slice %220 {offsets = [0, 0], sizes = [2, 32], strides = [1, 1]} : vector<2x128xf32> to vector<2x32xf32>
    %223 = vector.extract_strided_slice %220 {offsets = [0, 32], sizes = [2, 32], strides = [1, 1]} : vector<2x128xf32> to vector<2x32xf32>
    %224 = vector.extract_strided_slice %221 {offsets = [0, 64], sizes = [2, 32], strides = [1, 1]} : vector<2x128xf32> to vector<2x32xf32>
    %225 = vector.extract_strided_slice %220 {offsets = [0, 96], sizes = [2, 32], strides = [1, 1]} : vector<2x128xf32> to vector<2x32xf32>
    %226 = arith.mulf %223, %188 : vector<2x32xf32>
    %227 = arith.mulf %222, %224 : vector<2x32xf32>
    %228 = arith.addf %226, %227 : vector<2x32xf32>
    %229 = math.tanh %228 : vector<2x32xf32>
    %230 = arith.mulf %225, %229 : vector<2x32xf32>
    %231 = tpu.concatenate %230, %211 in 1 : vector<2x32xf32>, vector<2x32xf32> -> vector<2x64xf32>
    %c0_61 = arith.constant 0 : index
    %c0_62 = arith.constant 0 : index
    %232 = vector.load %arg5[%c0_61, %c0_62] : memref<64x128xf32, #tpu.memory_space<vmem>>, vector<64x128xf32>
    %cst_63 = arith.constant dense<0.000000e+00> : vector<2x128xf32>
    %233 = tpu.matmul %231, %232, %cst_63 {dimension_numbers = #tpu.dot_dimension_numbers<[1], [0], [0], [1], [0, 0, 1, 1], [], []>} : vector<2x64xf32>, vector<64x128xf32>, vector<2x128xf32> -> vector<2x128xf32>
    %c0_64 = arith.constant 0 : index
    %c0_65 = arith.constant 0 : index
    %234 = vector.load %arg6[%c0_64, %c0_65] : memref<1x128xf32, #tpu.memory_space<vmem>>, vector<1x128xf32>
    %235 = vector.broadcast %234 : vector<1x128xf32> to vector<2x128xf32>
    %236 = arith.addf %233, %235 : vector<2x128xf32>
    %237 = arith.negf %236 : vector<2x128xf32>
    %238 = math.exp %237 : vector<2x128xf32>
    %cst_66 = arith.constant 1.000000e+00 : f32
    %239 = vector.broadcast %cst_66 : f32 to vector<2x128xf32>
    %240 = arith.addf %239, %238 : vector<2x128xf32>
    %241 = arith.divf %239, %240 : vector<2x128xf32>
    %242 = math.tanh %236 : vector<2x128xf32>
    %243 = vector.extract_strided_slice %241 {offsets = [0, 0], sizes = [2, 32], strides = [1, 1]} : vector<2x128xf32> to vector<2x32xf32>
    %244 = vector.extract_strided_slice %241 {offsets = [0, 32], sizes = [2, 32], strides = [1, 1]} : vector<2x128xf32> to vector<2x32xf32>
    %245 = vector.extract_strided_slice %242 {offsets = [0, 64], sizes = [2, 32], strides = [1, 1]} : vector<2x128xf32> to vector<2x32xf32>
    %246 = vector.extract_strided_slice %241 {offsets = [0, 96], sizes = [2, 32], strides = [1, 1]} : vector<2x128xf32> to vector<2x32xf32>
    %247 = arith.mulf %244, %209 : vector<2x32xf32>
    %248 = arith.mulf %243, %245 : vector<2x32xf32>
    %249 = arith.addf %247, %248 : vector<2x32xf32>
    %250 = math.tanh %249 : vector<2x32xf32>
    %251 = arith.mulf %246, %250 : vector<2x32xf32>
    %252 = vector.extract_strided_slice %7 {offsets = [12, 0], sizes = [2, 128], strides = [1, 1]} : vector<14x128xf32> to vector<2x128xf32>
    %c0_67 = arith.constant 0 : index
    %c0_68 = arith.constant 0 : index
    %253 = vector.load %arg4[%c0_67, %c0_68] : memref<32x128xf32, #tpu.memory_space<vmem>>, vector<32x128xf32>
    %cst_69 = arith.constant dense<0.000000e+00> : vector<2x128xf32>
    %254 = tpu.matmul %230, %253, %cst_69 {dimension_numbers = #tpu.dot_dimension_numbers<[1], [0], [0], [1], [0, 0, 1, 1], [], []>} : vector<2x32xf32>, vector<32x128xf32>, vector<2x128xf32> -> vector<2x128xf32>
    %255 = arith.addf %252, %254 : vector<2x128xf32>
    %256 = arith.negf %255 : vector<2x128xf32>
    %257 = math.exp %256 : vector<2x128xf32>
    %cst_70 = arith.constant 1.000000e+00 : f32
    %258 = vector.broadcast %cst_70 : f32 to vector<2x128xf32>
    %259 = arith.addf %258, %257 : vector<2x128xf32>
    %260 = arith.divf %258, %259 : vector<2x128xf32>
    %261 = math.tanh %255 : vector<2x128xf32>
    %262 = vector.extract_strided_slice %260 {offsets = [0, 0], sizes = [2, 32], strides = [1, 1]} : vector<2x128xf32> to vector<2x32xf32>
    %263 = vector.extract_strided_slice %260 {offsets = [0, 32], sizes = [2, 32], strides = [1, 1]} : vector<2x128xf32> to vector<2x32xf32>
    %264 = vector.extract_strided_slice %261 {offsets = [0, 64], sizes = [2, 32], strides = [1, 1]} : vector<2x128xf32> to vector<2x32xf32>
    %265 = vector.extract_strided_slice %260 {offsets = [0, 96], sizes = [2, 32], strides = [1, 1]} : vector<2x128xf32> to vector<2x32xf32>
    %266 = arith.mulf %263, %228 : vector<2x32xf32>
    %267 = arith.mulf %262, %264 : vector<2x32xf32>
    %268 = arith.addf %266, %267 : vector<2x32xf32>
    %269 = math.tanh %268 : vector<2x32xf32>
    %270 = arith.mulf %265, %269 : vector<2x32xf32>
    %271 = tpu.concatenate %270, %251 in 1 : vector<2x32xf32>, vector<2x32xf32> -> vector<2x64xf32>
    %c0_71 = arith.constant 0 : index
    %c0_72 = arith.constant 0 : index
    %272 = vector.load %arg5[%c0_71, %c0_72] : memref<64x128xf32, #tpu.memory_space<vmem>>, vector<64x128xf32>
    %cst_73 = arith.constant dense<0.000000e+00> : vector<2x128xf32>
    %273 = tpu.matmul %271, %272, %cst_73 {dimension_numbers = #tpu.dot_dimension_numbers<[1], [0], [0], [1], [0, 0, 1, 1], [], []>} : vector<2x64xf32>, vector<64x128xf32>, vector<2x128xf32> -> vector<2x128xf32>
    %c0_74 = arith.constant 0 : index
    %c0_75 = arith.constant 0 : index
    %274 = vector.load %arg6[%c0_74, %c0_75] : memref<1x128xf32, #tpu.memory_space<vmem>>, vector<1x128xf32>
    %275 = vector.broadcast %274 : vector<1x128xf32> to vector<2x128xf32>
    %276 = arith.addf %273, %275 : vector<2x128xf32>
    %277 = arith.negf %276 : vector<2x128xf32>
    %278 = math.exp %277 : vector<2x128xf32>
    %cst_76 = arith.constant 1.000000e+00 : f32
    %279 = vector.broadcast %cst_76 : f32 to vector<2x128xf32>
    %280 = arith.addf %279, %278 : vector<2x128xf32>
    %281 = arith.divf %279, %280 : vector<2x128xf32>
    %282 = math.tanh %276 : vector<2x128xf32>
    %283 = vector.extract_strided_slice %281 {offsets = [0, 0], sizes = [2, 32], strides = [1, 1]} : vector<2x128xf32> to vector<2x32xf32>
    %284 = vector.extract_strided_slice %281 {offsets = [0, 32], sizes = [2, 32], strides = [1, 1]} : vector<2x128xf32> to vector<2x32xf32>
    %285 = vector.extract_strided_slice %282 {offsets = [0, 64], sizes = [2, 32], strides = [1, 1]} : vector<2x128xf32> to vector<2x32xf32>
    %286 = vector.extract_strided_slice %281 {offsets = [0, 96], sizes = [2, 32], strides = [1, 1]} : vector<2x128xf32> to vector<2x32xf32>
    %287 = arith.mulf %284, %249 : vector<2x32xf32>
    %288 = arith.mulf %283, %285 : vector<2x32xf32>
    %289 = arith.addf %287, %288 : vector<2x32xf32>
    %290 = math.tanh %289 : vector<2x32xf32>
    %291 = arith.mulf %286, %290 : vector<2x32xf32>
    %cst_77 = arith.constant 0.000000e+00 : f32
    %292 = vector.broadcast %cst_77 : f32 to vector<6x128xf32>
    %cst_78 = arith.constant 0.000000e+00 : f32
    %293 = vector.broadcast %cst_78 : f32 to vector<8x128xf32>
    %c0_79 = arith.constant 0 : index
    %c0_80 = arith.constant 0 : index
    %c0_81 = arith.constant 0 : index
    %294 = vector.load %arg13[%c0_79, %c0_80, %c0_81] : memref<8x8x128xf32, #tpu.memory_space<vmem>>, vector<1x8x128xf32>
    %295 = vector.shape_cast %294 : vector<1x8x128xf32> to vector<8x128xf32>
    %296 = vector.shape_cast %293 : vector<8x128xf32> to vector<1x8x128xf32>
    tpu.vector_store %arg13[%c0_79, %c0_80, %c0_81], %296 {strides = array<i32>} : memref<8x8x128xf32, #tpu.memory_space<vmem>>, vector<1x8x128xf32>,
    %297 = tpu.iota {dimensions = array<i32: 1>} : vector<2x128xi32>
    %298 = arith.sitofp %297 : vector<2x128xi32> to vector<2x128xf32>
    %299 = tpu.iota {dimensions = array<i32: 1>} : vector<2x20xi32>
    %c0_82 = arith.constant 0 : index
    %c0_83 = arith.constant 0 : index
    %c0_84 = arith.constant 0 : index
    %300 = vector.load %arg1[%c0_82, %c0_83, %c0_84] : memref<8x2x1xi32, #tpu.memory_space<vmem>>, vector<1x2x1xi32>
    %301 = vector.shape_cast %300 : vector<1x2x1xi32> to vector<2x1xi32>
    %302 = vector.broadcast %301 : vector<2x1xi32> to vector<2x20xi32>
    %303 = arith.cmpi eq, %299, %302 : vector<2x20xi32>
    %304 = arith.extui %303 : vector<2x20xi1> to vector<2x20xi32>
    %305 = arith.sitofp %304 : vector<2x20xi32> to vector<2x20xf32>
    %c0_85 = arith.constant 0 : index
    %c0_86 = arith.constant 0 : index
    %306 = vector.load %arg7[%c0_85, %c0_86] : memref<20x128xf32, #tpu.memory_space<vmem>>, vector<20x128xf32>
    %cst_87 = arith.constant dense<0.000000e+00> : vector<2x128xf32>
    %307 = tpu.matmul %305, %306, %cst_87 {dimension_numbers = #tpu.dot_dimension_numbers<[1], [0], [0], [1], [0, 0, 1, 1], [], []>} : vector<2x20xf32>, vector<20x128xf32>, vector<2x128xf32> -> vector<2x128xf32>
    %c0_88 = arith.constant 0 : index
    %c0_89 = arith.constant 0 : index
    %308 = vector.load %arg8[%c0_88, %c0_89] : memref<32x128xf32, #tpu.memory_space<vmem>>, vector<32x128xf32>
    %cst_90 = arith.constant dense<0.000000e+00> : vector<2x128xf32>
    %309 = tpu.matmul %270, %308, %cst_90 {dimension_numbers = #tpu.dot_dimension_numbers<[1], [0], [0], [1], [0, 0, 1, 1], [], []>} : vector<2x32xf32>, vector<32x128xf32>, vector<2x128xf32> -> vector<2x128xf32>
    %310 = arith.addf %307, %309 : vector<2x128xf32>
    %311 = arith.negf %310 : vector<2x128xf32>
    %312 = math.exp %311 : vector<2x128xf32>
    %cst_91 = arith.constant 1.000000e+00 : f32
    %313 = vector.broadcast %cst_91 : f32 to vector<2x128xf32>
    %314 = arith.addf %313, %312 : vector<2x128xf32>
    %315 = arith.divf %313, %314 : vector<2x128xf32>
    %316 = math.tanh %310 : vector<2x128xf32>
    %317 = vector.extract_strided_slice %315 {offsets = [0, 0], sizes = [2, 32], strides = [1, 1]} : vector<2x128xf32> to vector<2x32xf32>
    %318 = vector.extract_strided_slice %315 {offsets = [0, 32], sizes = [2, 32], strides = [1, 1]} : vector<2x128xf32> to vector<2x32xf32>
    %319 = vector.extract_strided_slice %316 {offsets = [0, 64], sizes = [2, 32], strides = [1, 1]} : vector<2x128xf32> to vector<2x32xf32>
    %320 = vector.extract_strided_slice %315 {offsets = [0, 96], sizes = [2, 32], strides = [1, 1]} : vector<2x128xf32> to vector<2x32xf32>
    %321 = arith.mulf %318, %268 : vector<2x32xf32>
    %322 = arith.mulf %317, %319 : vector<2x32xf32>
    %323 = arith.addf %321, %322 : vector<2x32xf32>
    %324 = math.tanh %323 : vector<2x32xf32>
    %325 = arith.mulf %320, %324 : vector<2x32xf32>
    %326 = tpu.concatenate %325, %291 in 1 : vector<2x32xf32>, vector<2x32xf32> -> vector<2x64xf32>
    %c0_92 = arith.constant 0 : index
    %c0_93 = arith.constant 0 : index
    %327 = vector.load %arg9[%c0_92, %c0_93] : memref<64x128xf32, #tpu.memory_space<vmem>>, vector<64x128xf32>
    %cst_94 = arith.constant dense<0.000000e+00> : vector<2x128xf32>
    %328 = tpu.matmul %326, %327, %cst_94 {dimension_numbers = #tpu.dot_dimension_numbers<[1], [0], [0], [1], [0, 0, 1, 1], [], []>} : vector<2x64xf32>, vector<64x128xf32>, vector<2x128xf32> -> vector<2x128xf32>
    %c0_95 = arith.constant 0 : index
    %c0_96 = arith.constant 0 : index
    %329 = vector.load %arg10[%c0_95, %c0_96] : memref<1x128xf32, #tpu.memory_space<vmem>>, vector<1x128xf32>
    %330 = vector.broadcast %329 : vector<1x128xf32> to vector<2x128xf32>
    %331 = arith.addf %328, %330 : vector<2x128xf32>
    %332 = arith.negf %331 : vector<2x128xf32>
    %333 = math.exp %332 : vector<2x128xf32>
    %cst_97 = arith.constant 1.000000e+00 : f32
    %334 = vector.broadcast %cst_97 : f32 to vector<2x128xf32>
    %335 = arith.addf %334, %333 : vector<2x128xf32>
    %336 = arith.divf %334, %335 : vector<2x128xf32>
    %337 = math.tanh %331 : vector<2x128xf32>
    %338 = vector.extract_strided_slice %336 {offsets = [0, 0], sizes = [2, 32], strides = [1, 1]} : vector<2x128xf32> to vector<2x32xf32>
    %339 = vector.extract_strided_slice %336 {offsets = [0, 32], sizes = [2, 32], strides = [1, 1]} : vector<2x128xf32> to vector<2x32xf32>
    %340 = vector.extract_strided_slice %337 {offsets = [0, 64], sizes = [2, 32], strides = [1, 1]} : vector<2x128xf32> to vector<2x32xf32>
    %341 = vector.extract_strided_slice %336 {offsets = [0, 96], sizes = [2, 32], strides = [1, 1]} : vector<2x128xf32> to vector<2x32xf32>
    %342 = arith.mulf %339, %289 : vector<2x32xf32>
    %343 = arith.mulf %338, %340 : vector<2x32xf32>
    %344 = arith.addf %342, %343 : vector<2x32xf32>
    %345 = math.tanh %344 : vector<2x32xf32>
    %346 = arith.mulf %341, %345 : vector<2x32xf32>
    %c0_98 = arith.constant 0 : index
    %c0_99 = arith.constant 0 : index
    %347 = vector.load %arg11[%c0_98, %c0_99] : memref<32x128xf32, #tpu.memory_space<vmem>>, vector<32x128xf32>
    %cst_100 = arith.constant dense<0.000000e+00> : vector<2x128xf32>
    %348 = tpu.matmul %346, %347, %cst_100 {dimension_numbers = #tpu.dot_dimension_numbers<[1], [0], [0], [1], [0, 0, 1, 1], [], []>} : vector<2x32xf32>, vector<32x128xf32>, vector<2x128xf32> -> vector<2x128xf32>
    %c0_101 = arith.constant 0 : index
    %c0_102 = arith.constant 0 : index
    %349 = vector.load %arg12[%c0_101, %c0_102] : memref<1x128xf32, #tpu.memory_space<vmem>>, vector<1x128xf32>
    %350 = vector.broadcast %349 : vector<1x128xf32> to vector<2x128xf32>
    %351 = arith.addf %348, %350 : vector<2x128xf32>
    %352 = tpu.concatenate %351, %292 in 0 : vector<2x128xf32>, vector<6x128xf32> -> vector<8x128xf32>
    %c1 = arith.constant 1 : index
    %c0_103 = arith.constant 0 : index
    %c0_104 = arith.constant 0 : index
    %353 = vector.load %arg13[%c1, %c0_103, %c0_104] : memref<8x8x128xf32, #tpu.memory_space<vmem>>, vector<1x8x128xf32>
    %354 = vector.shape_cast %353 : vector<1x8x128xf32> to vector<8x128xf32>
    %355 = vector.shape_cast %352 : vector<8x128xf32> to vector<1x8x128xf32>
    tpu.vector_store %arg13[%c1, %c0_103, %c0_104], %355 {strides = array<i32>} : memref<8x8x128xf32, #tpu.memory_space<vmem>>, vector<1x8x128xf32>,
    %cst_105 = arith.constant dense<0xFF800000> : vector<2xf32>
    %356 = vector.multi_reduction <maximumf>, %351, %cst_105 [1] : vector<2x128xf32> to vector<2xf32>
    %357 = vector.shape_cast %356 : vector<2xf32> to vector<2x1xf32>
    %358 = vector.broadcast %357 : vector<2x1xf32> to vector<2x128xf32>
    %359 = arith.cmpf oeq, %351, %358 : vector<2x128xf32>
    %cst_106 = arith.constant 1.280000e+02 : f32
    %360 = vector.broadcast %cst_106 : f32 to vector<2x128xf32>
    %361 = arith.select %359, %298, %360 : vector<2x128xi1>, vector<2x128xf32>
    %cst_107 = arith.constant dense<0x7F800000> : vector<2xf32>
    %362 = vector.multi_reduction <minimumf>, %361, %cst_107 [1] : vector<2x128xf32> to vector<2xf32>
    %363 = vector.shape_cast %362 : vector<2xf32> to vector<2x1xf32>
    %364 = arith.fptosi %363 : vector<2x1xf32> to vector<2x1xi32>
    %c0_108 = arith.constant 0 : index
    %365 = memref.load %arg2[%c0_108] : memref<7xi32, #tpu.memory_space<smem>>
    %c0_i32 = arith.constant 0 : i32
    %366 = arith.cmpi ne, %365, %c0_i32 : i32
    %c1_109 = arith.constant 1 : index
    %c0_110 = arith.constant 0 : index
    %c0_111 = arith.constant 0 : index
    %367 = vector.load %arg1[%c1_109, %c0_110, %c0_111] : memref<8x2x1xi32, #tpu.memory_space<vmem>>, vector<1x2x1xi32>
    %368 = vector.shape_cast %367 : vector<1x2x1xi32> to vector<2x1xi32>
    %369 = arith.select %366, %368, %364 : vector<2x1xi32>
    %370 = vector.broadcast %369 : vector<2x1xi32> to vector<2x20xi32>
    %371 = arith.cmpi eq, %299, %370 : vector<2x20xi32>
    %372 = arith.extui %371 : vector<2x20xi1> to vector<2x20xi32>
    %373 = arith.sitofp %372 : vector<2x20xi32> to vector<2x20xf32>
    %c0_112 = arith.constant 0 : index
    %c0_113 = arith.constant 0 : index
    %374 = vector.load %arg7[%c0_112, %c0_113] : memref<20x128xf32, #tpu.memory_space<vmem>>, vector<20x128xf32>
    %cst_114 = arith.constant dense<0.000000e+00> : vector<2x128xf32>
    %375 = tpu.matmul %373, %374, %cst_114 {dimension_numbers = #tpu.dot_dimension_numbers<[1], [0], [0], [1], [0, 0, 1, 1], [], []>} : vector<2x20xf32>, vector<20x128xf32>, vector<2x128xf32> -> vector<2x128xf32>
    %c0_115 = arith.constant 0 : index
    %c0_116 = arith.constant 0 : index
    %376 = vector.load %arg8[%c0_115, %c0_116] : memref<32x128xf32, #tpu.memory_space<vmem>>, vector<32x128xf32>
    %cst_117 = arith.constant dense<0.000000e+00> : vector<2x128xf32>
    %377 = tpu.matmul %325, %376, %cst_117 {dimension_numbers = #tpu.dot_dimension_numbers<[1], [0], [0], [1], [0, 0, 1, 1], [], []>} : vector<2x32xf32>, vector<32x128xf32>, vector<2x128xf32> -> vector<2x128xf32>
    %378 = arith.addf %375, %377 : vector<2x128xf32>
    %379 = arith.negf %378 : vector<2x128xf32>
    %380 = math.exp %379 : vector<2x128xf32>
    %cst_118 = arith.constant 1.000000e+00 : f32
    %381 = vector.broadcast %cst_118 : f32 to vector<2x128xf32>
    %382 = arith.addf %381, %380 : vector<2x128xf32>
    %383 = arith.divf %381, %382 : vector<2x128xf32>
    %384 = math.tanh %378 : vector<2x128xf32>
    %385 = vector.extract_strided_slice %383 {offsets = [0, 0], sizes = [2, 32], strides = [1, 1]} : vector<2x128xf32> to vector<2x32xf32>
    %386 = vector.extract_strided_slice %383 {offsets = [0, 32], sizes = [2, 32], strides = [1, 1]} : vector<2x128xf32> to vector<2x32xf32>
    %387 = vector.extract_strided_slice %384 {offsets = [0, 64], sizes = [2, 32], strides = [1, 1]} : vector<2x128xf32> to vector<2x32xf32>
    %388 = vector.extract_strided_slice %383 {offsets = [0, 96], sizes = [2, 32], strides = [1, 1]} : vector<2x128xf32> to vector<2x32xf32>
    %389 = arith.mulf %386, %323 : vector<2x32xf32>
    %390 = arith.mulf %385, %387 : vector<2x32xf32>
    %391 = arith.addf %389, %390 : vector<2x32xf32>
    %392 = math.tanh %391 : vector<2x32xf32>
    %393 = arith.mulf %388, %392 : vector<2x32xf32>
    %394 = tpu.concatenate %393, %346 in 1 : vector<2x32xf32>, vector<2x32xf32> -> vector<2x64xf32>
    %c0_119 = arith.constant 0 : index
    %c0_120 = arith.constant 0 : index
    %395 = vector.load %arg9[%c0_119, %c0_120] : memref<64x128xf32, #tpu.memory_space<vmem>>, vector<64x128xf32>
    %cst_121 = arith.constant dense<0.000000e+00> : vector<2x128xf32>
    %396 = tpu.matmul %394, %395, %cst_121 {dimension_numbers = #tpu.dot_dimension_numbers<[1], [0], [0], [1], [0, 0, 1, 1], [], []>} : vector<2x64xf32>, vector<64x128xf32>, vector<2x128xf32> -> vector<2x128xf32>
    %c0_122 = arith.constant 0 : index
    %c0_123 = arith.constant 0 : index
    %397 = vector.load %arg10[%c0_122, %c0_123] : memref<1x128xf32, #tpu.memory_space<vmem>>, vector<1x128xf32>
    %398 = vector.broadcast %397 : vector<1x128xf32> to vector<2x128xf32>
    %399 = arith.addf %396, %398 : vector<2x128xf32>
    %400 = arith.negf %399 : vector<2x128xf32>
    %401 = math.exp %400 : vector<2x128xf32>
    %cst_124 = arith.constant 1.000000e+00 : f32
    %402 = vector.broadcast %cst_124 : f32 to vector<2x128xf32>
    %403 = arith.addf %402, %401 : vector<2x128xf32>
    %404 = arith.divf %402, %403 : vector<2x128xf32>
    %405 = math.tanh %399 : vector<2x128xf32>
    %406 = vector.extract_strided_slice %404 {offsets = [0, 0], sizes = [2, 32], strides = [1, 1]} : vector<2x128xf32> to vector<2x32xf32>
    %407 = vector.extract_strided_slice %404 {offsets = [0, 32], sizes = [2, 32], strides = [1, 1]} : vector<2x128xf32> to vector<2x32xf32>
    %408 = vector.extract_strided_slice %405 {offsets = [0, 64], sizes = [2, 32], strides = [1, 1]} : vector<2x128xf32> to vector<2x32xf32>
    %409 = vector.extract_strided_slice %404 {offsets = [0, 96], sizes = [2, 32], strides = [1, 1]} : vector<2x128xf32> to vector<2x32xf32>
    %410 = arith.mulf %407, %344 : vector<2x32xf32>
    %411 = arith.mulf %406, %408 : vector<2x32xf32>
    %412 = arith.addf %410, %411 : vector<2x32xf32>
    %413 = math.tanh %412 : vector<2x32xf32>
    %414 = arith.mulf %409, %413 : vector<2x32xf32>
    %c0_125 = arith.constant 0 : index
    %c0_126 = arith.constant 0 : index
    %415 = vector.load %arg11[%c0_125, %c0_126] : memref<32x128xf32, #tpu.memory_space<vmem>>, vector<32x128xf32>
    %cst_127 = arith.constant dense<0.000000e+00> : vector<2x128xf32>
    %416 = tpu.matmul %414, %415, %cst_127 {dimension_numbers = #tpu.dot_dimension_numbers<[1], [0], [0], [1], [0, 0, 1, 1], [], []>} : vector<2x32xf32>, vector<32x128xf32>, vector<2x128xf32> -> vector<2x128xf32>
    %c0_128 = arith.constant 0 : index
    %c0_129 = arith.constant 0 : index
    %417 = vector.load %arg12[%c0_128, %c0_129] : memref<1x128xf32, #tpu.memory_space<vmem>>, vector<1x128xf32>
    %418 = vector.broadcast %417 : vector<1x128xf32> to vector<2x128xf32>
    %419 = arith.addf %416, %418 : vector<2x128xf32>
    %420 = tpu.concatenate %419, %292 in 0 : vector<2x128xf32>, vector<6x128xf32> -> vector<8x128xf32>
    %c2 = arith.constant 2 : index
    %c0_130 = arith.constant 0 : index
    %c0_131 = arith.constant 0 : index
    %421 = vector.load %arg13[%c2, %c0_130, %c0_131] : memref<8x8x128xf32, #tpu.memory_space<vmem>>, vector<1x8x128xf32>
    %422 = vector.shape_cast %421 : vector<1x8x128xf32> to vector<8x128xf32>
    %423 = vector.shape_cast %420 : vector<8x128xf32> to vector<1x8x128xf32>
    tpu.vector_store %arg13[%c2, %c0_130, %c0_131], %423 {strides = array<i32>} : memref<8x8x128xf32, #tpu.memory_space<vmem>>, vector<1x8x128xf32>,
    %cst_132 = arith.constant dense<0xFF800000> : vector<2xf32>
    %424 = vector.multi_reduction <maximumf>, %419, %cst_132 [1] : vector<2x128xf32> to vector<2xf32>
    %425 = vector.shape_cast %424 : vector<2xf32> to vector<2x1xf32>
    %426 = vector.broadcast %425 : vector<2x1xf32> to vector<2x128xf32>
    %427 = arith.cmpf oeq, %419, %426 : vector<2x128xf32>
    %cst_133 = arith.constant 1.280000e+02 : f32
    %428 = vector.broadcast %cst_133 : f32 to vector<2x128xf32>
    %429 = arith.select %427, %298, %428 : vector<2x128xi1>, vector<2x128xf32>
    %cst_134 = arith.constant dense<0x7F800000> : vector<2xf32>
    %430 = vector.multi_reduction <minimumf>, %429, %cst_134 [1] : vector<2x128xf32> to vector<2xf32>
    %431 = vector.shape_cast %430 : vector<2xf32> to vector<2x1xf32>
    %432 = arith.fptosi %431 : vector<2x1xf32> to vector<2x1xi32>
    %c1_135 = arith.constant 1 : index
    %433 = memref.load %arg2[%c1_135] : memref<7xi32, #tpu.memory_space<smem>>
    %c0_i32_136 = arith.constant 0 : i32
    %434 = arith.cmpi ne, %433, %c0_i32_136 : i32
    %c2_137 = arith.constant 2 : index
    %c0_138 = arith.constant 0 : index
    %c0_139 = arith.constant 0 : index
    %435 = vector.load %arg1[%c2_137, %c0_138, %c0_139] : memref<8x2x1xi32, #tpu.memory_space<vmem>>, vector<1x2x1xi32>
    %436 = vector.shape_cast %435 : vector<1x2x1xi32> to vector<2x1xi32>
    %437 = arith.select %434, %436, %432 : vector<2x1xi32>
    %438 = vector.broadcast %437 : vector<2x1xi32> to vector<2x20xi32>
    %439 = arith.cmpi eq, %299, %438 : vector<2x20xi32>
    %440 = arith.extui %439 : vector<2x20xi1> to vector<2x20xi32>
    %441 = arith.sitofp %440 : vector<2x20xi32> to vector<2x20xf32>
    %c0_140 = arith.constant 0 : index
    %c0_141 = arith.constant 0 : index
    %442 = vector.load %arg7[%c0_140, %c0_141] : memref<20x128xf32, #tpu.memory_space<vmem>>, vector<20x128xf32>
    %cst_142 = arith.constant dense<0.000000e+00> : vector<2x128xf32>
    %443 = tpu.matmul %441, %442, %cst_142 {dimension_numbers = #tpu.dot_dimension_numbers<[1], [0], [0], [1], [0, 0, 1, 1], [], []>} : vector<2x20xf32>, vector<20x128xf32>, vector<2x128xf32> -> vector<2x128xf32>
    %c0_143 = arith.constant 0 : index
    %c0_144 = arith.constant 0 : index
    %444 = vector.load %arg8[%c0_143, %c0_144] : memref<32x128xf32, #tpu.memory_space<vmem>>, vector<32x128xf32>
    %cst_145 = arith.constant dense<0.000000e+00> : vector<2x128xf32>
    %445 = tpu.matmul %393, %444, %cst_145 {dimension_numbers = #tpu.dot_dimension_numbers<[1], [0], [0], [1], [0, 0, 1, 1], [], []>} : vector<2x32xf32>, vector<32x128xf32>, vector<2x128xf32> -> vector<2x128xf32>
    %446 = arith.addf %443, %445 : vector<2x128xf32>
    %447 = arith.negf %446 : vector<2x128xf32>
    %448 = math.exp %447 : vector<2x128xf32>
    %cst_146 = arith.constant 1.000000e+00 : f32
    %449 = vector.broadcast %cst_146 : f32 to vector<2x128xf32>
    %450 = arith.addf %449, %448 : vector<2x128xf32>
    %451 = arith.divf %449, %450 : vector<2x128xf32>
    %452 = math.tanh %446 : vector<2x128xf32>
    %453 = vector.extract_strided_slice %451 {offsets = [0, 0], sizes = [2, 32], strides = [1, 1]} : vector<2x128xf32> to vector<2x32xf32>
    %454 = vector.extract_strided_slice %451 {offsets = [0, 32], sizes = [2, 32], strides = [1, 1]} : vector<2x128xf32> to vector<2x32xf32>
    %455 = vector.extract_strided_slice %452 {offsets = [0, 64], sizes = [2, 32], strides = [1, 1]} : vector<2x128xf32> to vector<2x32xf32>
    %456 = vector.extract_strided_slice %451 {offsets = [0, 96], sizes = [2, 32], strides = [1, 1]} : vector<2x128xf32> to vector<2x32xf32>
    %457 = arith.mulf %454, %391 : vector<2x32xf32>
    %458 = arith.mulf %453, %455 : vector<2x32xf32>
    %459 = arith.addf %457, %458 : vector<2x32xf32>
    %460 = math.tanh %459 : vector<2x32xf32>
    %461 = arith.mulf %456, %460 : vector<2x32xf32>
    %462 = tpu.concatenate %461, %414 in 1 : vector<2x32xf32>, vector<2x32xf32> -> vector<2x64xf32>
    %c0_147 = arith.constant 0 : index
    %c0_148 = arith.constant 0 : index
    %463 = vector.load %arg9[%c0_147, %c0_148] : memref<64x128xf32, #tpu.memory_space<vmem>>, vector<64x128xf32>
    %cst_149 = arith.constant dense<0.000000e+00> : vector<2x128xf32>
    %464 = tpu.matmul %462, %463, %cst_149 {dimension_numbers = #tpu.dot_dimension_numbers<[1], [0], [0], [1], [0, 0, 1, 1], [], []>} : vector<2x64xf32>, vector<64x128xf32>, vector<2x128xf32> -> vector<2x128xf32>
    %c0_150 = arith.constant 0 : index
    %c0_151 = arith.constant 0 : index
    %465 = vector.load %arg10[%c0_150, %c0_151] : memref<1x128xf32, #tpu.memory_space<vmem>>, vector<1x128xf32>
    %466 = vector.broadcast %465 : vector<1x128xf32> to vector<2x128xf32>
    %467 = arith.addf %464, %466 : vector<2x128xf32>
    %468 = arith.negf %467 : vector<2x128xf32>
    %469 = math.exp %468 : vector<2x128xf32>
    %cst_152 = arith.constant 1.000000e+00 : f32
    %470 = vector.broadcast %cst_152 : f32 to vector<2x128xf32>
    %471 = arith.addf %470, %469 : vector<2x128xf32>
    %472 = arith.divf %470, %471 : vector<2x128xf32>
    %473 = math.tanh %467 : vector<2x128xf32>
    %474 = vector.extract_strided_slice %472 {offsets = [0, 0], sizes = [2, 32], strides = [1, 1]} : vector<2x128xf32> to vector<2x32xf32>
    %475 = vector.extract_strided_slice %472 {offsets = [0, 32], sizes = [2, 32], strides = [1, 1]} : vector<2x128xf32> to vector<2x32xf32>
    %476 = vector.extract_strided_slice %473 {offsets = [0, 64], sizes = [2, 32], strides = [1, 1]} : vector<2x128xf32> to vector<2x32xf32>
    %477 = vector.extract_strided_slice %472 {offsets = [0, 96], sizes = [2, 32], strides = [1, 1]} : vector<2x128xf32> to vector<2x32xf32>
    %478 = arith.mulf %475, %412 : vector<2x32xf32>
    %479 = arith.mulf %474, %476 : vector<2x32xf32>
    %480 = arith.addf %478, %479 : vector<2x32xf32>
    %481 = math.tanh %480 : vector<2x32xf32>
    %482 = arith.mulf %477, %481 : vector<2x32xf32>
    %c0_153 = arith.constant 0 : index
    %c0_154 = arith.constant 0 : index
    %483 = vector.load %arg11[%c0_153, %c0_154] : memref<32x128xf32, #tpu.memory_space<vmem>>, vector<32x128xf32>
    %cst_155 = arith.constant dense<0.000000e+00> : vector<2x128xf32>
    %484 = tpu.matmul %482, %483, %cst_155 {dimension_numbers = #tpu.dot_dimension_numbers<[1], [0], [0], [1], [0, 0, 1, 1], [], []>} : vector<2x32xf32>, vector<32x128xf32>, vector<2x128xf32> -> vector<2x128xf32>
    %c0_156 = arith.constant 0 : index
    %c0_157 = arith.constant 0 : index
    %485 = vector.load %arg12[%c0_156, %c0_157] : memref<1x128xf32, #tpu.memory_space<vmem>>, vector<1x128xf32>
    %486 = vector.broadcast %485 : vector<1x128xf32> to vector<2x128xf32>
    %487 = arith.addf %484, %486 : vector<2x128xf32>
    %488 = tpu.concatenate %487, %292 in 0 : vector<2x128xf32>, vector<6x128xf32> -> vector<8x128xf32>
    %c3 = arith.constant 3 : index
    %c0_158 = arith.constant 0 : index
    %c0_159 = arith.constant 0 : index
    %489 = vector.load %arg13[%c3, %c0_158, %c0_159] : memref<8x8x128xf32, #tpu.memory_space<vmem>>, vector<1x8x128xf32>
    %490 = vector.shape_cast %489 : vector<1x8x128xf32> to vector<8x128xf32>
    %491 = vector.shape_cast %488 : vector<8x128xf32> to vector<1x8x128xf32>
    tpu.vector_store %arg13[%c3, %c0_158, %c0_159], %491 {strides = array<i32>} : memref<8x8x128xf32, #tpu.memory_space<vmem>>, vector<1x8x128xf32>,
    %cst_160 = arith.constant dense<0xFF800000> : vector<2xf32>
    %492 = vector.multi_reduction <maximumf>, %487, %cst_160 [1] : vector<2x128xf32> to vector<2xf32>
    %493 = vector.shape_cast %492 : vector<2xf32> to vector<2x1xf32>
    %494 = vector.broadcast %493 : vector<2x1xf32> to vector<2x128xf32>
    %495 = arith.cmpf oeq, %487, %494 : vector<2x128xf32>
    %cst_161 = arith.constant 1.280000e+02 : f32
    %496 = vector.broadcast %cst_161 : f32 to vector<2x128xf32>
    %497 = arith.select %495, %298, %496 : vector<2x128xi1>, vector<2x128xf32>
    %cst_162 = arith.constant dense<0x7F800000> : vector<2xf32>
    %498 = vector.multi_reduction <minimumf>, %497, %cst_162 [1] : vector<2x128xf32> to vector<2xf32>
    %499 = vector.shape_cast %498 : vector<2xf32> to vector<2x1xf32>
    %500 = arith.fptosi %499 : vector<2x1xf32> to vector<2x1xi32>
    %c2_163 = arith.constant 2 : index
    %501 = memref.load %arg2[%c2_163] : memref<7xi32, #tpu.memory_space<smem>>
    %c0_i32_164 = arith.constant 0 : i32
    %502 = arith.cmpi ne, %501, %c0_i32_164 : i32
    %c3_165 = arith.constant 3 : index
    %c0_166 = arith.constant 0 : index
    %c0_167 = arith.constant 0 : index
    %503 = vector.load %arg1[%c3_165, %c0_166, %c0_167] : memref<8x2x1xi32, #tpu.memory_space<vmem>>, vector<1x2x1xi32>
    %504 = vector.shape_cast %503 : vector<1x2x1xi32> to vector<2x1xi32>
    %505 = arith.select %502, %504, %500 : vector<2x1xi32>
    %506 = vector.broadcast %505 : vector<2x1xi32> to vector<2x20xi32>
    %507 = arith.cmpi eq, %299, %506 : vector<2x20xi32>
    %508 = arith.extui %507 : vector<2x20xi1> to vector<2x20xi32>
    %509 = arith.sitofp %508 : vector<2x20xi32> to vector<2x20xf32>
    %c0_168 = arith.constant 0 : index
    %c0_169 = arith.constant 0 : index
    %510 = vector.load %arg7[%c0_168, %c0_169] : memref<20x128xf32, #tpu.memory_space<vmem>>, vector<20x128xf32>
    %cst_170 = arith.constant dense<0.000000e+00> : vector<2x128xf32>
    %511 = tpu.matmul %509, %510, %cst_170 {dimension_numbers = #tpu.dot_dimension_numbers<[1], [0], [0], [1], [0, 0, 1, 1], [], []>} : vector<2x20xf32>, vector<20x128xf32>, vector<2x128xf32> -> vector<2x128xf32>
    %c0_171 = arith.constant 0 : index
    %c0_172 = arith.constant 0 : index
    %512 = vector.load %arg8[%c0_171, %c0_172] : memref<32x128xf32, #tpu.memory_space<vmem>>, vector<32x128xf32>
    %cst_173 = arith.constant dense<0.000000e+00> : vector<2x128xf32>
    %513 = tpu.matmul %461, %512, %cst_173 {dimension_numbers = #tpu.dot_dimension_numbers<[1], [0], [0], [1], [0, 0, 1, 1], [], []>} : vector<2x32xf32>, vector<32x128xf32>, vector<2x128xf32> -> vector<2x128xf32>
    %514 = arith.addf %511, %513 : vector<2x128xf32>
    %515 = arith.negf %514 : vector<2x128xf32>
    %516 = math.exp %515 : vector<2x128xf32>
    %cst_174 = arith.constant 1.000000e+00 : f32
    %517 = vector.broadcast %cst_174 : f32 to vector<2x128xf32>
    %518 = arith.addf %517, %516 : vector<2x128xf32>
    %519 = arith.divf %517, %518 : vector<2x128xf32>
    %520 = math.tanh %514 : vector<2x128xf32>
    %521 = vector.extract_strided_slice %519 {offsets = [0, 0], sizes = [2, 32], strides = [1, 1]} : vector<2x128xf32> to vector<2x32xf32>
    %522 = vector.extract_strided_slice %519 {offsets = [0, 32], sizes = [2, 32], strides = [1, 1]} : vector<2x128xf32> to vector<2x32xf32>
    %523 = vector.extract_strided_slice %520 {offsets = [0, 64], sizes = [2, 32], strides = [1, 1]} : vector<2x128xf32> to vector<2x32xf32>
    %524 = vector.extract_strided_slice %519 {offsets = [0, 96], sizes = [2, 32], strides = [1, 1]} : vector<2x128xf32> to vector<2x32xf32>
    %525 = arith.mulf %522, %459 : vector<2x32xf32>
    %526 = arith.mulf %521, %523 : vector<2x32xf32>
    %527 = arith.addf %525, %526 : vector<2x32xf32>
    %528 = math.tanh %527 : vector<2x32xf32>
    %529 = arith.mulf %524, %528 : vector<2x32xf32>
    %530 = tpu.concatenate %529, %482 in 1 : vector<2x32xf32>, vector<2x32xf32> -> vector<2x64xf32>
    %c0_175 = arith.constant 0 : index
    %c0_176 = arith.constant 0 : index
    %531 = vector.load %arg9[%c0_175, %c0_176] : memref<64x128xf32, #tpu.memory_space<vmem>>, vector<64x128xf32>
    %cst_177 = arith.constant dense<0.000000e+00> : vector<2x128xf32>
    %532 = tpu.matmul %530, %531, %cst_177 {dimension_numbers = #tpu.dot_dimension_numbers<[1], [0], [0], [1], [0, 0, 1, 1], [], []>} : vector<2x64xf32>, vector<64x128xf32>, vector<2x128xf32> -> vector<2x128xf32>
    %c0_178 = arith.constant 0 : index
    %c0_179 = arith.constant 0 : index
    %533 = vector.load %arg10[%c0_178, %c0_179] : memref<1x128xf32, #tpu.memory_space<vmem>>, vector<1x128xf32>
    %534 = vector.broadcast %533 : vector<1x128xf32> to vector<2x128xf32>
    %535 = arith.addf %532, %534 : vector<2x128xf32>
    %536 = arith.negf %535 : vector<2x128xf32>
    %537 = math.exp %536 : vector<2x128xf32>
    %cst_180 = arith.constant 1.000000e+00 : f32
    %538 = vector.broadcast %cst_180 : f32 to vector<2x128xf32>
    %539 = arith.addf %538, %537 : vector<2x128xf32>
    %540 = arith.divf %538, %539 : vector<2x128xf32>
    %541 = math.tanh %535 : vector<2x128xf32>
    %542 = vector.extract_strided_slice %540 {offsets = [0, 0], sizes = [2, 32], strides = [1, 1]} : vector<2x128xf32> to vector<2x32xf32>
    %543 = vector.extract_strided_slice %540 {offsets = [0, 32], sizes = [2, 32], strides = [1, 1]} : vector<2x128xf32> to vector<2x32xf32>
    %544 = vector.extract_strided_slice %541 {offsets = [0, 64], sizes = [2, 32], strides = [1, 1]} : vector<2x128xf32> to vector<2x32xf32>
    %545 = vector.extract_strided_slice %540 {offsets = [0, 96], sizes = [2, 32], strides = [1, 1]} : vector<2x128xf32> to vector<2x32xf32>
    %546 = arith.mulf %543, %480 : vector<2x32xf32>
    %547 = arith.mulf %542, %544 : vector<2x32xf32>
    %548 = arith.addf %546, %547 : vector<2x32xf32>
    %549 = math.tanh %548 : vector<2x32xf32>
    %550 = arith.mulf %545, %549 : vector<2x32xf32>
    %c0_181 = arith.constant 0 : index
    %c0_182 = arith.constant 0 : index
    %551 = vector.load %arg11[%c0_181, %c0_182] : memref<32x128xf32, #tpu.memory_space<vmem>>, vector<32x128xf32>
    %cst_183 = arith.constant dense<0.000000e+00> : vector<2x128xf32>
    %552 = tpu.matmul %550, %551, %cst_183 {dimension_numbers = #tpu.dot_dimension_numbers<[1], [0], [0], [1], [0, 0, 1, 1], [], []>} : vector<2x32xf32>, vector<32x128xf32>, vector<2x128xf32> -> vector<2x128xf32>
    %c0_184 = arith.constant 0 : index
    %c0_185 = arith.constant 0 : index
    %553 = vector.load %arg12[%c0_184, %c0_185] : memref<1x128xf32, #tpu.memory_space<vmem>>, vector<1x128xf32>
    %554 = vector.broadcast %553 : vector<1x128xf32> to vector<2x128xf32>
    %555 = arith.addf %552, %554 : vector<2x128xf32>
    %556 = tpu.concatenate %555, %292 in 0 : vector<2x128xf32>, vector<6x128xf32> -> vector<8x128xf32>
    %c4 = arith.constant 4 : index
    %c0_186 = arith.constant 0 : index
    %c0_187 = arith.constant 0 : index
    %557 = vector.load %arg13[%c4, %c0_186, %c0_187] : memref<8x8x128xf32, #tpu.memory_space<vmem>>, vector<1x8x128xf32>
    %558 = vector.shape_cast %557 : vector<1x8x128xf32> to vector<8x128xf32>
    %559 = vector.shape_cast %556 : vector<8x128xf32> to vector<1x8x128xf32>
    tpu.vector_store %arg13[%c4, %c0_186, %c0_187], %559 {strides = array<i32>} : memref<8x8x128xf32, #tpu.memory_space<vmem>>, vector<1x8x128xf32>,
    %cst_188 = arith.constant dense<0xFF800000> : vector<2xf32>
    %560 = vector.multi_reduction <maximumf>, %555, %cst_188 [1] : vector<2x128xf32> to vector<2xf32>
    %561 = vector.shape_cast %560 : vector<2xf32> to vector<2x1xf32>
    %562 = vector.broadcast %561 : vector<2x1xf32> to vector<2x128xf32>
    %563 = arith.cmpf oeq, %555, %562 : vector<2x128xf32>
    %cst_189 = arith.constant 1.280000e+02 : f32
    %564 = vector.broadcast %cst_189 : f32 to vector<2x128xf32>
    %565 = arith.select %563, %298, %564 : vector<2x128xi1>, vector<2x128xf32>
    %cst_190 = arith.constant dense<0x7F800000> : vector<2xf32>
    %566 = vector.multi_reduction <minimumf>, %565, %cst_190 [1] : vector<2x128xf32> to vector<2xf32>
    %567 = vector.shape_cast %566 : vector<2xf32> to vector<2x1xf32>
    %568 = arith.fptosi %567 : vector<2x1xf32> to vector<2x1xi32>
    %c3_191 = arith.constant 3 : index
    %569 = memref.load %arg2[%c3_191] : memref<7xi32, #tpu.memory_space<smem>>
    %c0_i32_192 = arith.constant 0 : i32
    %570 = arith.cmpi ne, %569, %c0_i32_192 : i32
    %c4_193 = arith.constant 4 : index
    %c0_194 = arith.constant 0 : index
    %c0_195 = arith.constant 0 : index
    %571 = vector.load %arg1[%c4_193, %c0_194, %c0_195] : memref<8x2x1xi32, #tpu.memory_space<vmem>>, vector<1x2x1xi32>
    %572 = vector.shape_cast %571 : vector<1x2x1xi32> to vector<2x1xi32>
    %573 = arith.select %570, %572, %568 : vector<2x1xi32>
    %574 = vector.broadcast %573 : vector<2x1xi32> to vector<2x20xi32>
    %575 = arith.cmpi eq, %299, %574 : vector<2x20xi32>
    %576 = arith.extui %575 : vector<2x20xi1> to vector<2x20xi32>
    %577 = arith.sitofp %576 : vector<2x20xi32> to vector<2x20xf32>
    %c0_196 = arith.constant 0 : index
    %c0_197 = arith.constant 0 : index
    %578 = vector.load %arg7[%c0_196, %c0_197] : memref<20x128xf32, #tpu.memory_space<vmem>>, vector<20x128xf32>
    %cst_198 = arith.constant dense<0.000000e+00> : vector<2x128xf32>
    %579 = tpu.matmul %577, %578, %cst_198 {dimension_numbers = #tpu.dot_dimension_numbers<[1], [0], [0], [1], [0, 0, 1, 1], [], []>} : vector<2x20xf32>, vector<20x128xf32>, vector<2x128xf32> -> vector<2x128xf32>
    %c0_199 = arith.constant 0 : index
    %c0_200 = arith.constant 0 : index
    %580 = vector.load %arg8[%c0_199, %c0_200] : memref<32x128xf32, #tpu.memory_space<vmem>>, vector<32x128xf32>
    %cst_201 = arith.constant dense<0.000000e+00> : vector<2x128xf32>
    %581 = tpu.matmul %529, %580, %cst_201 {dimension_numbers = #tpu.dot_dimension_numbers<[1], [0], [0], [1], [0, 0, 1, 1], [], []>} : vector<2x32xf32>, vector<32x128xf32>, vector<2x128xf32> -> vector<2x128xf32>
    %582 = arith.addf %579, %581 : vector<2x128xf32>
    %583 = arith.negf %582 : vector<2x128xf32>
    %584 = math.exp %583 : vector<2x128xf32>
    %cst_202 = arith.constant 1.000000e+00 : f32
    %585 = vector.broadcast %cst_202 : f32 to vector<2x128xf32>
    %586 = arith.addf %585, %584 : vector<2x128xf32>
    %587 = arith.divf %585, %586 : vector<2x128xf32>
    %588 = math.tanh %582 : vector<2x128xf32>
    %589 = vector.extract_strided_slice %587 {offsets = [0, 0], sizes = [2, 32], strides = [1, 1]} : vector<2x128xf32> to vector<2x32xf32>
    %590 = vector.extract_strided_slice %587 {offsets = [0, 32], sizes = [2, 32], strides = [1, 1]} : vector<2x128xf32> to vector<2x32xf32>
    %591 = vector.extract_strided_slice %588 {offsets = [0, 64], sizes = [2, 32], strides = [1, 1]} : vector<2x128xf32> to vector<2x32xf32>
    %592 = vector.extract_strided_slice %587 {offsets = [0, 96], sizes = [2, 32], strides = [1, 1]} : vector<2x128xf32> to vector<2x32xf32>
    %593 = arith.mulf %590, %527 : vector<2x32xf32>
    %594 = arith.mulf %589, %591 : vector<2x32xf32>
    %595 = arith.addf %593, %594 : vector<2x32xf32>
    %596 = math.tanh %595 : vector<2x32xf32>
    %597 = arith.mulf %592, %596 : vector<2x32xf32>
    %598 = tpu.concatenate %597, %550 in 1 : vector<2x32xf32>, vector<2x32xf32> -> vector<2x64xf32>
    %c0_203 = arith.constant 0 : index
    %c0_204 = arith.constant 0 : index
    %599 = vector.load %arg9[%c0_203, %c0_204] : memref<64x128xf32, #tpu.memory_space<vmem>>, vector<64x128xf32>
    %cst_205 = arith.constant dense<0.000000e+00> : vector<2x128xf32>
    %600 = tpu.matmul %598, %599, %cst_205 {dimension_numbers = #tpu.dot_dimension_numbers<[1], [0], [0], [1], [0, 0, 1, 1], [], []>} : vector<2x64xf32>, vector<64x128xf32>, vector<2x128xf32> -> vector<2x128xf32>
    %c0_206 = arith.constant 0 : index
    %c0_207 = arith.constant 0 : index
    %601 = vector.load %arg10[%c0_206, %c0_207] : memref<1x128xf32, #tpu.memory_space<vmem>>, vector<1x128xf32>
    %602 = vector.broadcast %601 : vector<1x128xf32> to vector<2x128xf32>
    %603 = arith.addf %600, %602 : vector<2x128xf32>
    %604 = arith.negf %603 : vector<2x128xf32>
    %605 = math.exp %604 : vector<2x128xf32>
    %cst_208 = arith.constant 1.000000e+00 : f32
    %606 = vector.broadcast %cst_208 : f32 to vector<2x128xf32>
    %607 = arith.addf %606, %605 : vector<2x128xf32>
    %608 = arith.divf %606, %607 : vector<2x128xf32>
    %609 = math.tanh %603 : vector<2x128xf32>
    %610 = vector.extract_strided_slice %608 {offsets = [0, 0], sizes = [2, 32], strides = [1, 1]} : vector<2x128xf32> to vector<2x32xf32>
    %611 = vector.extract_strided_slice %608 {offsets = [0, 32], sizes = [2, 32], strides = [1, 1]} : vector<2x128xf32> to vector<2x32xf32>
    %612 = vector.extract_strided_slice %609 {offsets = [0, 64], sizes = [2, 32], strides = [1, 1]} : vector<2x128xf32> to vector<2x32xf32>
    %613 = vector.extract_strided_slice %608 {offsets = [0, 96], sizes = [2, 32], strides = [1, 1]} : vector<2x128xf32> to vector<2x32xf32>
    %614 = arith.mulf %611, %548 : vector<2x32xf32>
    %615 = arith.mulf %610, %612 : vector<2x32xf32>
    %616 = arith.addf %614, %615 : vector<2x32xf32>
    %617 = math.tanh %616 : vector<2x32xf32>
    %618 = arith.mulf %613, %617 : vector<2x32xf32>
    %c0_209 = arith.constant 0 : index
    %c0_210 = arith.constant 0 : index
    %619 = vector.load %arg11[%c0_209, %c0_210] : memref<32x128xf32, #tpu.memory_space<vmem>>, vector<32x128xf32>
    %cst_211 = arith.constant dense<0.000000e+00> : vector<2x128xf32>
    %620 = tpu.matmul %618, %619, %cst_211 {dimension_numbers = #tpu.dot_dimension_numbers<[1], [0], [0], [1], [0, 0, 1, 1], [], []>} : vector<2x32xf32>, vector<32x128xf32>, vector<2x128xf32> -> vector<2x128xf32>
    %c0_212 = arith.constant 0 : index
    %c0_213 = arith.constant 0 : index
    %621 = vector.load %arg12[%c0_212, %c0_213] : memref<1x128xf32, #tpu.memory_space<vmem>>, vector<1x128xf32>
    %622 = vector.broadcast %621 : vector<1x128xf32> to vector<2x128xf32>
    %623 = arith.addf %620, %622 : vector<2x128xf32>
    %624 = tpu.concatenate %623, %292 in 0 : vector<2x128xf32>, vector<6x128xf32> -> vector<8x128xf32>
    %c5 = arith.constant 5 : index
    %c0_214 = arith.constant 0 : index
    %c0_215 = arith.constant 0 : index
    %625 = vector.load %arg13[%c5, %c0_214, %c0_215] : memref<8x8x128xf32, #tpu.memory_space<vmem>>, vector<1x8x128xf32>
    %626 = vector.shape_cast %625 : vector<1x8x128xf32> to vector<8x128xf32>
    %627 = vector.shape_cast %624 : vector<8x128xf32> to vector<1x8x128xf32>
    tpu.vector_store %arg13[%c5, %c0_214, %c0_215], %627 {strides = array<i32>} : memref<8x8x128xf32, #tpu.memory_space<vmem>>, vector<1x8x128xf32>,
    %cst_216 = arith.constant dense<0xFF800000> : vector<2xf32>
    %628 = vector.multi_reduction <maximumf>, %623, %cst_216 [1] : vector<2x128xf32> to vector<2xf32>
    %629 = vector.shape_cast %628 : vector<2xf32> to vector<2x1xf32>
    %630 = vector.broadcast %629 : vector<2x1xf32> to vector<2x128xf32>
    %631 = arith.cmpf oeq, %623, %630 : vector<2x128xf32>
    %cst_217 = arith.constant 1.280000e+02 : f32
    %632 = vector.broadcast %cst_217 : f32 to vector<2x128xf32>
    %633 = arith.select %631, %298, %632 : vector<2x128xi1>, vector<2x128xf32>
    %cst_218 = arith.constant dense<0x7F800000> : vector<2xf32>
    %634 = vector.multi_reduction <minimumf>, %633, %cst_218 [1] : vector<2x128xf32> to vector<2xf32>
    %635 = vector.shape_cast %634 : vector<2xf32> to vector<2x1xf32>
    %636 = arith.fptosi %635 : vector<2x1xf32> to vector<2x1xi32>
    %c4_219 = arith.constant 4 : index
    %637 = memref.load %arg2[%c4_219] : memref<7xi32, #tpu.memory_space<smem>>
    %c0_i32_220 = arith.constant 0 : i32
    %638 = arith.cmpi ne, %637, %c0_i32_220 : i32
    %c5_221 = arith.constant 5 : index
    %c0_222 = arith.constant 0 : index
    %c0_223 = arith.constant 0 : index
    %639 = vector.load %arg1[%c5_221, %c0_222, %c0_223] : memref<8x2x1xi32, #tpu.memory_space<vmem>>, vector<1x2x1xi32>
    %640 = vector.shape_cast %639 : vector<1x2x1xi32> to vector<2x1xi32>
    %641 = arith.select %638, %640, %636 : vector<2x1xi32>
    %642 = vector.broadcast %641 : vector<2x1xi32> to vector<2x20xi32>
    %643 = arith.cmpi eq, %299, %642 : vector<2x20xi32>
    %644 = arith.extui %643 : vector<2x20xi1> to vector<2x20xi32>
    %645 = arith.sitofp %644 : vector<2x20xi32> to vector<2x20xf32>
    %c0_224 = arith.constant 0 : index
    %c0_225 = arith.constant 0 : index
    %646 = vector.load %arg7[%c0_224, %c0_225] : memref<20x128xf32, #tpu.memory_space<vmem>>, vector<20x128xf32>
    %cst_226 = arith.constant dense<0.000000e+00> : vector<2x128xf32>
    %647 = tpu.matmul %645, %646, %cst_226 {dimension_numbers = #tpu.dot_dimension_numbers<[1], [0], [0], [1], [0, 0, 1, 1], [], []>} : vector<2x20xf32>, vector<20x128xf32>, vector<2x128xf32> -> vector<2x128xf32>
    %c0_227 = arith.constant 0 : index
    %c0_228 = arith.constant 0 : index
    %648 = vector.load %arg8[%c0_227, %c0_228] : memref<32x128xf32, #tpu.memory_space<vmem>>, vector<32x128xf32>
    %cst_229 = arith.constant dense<0.000000e+00> : vector<2x128xf32>
    %649 = tpu.matmul %597, %648, %cst_229 {dimension_numbers = #tpu.dot_dimension_numbers<[1], [0], [0], [1], [0, 0, 1, 1], [], []>} : vector<2x32xf32>, vector<32x128xf32>, vector<2x128xf32> -> vector<2x128xf32>
    %650 = arith.addf %647, %649 : vector<2x128xf32>
    %651 = arith.negf %650 : vector<2x128xf32>
    %652 = math.exp %651 : vector<2x128xf32>
    %cst_230 = arith.constant 1.000000e+00 : f32
    %653 = vector.broadcast %cst_230 : f32 to vector<2x128xf32>
    %654 = arith.addf %653, %652 : vector<2x128xf32>
    %655 = arith.divf %653, %654 : vector<2x128xf32>
    %656 = math.tanh %650 : vector<2x128xf32>
    %657 = vector.extract_strided_slice %655 {offsets = [0, 0], sizes = [2, 32], strides = [1, 1]} : vector<2x128xf32> to vector<2x32xf32>
    %658 = vector.extract_strided_slice %655 {offsets = [0, 32], sizes = [2, 32], strides = [1, 1]} : vector<2x128xf32> to vector<2x32xf32>
    %659 = vector.extract_strided_slice %656 {offsets = [0, 64], sizes = [2, 32], strides = [1, 1]} : vector<2x128xf32> to vector<2x32xf32>
    %660 = vector.extract_strided_slice %655 {offsets = [0, 96], sizes = [2, 32], strides = [1, 1]} : vector<2x128xf32> to vector<2x32xf32>
    %661 = arith.mulf %658, %595 : vector<2x32xf32>
    %662 = arith.mulf %657, %659 : vector<2x32xf32>
    %663 = arith.addf %661, %662 : vector<2x32xf32>
    %664 = math.tanh %663 : vector<2x32xf32>
    %665 = arith.mulf %660, %664 : vector<2x32xf32>
    %666 = tpu.concatenate %665, %618 in 1 : vector<2x32xf32>, vector<2x32xf32> -> vector<2x64xf32>
    %c0_231 = arith.constant 0 : index
    %c0_232 = arith.constant 0 : index
    %667 = vector.load %arg9[%c0_231, %c0_232] : memref<64x128xf32, #tpu.memory_space<vmem>>, vector<64x128xf32>
    %cst_233 = arith.constant dense<0.000000e+00> : vector<2x128xf32>
    %668 = tpu.matmul %666, %667, %cst_233 {dimension_numbers = #tpu.dot_dimension_numbers<[1], [0], [0], [1], [0, 0, 1, 1], [], []>} : vector<2x64xf32>, vector<64x128xf32>, vector<2x128xf32> -> vector<2x128xf32>
    %c0_234 = arith.constant 0 : index
    %c0_235 = arith.constant 0 : index
    %669 = vector.load %arg10[%c0_234, %c0_235] : memref<1x128xf32, #tpu.memory_space<vmem>>, vector<1x128xf32>
    %670 = vector.broadcast %669 : vector<1x128xf32> to vector<2x128xf32>
    %671 = arith.addf %668, %670 : vector<2x128xf32>
    %672 = arith.negf %671 : vector<2x128xf32>
    %673 = math.exp %672 : vector<2x128xf32>
    %cst_236 = arith.constant 1.000000e+00 : f32
    %674 = vector.broadcast %cst_236 : f32 to vector<2x128xf32>
    %675 = arith.addf %674, %673 : vector<2x128xf32>
    %676 = arith.divf %674, %675 : vector<2x128xf32>
    %677 = math.tanh %671 : vector<2x128xf32>
    %678 = vector.extract_strided_slice %676 {offsets = [0, 0], sizes = [2, 32], strides = [1, 1]} : vector<2x128xf32> to vector<2x32xf32>
    %679 = vector.extract_strided_slice %676 {offsets = [0, 32], sizes = [2, 32], strides = [1, 1]} : vector<2x128xf32> to vector<2x32xf32>
    %680 = vector.extract_strided_slice %677 {offsets = [0, 64], sizes = [2, 32], strides = [1, 1]} : vector<2x128xf32> to vector<2x32xf32>
    %681 = vector.extract_strided_slice %676 {offsets = [0, 96], sizes = [2, 32], strides = [1, 1]} : vector<2x128xf32> to vector<2x32xf32>
    %682 = arith.mulf %679, %616 : vector<2x32xf32>
    %683 = arith.mulf %678, %680 : vector<2x32xf32>
    %684 = arith.addf %682, %683 : vector<2x32xf32>
    %685 = math.tanh %684 : vector<2x32xf32>
    %686 = arith.mulf %681, %685 : vector<2x32xf32>
    %c0_237 = arith.constant 0 : index
    %c0_238 = arith.constant 0 : index
    %687 = vector.load %arg11[%c0_237, %c0_238] : memref<32x128xf32, #tpu.memory_space<vmem>>, vector<32x128xf32>
    %cst_239 = arith.constant dense<0.000000e+00> : vector<2x128xf32>
    %688 = tpu.matmul %686, %687, %cst_239 {dimension_numbers = #tpu.dot_dimension_numbers<[1], [0], [0], [1], [0, 0, 1, 1], [], []>} : vector<2x32xf32>, vector<32x128xf32>, vector<2x128xf32> -> vector<2x128xf32>
    %c0_240 = arith.constant 0 : index
    %c0_241 = arith.constant 0 : index
    %689 = vector.load %arg12[%c0_240, %c0_241] : memref<1x128xf32, #tpu.memory_space<vmem>>, vector<1x128xf32>
    %690 = vector.broadcast %689 : vector<1x128xf32> to vector<2x128xf32>
    %691 = arith.addf %688, %690 : vector<2x128xf32>
    %692 = tpu.concatenate %691, %292 in 0 : vector<2x128xf32>, vector<6x128xf32> -> vector<8x128xf32>
    %c6 = arith.constant 6 : index
    %c0_242 = arith.constant 0 : index
    %c0_243 = arith.constant 0 : index
    %693 = vector.load %arg13[%c6, %c0_242, %c0_243] : memref<8x8x128xf32, #tpu.memory_space<vmem>>, vector<1x8x128xf32>
    %694 = vector.shape_cast %693 : vector<1x8x128xf32> to vector<8x128xf32>
    %695 = vector.shape_cast %692 : vector<8x128xf32> to vector<1x8x128xf32>
    tpu.vector_store %arg13[%c6, %c0_242, %c0_243], %695 {strides = array<i32>} : memref<8x8x128xf32, #tpu.memory_space<vmem>>, vector<1x8x128xf32>,
    %cst_244 = arith.constant dense<0xFF800000> : vector<2xf32>
    %696 = vector.multi_reduction <maximumf>, %691, %cst_244 [1] : vector<2x128xf32> to vector<2xf32>
    %697 = vector.shape_cast %696 : vector<2xf32> to vector<2x1xf32>
    %698 = vector.broadcast %697 : vector<2x1xf32> to vector<2x128xf32>
    %699 = arith.cmpf oeq, %691, %698 : vector<2x128xf32>
    %cst_245 = arith.constant 1.280000e+02 : f32
    %700 = vector.broadcast %cst_245 : f32 to vector<2x128xf32>
    %701 = arith.select %699, %298, %700 : vector<2x128xi1>, vector<2x128xf32>
    %cst_246 = arith.constant dense<0x7F800000> : vector<2xf32>
    %702 = vector.multi_reduction <minimumf>, %701, %cst_246 [1] : vector<2x128xf32> to vector<2xf32>
    %703 = vector.shape_cast %702 : vector<2xf32> to vector<2x1xf32>
    %704 = arith.fptosi %703 : vector<2x1xf32> to vector<2x1xi32>
    %c5_247 = arith.constant 5 : index
    %705 = memref.load %arg2[%c5_247] : memref<7xi32, #tpu.memory_space<smem>>
    %c0_i32_248 = arith.constant 0 : i32
    %706 = arith.cmpi ne, %705, %c0_i32_248 : i32
    %c6_249 = arith.constant 6 : index
    %c0_250 = arith.constant 0 : index
    %c0_251 = arith.constant 0 : index
    %707 = vector.load %arg1[%c6_249, %c0_250, %c0_251] : memref<8x2x1xi32, #tpu.memory_space<vmem>>, vector<1x2x1xi32>
    %708 = vector.shape_cast %707 : vector<1x2x1xi32> to vector<2x1xi32>
    %709 = arith.select %706, %708, %704 : vector<2x1xi32>
    %710 = vector.broadcast %709 : vector<2x1xi32> to vector<2x20xi32>
    %711 = arith.cmpi eq, %299, %710 : vector<2x20xi32>
    %712 = arith.extui %711 : vector<2x20xi1> to vector<2x20xi32>
    %713 = arith.sitofp %712 : vector<2x20xi32> to vector<2x20xf32>
    %c0_252 = arith.constant 0 : index
    %c0_253 = arith.constant 0 : index
    %714 = vector.load %arg7[%c0_252, %c0_253] : memref<20x128xf32, #tpu.memory_space<vmem>>, vector<20x128xf32>
    %cst_254 = arith.constant dense<0.000000e+00> : vector<2x128xf32>
    %715 = tpu.matmul %713, %714, %cst_254 {dimension_numbers = #tpu.dot_dimension_numbers<[1], [0], [0], [1], [0, 0, 1, 1], [], []>} : vector<2x20xf32>, vector<20x128xf32>, vector<2x128xf32> -> vector<2x128xf32>
    %c0_255 = arith.constant 0 : index
    %c0_256 = arith.constant 0 : index
    %716 = vector.load %arg8[%c0_255, %c0_256] : memref<32x128xf32, #tpu.memory_space<vmem>>, vector<32x128xf32>
    %cst_257 = arith.constant dense<0.000000e+00> : vector<2x128xf32>
    %717 = tpu.matmul %665, %716, %cst_257 {dimension_numbers = #tpu.dot_dimension_numbers<[1], [0], [0], [1], [0, 0, 1, 1], [], []>} : vector<2x32xf32>, vector<32x128xf32>, vector<2x128xf32> -> vector<2x128xf32>
    %718 = arith.addf %715, %717 : vector<2x128xf32>
    %719 = arith.negf %718 : vector<2x128xf32>
    %720 = math.exp %719 : vector<2x128xf32>
    %cst_258 = arith.constant 1.000000e+00 : f32
    %721 = vector.broadcast %cst_258 : f32 to vector<2x128xf32>
    %722 = arith.addf %721, %720 : vector<2x128xf32>
    %723 = arith.divf %721, %722 : vector<2x128xf32>
    %724 = math.tanh %718 : vector<2x128xf32>
    %725 = vector.extract_strided_slice %723 {offsets = [0, 0], sizes = [2, 32], strides = [1, 1]} : vector<2x128xf32> to vector<2x32xf32>
    %726 = vector.extract_strided_slice %723 {offsets = [0, 32], sizes = [2, 32], strides = [1, 1]} : vector<2x128xf32> to vector<2x32xf32>
    %727 = vector.extract_strided_slice %724 {offsets = [0, 64], sizes = [2, 32], strides = [1, 1]} : vector<2x128xf32> to vector<2x32xf32>
    %728 = vector.extract_strided_slice %723 {offsets = [0, 96], sizes = [2, 32], strides = [1, 1]} : vector<2x128xf32> to vector<2x32xf32>
    %729 = arith.mulf %726, %663 : vector<2x32xf32>
    %730 = arith.mulf %725, %727 : vector<2x32xf32>
    %731 = arith.addf %729, %730 : vector<2x32xf32>
    %732 = math.tanh %731 : vector<2x32xf32>
    %733 = arith.mulf %728, %732 : vector<2x32xf32>
    %734 = tpu.concatenate %733, %686 in 1 : vector<2x32xf32>, vector<2x32xf32> -> vector<2x64xf32>
    %c0_259 = arith.constant 0 : index
    %c0_260 = arith.constant 0 : index
    %735 = vector.load %arg9[%c0_259, %c0_260] : memref<64x128xf32, #tpu.memory_space<vmem>>, vector<64x128xf32>
    %cst_261 = arith.constant dense<0.000000e+00> : vector<2x128xf32>
    %736 = tpu.matmul %734, %735, %cst_261 {dimension_numbers = #tpu.dot_dimension_numbers<[1], [0], [0], [1], [0, 0, 1, 1], [], []>} : vector<2x64xf32>, vector<64x128xf32>, vector<2x128xf32> -> vector<2x128xf32>
    %c0_262 = arith.constant 0 : index
    %c0_263 = arith.constant 0 : index
    %737 = vector.load %arg10[%c0_262, %c0_263] : memref<1x128xf32, #tpu.memory_space<vmem>>, vector<1x128xf32>
    %738 = vector.broadcast %737 : vector<1x128xf32> to vector<2x128xf32>
    %739 = arith.addf %736, %738 : vector<2x128xf32>
    %740 = arith.negf %739 : vector<2x128xf32>
    %741 = math.exp %740 : vector<2x128xf32>
    %cst_264 = arith.constant 1.000000e+00 : f32
    %742 = vector.broadcast %cst_264 : f32 to vector<2x128xf32>
    %743 = arith.addf %742, %741 : vector<2x128xf32>
    %744 = arith.divf %742, %743 : vector<2x128xf32>
    %745 = math.tanh %739 : vector<2x128xf32>
    %746 = vector.extract_strided_slice %744 {offsets = [0, 0], sizes = [2, 32], strides = [1, 1]} : vector<2x128xf32> to vector<2x32xf32>
    %747 = vector.extract_strided_slice %744 {offsets = [0, 32], sizes = [2, 32], strides = [1, 1]} : vector<2x128xf32> to vector<2x32xf32>
    %748 = vector.extract_strided_slice %745 {offsets = [0, 64], sizes = [2, 32], strides = [1, 1]} : vector<2x128xf32> to vector<2x32xf32>
    %749 = vector.extract_strided_slice %744 {offsets = [0, 96], sizes = [2, 32], strides = [1, 1]} : vector<2x128xf32> to vector<2x32xf32>
    %750 = arith.mulf %747, %684 : vector<2x32xf32>
    %751 = arith.mulf %746, %748 : vector<2x32xf32>
    %752 = arith.addf %750, %751 : vector<2x32xf32>
    %753 = math.tanh %752 : vector<2x32xf32>
    %754 = arith.mulf %749, %753 : vector<2x32xf32>
    %c0_265 = arith.constant 0 : index
    %c0_266 = arith.constant 0 : index
    %755 = vector.load %arg11[%c0_265, %c0_266] : memref<32x128xf32, #tpu.memory_space<vmem>>, vector<32x128xf32>
    %cst_267 = arith.constant dense<0.000000e+00> : vector<2x128xf32>
    %756 = tpu.matmul %754, %755, %cst_267 {dimension_numbers = #tpu.dot_dimension_numbers<[1], [0], [0], [1], [0, 0, 1, 1], [], []>} : vector<2x32xf32>, vector<32x128xf32>, vector<2x128xf32> -> vector<2x128xf32>
    %c0_268 = arith.constant 0 : index
    %c0_269 = arith.constant 0 : index
    %757 = vector.load %arg12[%c0_268, %c0_269] : memref<1x128xf32, #tpu.memory_space<vmem>>, vector<1x128xf32>
    %758 = vector.broadcast %757 : vector<1x128xf32> to vector<2x128xf32>
    %759 = arith.addf %756, %758 : vector<2x128xf32>
    %760 = tpu.concatenate %759, %292 in 0 : vector<2x128xf32>, vector<6x128xf32> -> vector<8x128xf32>
    %c7 = arith.constant 7 : index
    %c0_270 = arith.constant 0 : index
    %c0_271 = arith.constant 0 : index
    %761 = vector.load %arg13[%c7, %c0_270, %c0_271] : memref<8x8x128xf32, #tpu.memory_space<vmem>>, vector<1x8x128xf32>
    %762 = vector.shape_cast %761 : vector<1x8x128xf32> to vector<8x128xf32>
    %763 = vector.shape_cast %760 : vector<8x128xf32> to vector<1x8x128xf32>
    tpu.vector_store %arg13[%c7, %c0_270, %c0_271], %763 {strides = array<i32>} : memref<8x8x128xf32, #tpu.memory_space<vmem>>, vector<1x8x128xf32>,
    return
  }
}

</mosaic_0001>

<bundles_post_ra>
// kernel: seq2seq_forward.1
= control target key start
LH: loop header
LB: loop body
LE: loop exit
PB: predicated region body
PF: predicated region fallthrough
CT: control target
= control target key end

     0   :  { %18 = vsyncpa [#allocation4], 0  ;;  %s7447_s0 = inlined_call_operand.vmem [shape: s32[14,1], index: 0, kind: input, shape index: {}]   ;;  %s7448_s1 = inlined_call_operand.vmem [shape: s32[8,2,1], index: 1, kind: input, shape index: {}]   ;;  %s7449_s2 = inlined_call_operand.vmem [shape: s32[7], index: 2, kind: input, shape index: {}]   ;;  %s7450_s3 = inlined_call_operand.hbm [shape: f32[24,128], index: 3, kind: input, shape index: {}]   ;;  %s7451_s4 = inlined_call_operand.hbm [shape: f32[32,128], index: 4, kind: input, shape index: {}]   ;;  %s7452_s5 = inlined_call_operand.vmem [shape: f32[64,128], index: 5, kind: input, shape index: {}]   ;;  %s7453_s6 = inlined_call_operand.hbm [shape: f32[1,128], index: 6, kind: input, shape index: {}]   ;;  %s7454_s7 = inlined_call_operand.hbm [shape: f32[20,128], index: 7, kind: input, shape index: {}]   ;;  %s7455_s8 = inlined_call_operand.hbm [shape: f32[32,128], index: 8, kind: input, shape index: {}]   ;;  %s7456_s9 = inlined_call_operand.hbm [shape: f32[64,128], index: 9, kind: input, shape index: {}]   ;;  %s7457_s10 = inlined_call_operand.hbm [shape: f32[1,128], index: 10, kind: input, shape index: {}]   ;;  %s7458_s11 = inlined_call_operand.vmem [shape: f32[32,128], index: 11, kind: input, shape index: {}]   ;;  %s7459_s12 = inlined_call_operand.hbm [shape: f32[1,128], index: 12, kind: input, shape index: {}]   ;;  %s7460_s13 = inlined_call_operand.vmem [shape: f32[8,8,128], index: 13, kind: output, shape index: {}]  }
   0x1   :  { %19 = vsyncpa [#allocation3], 0 }
   0x2   :  { %20 = vsyncpa [#allocation7], 0 }
   0x3   :  { %21 = vsyncpa [#allocation10], 0 }
   0x4   :  { %22 = vsyncpa [#allocation13], 0 }
   0x5   :  { %23 = vsyncpa [#allocation16], 0  ;;  %s6380_s25 = smov [#allocation6]   ;;  %s6381_s27 = smov [#allocation9]  }
   0x6   :  { %s55_s26 = sshll.u32 %s6380_s25, 4  ;;  %s79_s28 = sshll.u32 %s6381_s27, 4  ;;  %s56_s26 = int_to_ptr.vmem [resolvable:$true] %s55_s26  ;;  %s6467_s28 = int_to_ptr.vmem [resolvable:$true] %s79_s28 }
   0x7   :  { %s6180_s14 = scalar_lea.hbm %s7451_s4, 512 }
   0x8   :  { %p6181_p0 = scmp.ne.s32.totalorder %s7451_s4, %s6180_s14  ;;  %p6184_p1 = scmp.lt.u32.totalorder %s6180_s14, %s7451_s4 }
   0xa   :  { %p6186_p2 = pnand %p6184_p1, %p6181_p0 }
   0xc   :  { %6189 = shalt.err (!%p6186_p2)
}
   0xd   :  { %s6190_s19 = scalar_lea.vmem %s56_s26, 512  ;;  %p6195_p4 = scmp.lt.s32.totalorder %s56_s26, %s56_s26 }
   0xe   :  { %p6191_p3 = scmp.ne.s32.totalorder %s56_s26, %s6190_s19  ;;  %p6196_p5 = scmp.lt.s32.totalorder %s6190_s19, %s6190_s19 }
  0x10   :  { %p6197_p6 = por %p6196_p5, %p6195_p4 }
  0x12   :  { %p6198_p7 = pnand %p6197_p6, %p6191_p3 }
  0x14   :  { %6201 = shalt.err (!%p6198_p7)
}
  0x15   :  { %s6382_s20 = smov 128   ;;  %s6383_s21 = smov 8  }
  0x16   :  { %61 = dma.hbm_to_vmem [thread:$0]  %s7451_s4, 512, %s56_s26, [#allocation7], %s6382_s20, %s6382_s20, %s6383_s21  }
  0x17   :  { %s6202_s27 = scalar_lea.hbm %s7454_s7, 384 }
  0x18   :  { %p6203_p8 = scmp.ne.s32.totalorder %s7454_s7, %s6202_s27  ;;  %p6206_p9 = scmp.lt.u32.totalorder %s6202_s27, %s7454_s7 }
  0x1a   :  { %p6208_p10 = pnand %p6206_p9, %p6203_p8 }
  0x1c   :  { %6211 = shalt.err (!%p6208_p10)
}
  0x1d   :  { %s6212_s16 = scalar_lea.vmem %s6467_s28, 384  ;;  %p6217_p12 = scmp.lt.s32.totalorder %s6467_s28, %s6467_s28 }
  0x1e   :  { %p6213_p11 = scmp.ne.s32.totalorder %s6467_s28, %s6212_s16  ;;  %p6218_p13 = scmp.lt.s32.totalorder %s6212_s16, %s6212_s16 }
  0x20   :  { %p6219_p0 = por %p6218_p13, %p6217_p12 }
  0x22   :  { %p6220_p1 = pnand %p6219_p0, %p6213_p11 }
  0x24   :  { %6223 = shalt.err (!%p6220_p1)
}
  0x25   :  { %85 = dma.hbm_to_vmem [thread:$0]  %s7454_s7, 384, %s6467_s28, [#allocation10], %s6382_s20, %s6382_s20, %s6383_s21  }
  0x26   :  { %s34_s19 = sshll.u32 %s7449_s2, 4  ;;  %s6384_s22 = smov [#allocation12]   ;;  %s35_s19 = int_to_ptr.vmem [resolvable:$true] %s34_s19 }
  0x27   :  { %s103_s23 = sshll.u32 %s6384_s22, 4  ;;  %s6224_s27 = scalar_lea.hbm %s7456_s9, 1024  ;;  %s104_s23 = int_to_ptr.vmem [resolvable:$true] %s103_s23 }
  0x28   :  { %p6225_p2 = scmp.ne.s32.totalorder %s7456_s9, %s6224_s27  ;;  %p6228_p3 = scmp.lt.u32.totalorder %s6224_s27, %s7456_s9 }
  0x2a   :  { %p6230_p4 = pnand %p6228_p3, %p6225_p2 }
  0x2c   :  { %6233 = shalt.err (!%p6230_p4)
}
  0x2d   :  { %s6234_s7 = scalar_lea.vmem %s104_s23, 1024  ;;  %p6239_p6 = scmp.lt.s32.totalorder %s104_s23, %s104_s23 }
  0x2e   :  { %p6235_p5 = scmp.ne.s32.totalorder %s104_s23, %s6234_s7  ;;  %p6240_p7 = scmp.lt.s32.totalorder %s6234_s7, %s6234_s7 }
  0x30   :  { %p6241_p8 = por %p6240_p7, %p6239_p6 }
  0x32   :  { %p6242_p9 = pnand %p6241_p8, %p6235_p5 }
  0x34   :  { %6245 = shalt.err (!%p6242_p9)
}
  0x35   :  { %109 = dma.hbm_to_vmem [thread:$0]  %s7456_s9, 1024, %s104_s23, [#allocation13], %s6382_s20, %s6382_s20, %s6383_s21  }
  0x36   :  { %s6246_s16 = scalar_lea.vmem %s35_s19, 16  ;;  %p6251_p11 = scmp.lt.s32.totalorder %s35_s19, %s35_s19 }
  0x37   :  { %p6247_p10 = scmp.ne.s32.totalorder %s35_s19, %s6246_s16  ;;  %p6252_p12 = scmp.lt.s32.totalorder %s6246_s16, %s6246_s16 }
  0x39   :  { %p6253_p13 = por %p6252_p12, %p6251_p11 }
  0x3b   :  { %p6254_p0 = pnand %p6253_p13, %p6247_p10 }
  0x3d   :  { %6257 = shalt.err (!%p6254_p0)
}
  0x3e   :  { %s6385_s4 = smov [#allocation2]   ;;  %s6386_s26 = smov [#allocation5]  }
  0x3f   :  { %37 = dma.vmem_to_smem %s35_s19, 16, %s6385_s4, [#allocation4]  }
  0x40   :  { %s43_s17 = sshll.u32 %s6386_s26, 4  ;;  %s6387_s18 = smov [#allocation8]   ;;  %s44_s17 = int_to_ptr.vmem [resolvable:$true] %s43_s17 }
  0x41   :  { %s70_s22 = sshll.u32 %s6387_s18, 4  ;;  %s6258_s27 = scalar_lea.hbm %s7450_s3, 384  ;;  %s71_s22 = int_to_ptr.vmem [resolvable:$true] %s70_s22 }
  0x42   :  { %p6259_p1 = scmp.ne.s32.totalorder %s7450_s3, %s6258_s27  ;;  %p6262_p2 = scmp.lt.u32.totalorder %s6258_s27, %s7450_s3 }
  0x44   :  { %p6264_p3 = pnand %p6262_p2, %p6259_p1 }
  0x46   :  { %6267 = shalt.err (!%p6264_p3)
}
  0x47   :  { %s6268_s19 = scalar_lea.vmem %s44_s17, 384  ;;  %p6273_p5 = scmp.lt.s32.totalorder %s44_s17, %s44_s17 }
  0x48   :  { %p6269_p4 = scmp.ne.s32.totalorder %s44_s17, %s6268_s19  ;;  %p6274_p6 = scmp.lt.s32.totalorder %s6268_s19, %s6268_s19 }
  0x4a   :  { %p6275_p7 = por %p6274_p6, %p6273_p5 }
  0x4c   :  { %p6276_p8 = pnand %p6275_p7, %p6269_p4 }
  0x4e   :  { %6279 = shalt.err (!%p6276_p8)
}
  0x4f   :  { %49 = dma.hbm_to_vmem [thread:$0]  %s7450_s3, 384, %s44_s17, [#allocation3], %s6382_s20, %s6382_s20, %s6383_s21  }
  0x50   :  { %s6280_s28 = scalar_lea.hbm %s7453_s6, 16 }
  0x51   :  { %p6281_p9 = scmp.ne.s32.totalorder %s7453_s6, %s6280_s28  ;;  %p6284_p10 = scmp.lt.u32.totalorder %s6280_s28, %s7453_s6 }
  0x53   :  { %p6286_p11 = pnand %p6284_p10, %p6281_p9 }
  0x55   :  { %6289 = shalt.err (!%p6286_p11)
}
  0x56   :  { %s6290_s24 = scalar_lea.vmem %s71_s22, 16  ;;  %s6294_s25 = scalar_lea.vmem %s71_s22, 32 }
  0x57   :  { %p6291_p12 = scmp.ne.s32.totalorder %s71_s22, %s6290_s24  ;;  %p6295_p13 = scmp.lt.s32.totalorder %s71_s22, %s71_s22 }
  0x58   :  { %p6296_p0 = scmp.lt.s32.totalorder %s6294_s25, %s6290_s24 }
  0x5a   :  { %p6297_p1 = por %p6296_p0, %p6295_p13 }
  0x5c   :  { %p6298_p2 = pnand %p6297_p1, %p6291_p12 }
  0x5e   :  { %6301 = shalt.err (!%p6298_p2)
}
  0x5f   :  { %73 = dma.hbm_to_vmem [thread:$0]  %s7453_s6, 16, %s71_s22, [#allocation7]  }
  0x60   :  { %s6388_s27 = smov [#allocation11]   ;;  %s6389_s23 = smov [#allocation14]  }
  0x61   :  { %s91_s9 = sshll.u32 %s6388_s27, 4  ;;  %s116_s29 = sshll.u32 %s6389_s23, 4  ;;  %s92_s9 = int_to_ptr.vmem [resolvable:$true] %s91_s9  ;;  %s117_s29 = int_to_ptr.vmem [resolvable:$true] %s116_s29 }
  0x62   :  { %s6302_s14 = scalar_lea.hbm %s7455_s8, 512 }
  0x63   :  { %p6303_p3 = scmp.ne.s32.totalorder %s7455_s8, %s6302_s14  ;;  %p6306_p4 = scmp.lt.u32.totalorder %s6302_s14, %s7455_s8 }
  0x65   :  { %p6308_p5 = pnand %p6306_p4, %p6303_p3 }
  0x67   :  { %6311 = shalt.err (!%p6308_p5)
}
  0x68   :  { %s6312_s6 = scalar_lea.vmem %s92_s9, 512  ;;  %p6317_p7 = scmp.lt.s32.totalorder %s92_s9, %s92_s9 }
  0x69   :  { %p6313_p6 = scmp.ne.s32.totalorder %s92_s9, %s6312_s6  ;;  %p6318_p8 = scmp.lt.s32.totalorder %s6312_s6, %s6312_s6 }
  0x6b   :  { %p6319_p9 = por %p6318_p8, %p6317_p7 }
  0x6d   :  { %p6320_p10 = pnand %p6319_p9, %p6313_p6 }
  0x6f   :  { %6323 = shalt.err (!%p6320_p10)
}
  0x70   :  { %97 = dma.hbm_to_vmem [thread:$0]  %s7455_s8, 512, %s92_s9, [#allocation10], %s6382_s20, %s6382_s20, %s6383_s21  }
  0x71   :  { %s6324_s18 = scalar_lea.hbm %s7457_s10, 16 }
  0x72   :  { %p6325_p11 = scmp.ne.s32.totalorder %s7457_s10, %s6324_s18  ;;  %p6328_p12 = scmp.lt.u32.totalorder %s6324_s18, %s7457_s10 }
  0x74   :  { %p6330_p13 = pnand %p6328_p12, %p6325_p11 }
  0x76   :  { %6333 = shalt.err (!%p6330_p13)
}
  0x77   :  { %s6334_s27 = scalar_lea.vmem %s117_s29, 16  ;;  %s6338_s23 = scalar_lea.vmem %s117_s29, 32 }
  0x78   :  { %p6335_p0 = scmp.ne.s32.totalorder %s117_s29, %s6334_s27  ;;  %p6339_p1 = scmp.lt.s32.totalorder %s117_s29, %s117_s29 }
  0x79   :  { %p6340_p2 = scmp.lt.s32.totalorder %s6338_s23, %s6334_s27 }
  0x7b   :  { %p6341_p3 = por %p6340_p2, %p6339_p1 }
  0x7d   :  { %p6342_p4 = pnand %p6341_p3, %p6335_p0 }
  0x7f   :  { %6345 = shalt.err (!%p6342_p4)
}
  0x80   :  { %119 = dma.hbm_to_vmem [thread:$0]  %s7457_s10, 16, %s117_s29, [#allocation13]  }
  0x81   :  { %s6390_s21 = smov [#allocation15]   ;;  %s6346_s14 = scalar_lea.hbm %s7459_s12, 16 }
  0x82   :  { %s128_s9 = sshll.u32 %s6390_s21, 4  ;;  %p6347_p5 = scmp.ne.s32.totalorder %s7459_s12, %s6346_s14  ;;  %s129_s9 = int_to_ptr.vmem [resolvable:$true] %s128_s9 }
  0x83   :  { %p6350_p6 = scmp.lt.u32.totalorder %s6346_s14, %s7459_s12 }
  0x85   :  { %p6352_p7 = pnand %p6350_p6, %p6347_p5 }
  0x87   :  { %6355 = shalt.err (!%p6352_p7)
}
  0x88   :  { %s6356_s6 = scalar_lea.vmem %s129_s9, 16  ;;  %s6360_s10 = scalar_lea.vmem %s129_s9, 32 }
  0x89   :  { %p6357_p8 = scmp.ne.s32.totalorder %s129_s9, %s6356_s6  ;;  %p6361_p9 = scmp.lt.s32.totalorder %s129_s9, %s129_s9 }
  0x8a   :  { %p6362_p10 = scmp.lt.s32.totalorder %s6360_s10, %s6356_s6 }
  0x8c   :  { %p6363_p11 = por %p6362_p10, %p6361_p9 }
  0x8e   :  { %p6364_p12 = pnand %p6363_p11, %p6357_p8 }
  0x90   :  { %6367 = shalt.err (!%p6364_p12)
}
  0x91   :  { %131 = dma.hbm_to_vmem [thread:$0]  %s7459_s12, 16, %s129_s9, [#allocation16]  }
  0x92   :  { %6368 = dma.done.wait [#allocation4], 16  }
  0x93   :  { %6369 = vsyncadd [#allocation4], 4294967280 }
  0x94   :  { %6370 = dma.done.wait [#allocation3], 384  }
  0x95   :  { %6371 = vsyncadd [#allocation3], 4294966912 }
  0x96   :  { %6372 = dma.done.wait [#allocation7], 528  }
  0x97   :  { %6373 = vsyncadd [#allocation7], 4294966768 }
  0x98   :  { %6374 = dma.done.wait [#allocation10], 896  }
  0x99   :  { %6375 = vsyncadd [#allocation10], 4294966400 }
  0x9a   :  { %6376 = dma.done.wait [#allocation13], 1040  }
  0x9b   :  { %6377 = vsyncadd [#allocation13], 4294966256 }
  0x9c   :  { %6378 = dma.done.wait [#allocation16], 16  }
  0x9d   :  { %6379 = vsyncadd [#allocation16], 4294967280 }
  0x9e   :  { %159 = sfence }
  0x9f   :  { %v160_v0 = vld [vmem:[%s7447_s0] sm:$0xff]  ;;  %v261_v1 = vld [vmem:[#allocation6] sm:$0xff]  ;;  %v6391_v2 = vmov 0   ;;  %v6392_v3 = vmov 0.0|0.0   ;;  %v177_v6 = vld [vmem:[#allocation5 + $0x8] sm:$0xff]  ;;  %v6393_v12 = vmov 0.0   ;;  %v162_v15 = vlaneseq }
  0xa0   :  { %5953 = vset.pattern.permute.xlu0 %v6391_v2  ;;  %5595 = vmatprep.subr.bf16.mxu1 %v6392_v3  ;;  %v262_v4 = vld [vmem:[#allocation6 + $0x8] sm:$0xff]  ;;  %v263_v9 = vld [vmem:[#allocation6 + $0x10] sm:$0xff]  ;;  %v264_v10 = vld [vmem:[#allocation6 + $0x18] sm:$0xff]  ;;  %1755 = vst [vmem:[%s7460_s13] sm:$0xff] %v6393_v12  ;;  %vm6394_vm0 = vmmov 0   ;;  %vm179_vm1 = vcmask 195584   ;;  %s6396_s25 = smov 32  }
  0xa1   :  { %v176_v5 = vld [vmem:[#allocation5] sm:$0xff]  ;;  %165 = vperm.xlu0 %5953, %v160_v0   ;;  %v6592_v7 = vpack.c.bf16 %v262_v4, %v261_v1  ;;  %v161_v11 = vld [vmem:[%s7447_s0 + $0x8] sm:$0x3f]  ;;  %v6602_v13 = vpack.c.bf16 %v264_v10, %v263_v9  ;;  %v178_v14 = vld [vmem:[#allocation5 + $0x10] sm:$0xff]  ;;  %5039 = vmatprep.mubr.msk.f32.mxu1 %vm6394_vm0, %v6393_v12  ;;  %v6617_v16 = vand.u32 127, %v162_v15  ;;  %s6395_s0 = smov 64  }
  0xa2   :  { %v5591_v8 = vpack.c.bf16 %v177_v6, %v176_v5  ;;  %v369_v36 = vld [vmem:[%s7452_s5] sm:$0xff]  ;;  %v370_v37 = vld [vmem:[%s7452_s5 + $0x8] sm:$0xff]  ;;  %v371_v38 = vld [vmem:[%s7452_s5 + $0x10] sm:$0xff]  ;;  %vm265_vm4 = vcmask 261120   ;;  %vm384_vm5 = vcmask 523264   ;;  %vm1850_vm6 = vcmask 1043456  }
  0xa3   :  { %5597 = vmatpush3.bf16.msra.mxu1 %v6592_v7  ;;  %v6644_v39 = vpack.c.bf16 %v370_v37, %v369_v36  ;;  %v372_v40 = vld [vmem:[%s7452_s5 + $0x18] sm:$0xff]  ;;  %v373_v42 = vld [vmem:[%s7452_s5 + $0x20] sm:$0xff]  ;;  %v374_v43 = vld [vmem:[%s7452_s5 + $0x28] sm:$0xff]  ;;  %vm1846_vm8 = vcmask 162816   ;;  %vm2158_vm9 = vcmask 1041408   ;;  %s2171_s8 = sld [smem:[#allocation2]] }
  0xa4   :  { %5592 = vmatprep.subr.bf16.mxu0 %v5591_v8  ;;  %5598 = vmatprep.subr.bf16.mxu1 %v6392_v3  ;;  %v6650_v41 = vpack.c.bf16 %v372_v40, %v371_v38  ;;  %v6660_v44 = vpack.c.bf16 %v374_v43, %v373_v42  ;;  %v375_v45 = vld [vmem:[%s7452_s5 + $0x30] sm:$0xff]  ;;  %v376_v46 = vld [vmem:[%s7452_s5 + $0x38] sm:$0xff]  ;;  %s4693_s14 = sld [smem:[#allocation2 + $0x1]]  ;;  %s4706_s5 = sld [smem:[#allocation2 + $0x2]] }
  0xa5   :  { %5594 = vmatpush3.bf16.msra.mxu0 %v5591_v8  ;;  %168 = vperm.xlu0 %5953, %v161_v11   ;;  %v6671_v48 = vpack.c.bf16 %v376_v46, %v375_v45  ;;  %v6696_v53 = vld [vmem:[#allocation8] ss:$0 sm:$0xff]  ;;  %s4719_s12 = sld [smem:[#allocation2 + $0x3]] }
  0xa6   :  { %5026 = vmatprep.subr.mxu0 %v178_v14 }
  0xa7   :  { %5600 = vmatpush3.bf16.msra.mxu1 %v6602_v13 }
  0xa8   :  { %5613 = vmatprep.subr.bf16.mxu1 %v6392_v3 }
  0xa9   :  { %5027 = vmatpush3.msra.mxu0 %v178_v14  ;;  %p2172_p13 = scmp.ne.s32.totalorder %s2171_s8, 0 }
  0xaa   :  { %5601 = vmatprep.subr.bf16.mxu0 %v6392_v3  ;;  %5040 = vmatmul.mubr.f32.vlgmr.msra.gmra.mrb[0].mxu1 %v6393_v12  ;;  %p2583_p0 = scmp.ne.s32.totalorder %s4693_s14, 0  ;;  %p2994_p1 = scmp.ne.s32.totalorder %s4706_s5, 0 }
  0xab   :  { %5615 = vmatpush3.bf16.msra.mxu1 %v6592_v7  ;;  %5069 = vmatprep.mubr.msk.f32.mxu1 %vm6394_vm0, %v6393_v12  ;;  %s2175_s20 = scalar_select %p2172_p13, 1, 0 }
  0xac   :  { %5616 = vmatprep.subr.bf16.mxu1 %v6392_v3  ;;  %s2586_s15 = scalar_select %p2583_p0, 1, 0 }
  0xad   :  { %s2997_s10 = scalar_select %p2994_p1, 1, 0 }
  0xae   :  { %p3405_p2 = scmp.ne.s32.totalorder %s4719_s12, 0 }
  0xaf   :  { %5618 = vmatpush3.bf16.msra.mxu1 %v6602_v13 }
  0xb0   :  { %5619 = vmatprep.subr.bf16.mxu1 %v6392_v3  ;;  %s3408_s26 = scalar_select %p3405_p2, 1, 0 }
 0x120   :  { %v166_v17 = vpop.permute.xlu0 %165 }
 0x121   :  { %vm170_vm2 = vcmp.eq.s32.totalorder %v6617_v16, %v166_v17 }
 0x122   :  { %v4638_v18 = vsel %vm170_vm2, 1.0, %v6393_v12 }
 0x123   :  { %5028 = vmatprep.mubr.msk.f32.mxu0 %vm179_vm1, %v4638_v18 }
 0x124   :  { %v169_v19 = vpop.permute.xlu0 %168 }
 0x125   :  { %vm171_vm3 = vcmp.eq.s32.totalorder %v6617_v16, %v169_v19 }
 0x126   :  { %v4639_v20 = vsel %vm171_vm3, 1.0, %v6393_v12 }
 0x127   :  { %5029 = vmatmul.mubr.msk.f32.vlgmr.msra.gmra.mrb[0].mxu0 %vm179_vm1, %v4639_v20 }
 0x128   :  { %5058 = vmatprep.mubr.msk.f32.mxu0 %vm6394_vm0, %v6393_v12  ;;  %5603 = vmatpush3.bf16.msra.mxu0 %v6644_v39 }
 0x129   :  { %5604 = vmatprep.subr.bf16.mxu0 %v6392_v3 }
 0x12c   :  { %5606 = vmatpush3.bf16.msra.mxu0 %v6650_v41 }
 0x12d   :  { %5607 = vmatprep.subr.bf16.mxu0 %v6392_v3 }
 0x130   :  { %5609 = vmatpush3.bf16.msra.mxu0 %v6660_v44 }
 0x131   :  { %5610 = vmatprep.subr.bf16.mxu0 %v6392_v3 }
 0x134   :  { %5612 = vmatpush3.bf16.msra.mxu0 %v6671_v48 }
 0x135   :  { %5631 = vmatprep.subr.bf16.mxu0 %v6392_v3 }
 0x17d   :  { %v335_v21 = vpop.f32.mrb[0].mxu1 }
 0x17e   :  { %v5041_v22 = vpop.f32.mrb[1].mxu1 }
 0x1fa   :  { %v6625_v23 = vpop.f32.mrb[0].mxu0 }
 0x1fb   :  { %v6627_v24 = vpop.f32.mrb[1].mxu0 }
 0x1fc   :  { %v339_v25 = vadd.f32 %v335_v21, %v6627_v24 }
 0x1fe   :  { %5954 = vtanh.f32 %v339_v25  ;;  %v4642_v27 = vmul.f32 -1.442695, %v339_v25 }
 0x200   :  { %5956 = vpow2.f32 %v4642_v27 }
 0x208   :  { %v5955_v26 = vpop.eup %5954 }
 0x209   :  { %349 = vrot.lane.b32.xlu1 %v5955_v26, %s6395_s0 }
 0x20a   :  { %v5957_v28 = vpop.eup %5956 }
 0x20b   :  { %v343_v29 = vadd.f32 1.0, %v5957_v28 }
 0x20d   :  { %5958 = vrcp.f32 %v343_v29 }
 0x217   :  { %v5959_v30 = vpop.eup %5958 }
 0x218   :  { %v347_v33 = vmul.f32 0.0, %v5959_v30 }
 0x27b   :  { %v350_v31 = vpop.permute.xlu1 %349 }
 0x27c   :  { %v352_v32 = vmul.f32 %v5959_v30, %v350_v31 }
 0x27e   :  { %354 = vrot.lane.b32.xlu1 %v352_v32, %s6396_s25 }
 0x2f0   :  { %v355_v34 = vpop.permute.xlu1 %354 }
 0x2f1   :  { %v6632_v35 = vadd.f32 %v355_v34, %v347_v33 }
 0x2f3   :  { %5960 = vtanh.f32 %v6632_v35  ;;  %v566_v15 = vrot.slane %v6632_v35, 6 }
 0x2fd   :  { %v5961_v47 = vpop.eup %5960 }
 0x2fe   :  { %360 = vrot.lane.b32.xlu0 %v5961_v47, %s6395_s0 }
 0x370   :  { %v361_v49 = vpop.permute.xlu0 %360 }
 0x371   :  { %v363_v50 = vmul.f32 %v5959_v30, %v361_v49 }
 0x373   :  { %365 = vrot.lane.b32.xlu1 %v363_v50, %s6396_s25 }
 0x3e5   :  { %v366_v51 = vpop.permute.xlu1 %365 }
 0x3e6   :  { %v368_v52 = vsel %vm265_vm4, %v366_v51, 0.0  ;;  %5070 = vmatmul.mubr.msk.f32.vlgmr.msra.gmra.mrb[2].mxu1 %vm265_vm4, %v366_v51 }
 0x3e7   :  { %5059 = vmatmul.mubr.msk.f32.vlgmr.msra.gmra.mrb[2].mxu0 %vm384_vm5, %v368_v52  ;;  %5621 = vmatpush3.bf16.msra.mxu1 %v6644_v39 }
 0x3e8   :  { %5622 = vmatprep.subr.bf16.mxu1 %v6392_v3  ;;  %5633 = vmatpush3.bf16.msra.mxu0 %v6592_v7 }
 0x3e9   :  { %5634 = vmatprep.subr.bf16.mxu0 %v6392_v3  ;;  %5088 = vmatprep.mubr.msk.f32.mxu1 %vm6394_vm0, %v6393_v12 }
 0x3ea   :  { %5099 = vmatprep.mubr.msk.f32.mxu0 %vm6394_vm0, %v6393_v12 }
 0x3eb   :  { %5624 = vmatpush3.bf16.msra.mxu1 %v6650_v41 }
 0x3ec   :  { %5625 = vmatprep.subr.bf16.mxu1 %v6392_v3  ;;  %5636 = vmatpush3.bf16.msra.mxu0 %v6602_v13 }
 0x3ed   :  { %5637 = vmatprep.subr.bf16.mxu0 %v6392_v3 }
 0x3ef   :  { %5627 = vmatpush3.bf16.msra.mxu1 %v6660_v44 }
 0x3f0   :  { %5628 = vmatprep.subr.bf16.mxu1 %v6392_v3 }
 0x3f3   :  { %5630 = vmatpush3.bf16.msra.mxu1 %v6671_v48 }
 0x3f4   :  { %5649 = vmatprep.subr.bf16.mxu1 %v6392_v3 }
 0x4b9   :  { %v550_v54 = vpop.f32.mrb[2].mxu1 }
 0x4ba   :  { %v555_v55 = vrot.slane %v550_v54, 6  ;;  %v454_v56 = vpop.f32.mrb[2].mxu0  ;;  %v5071_v57 = vpop.f32.mrb[3].mxu1 }
 0x4bb   :  { %v455_v58 = vadd.f32 %v6696_v53, %v454_v56  ;;  %v5060_v59 = vpop.f32.mrb[3].mxu0 }
 0x4bc   :  { %v557_v60 = vadd.f32 %v555_v55, %v6627_v24 }
 0x4bd   :  { %5962 = vtanh.f32 %v455_v58  ;;  %v4645_v63 = vmul.f32 -1.442695, %v455_v58 }
 0x4be   :  { %5964 = vtanh.f32 %v557_v60  ;;  %v4647_v0 = vmul.f32 -1.442695, %v557_v60 }
 0x4bf   :  { %5966 = vpow2.f32 %v4645_v63 }
 0x4c0   :  { %5968 = vpow2.f32 %v4647_v0 }
 0x4c7   :  { %v5963_v61 = vpop.eup %5962 }
 0x4c8   :  { %v5965_v62 = vpop.eup %5964  ;;  %467 = vrot.lane.b32.xlu0 %v5963_v61, %s6395_s0 }
 0x4c9   :  { %570 = vrot.lane.b32.xlu1 %v5965_v62, %s6395_s0  ;;  %v5967_v1 = vpop.eup %5966 }
 0x4ca   :  { %v5969_v2 = vpop.eup %5968  ;;  %v461_v4 = vadd.f32 1.0, %v5967_v1 }
 0x4cb   :  { %v561_v5 = vadd.f32 1.0, %v5969_v2 }
 0x4cc   :  { %5970 = vrcp.f32 %v461_v4 }
 0x4cd   :  { %5972 = vrcp.f32 %v561_v5 }
 0x4d6   :  { %v5971_v6 = vpop.eup %5970 }
 0x4d7   :  { %v5973_v9 = vpop.eup %5972  ;;  %v465_v17 = vmul.f32 0.0, %v5971_v6 }
 0x4d8   :  { %v568_v19 = vmul.f32 %v5973_v9, %v566_v15 }
 0x53a   :  { %v468_v8 = vpop.permute.xlu0 %467 }
 0x53b   :  { %v470_v10 = vmul.f32 %v5971_v6, %v468_v8  ;;  %v571_v11 = vpop.permute.xlu1 %570 }
 0x53c   :  { %v573_v14 = vmul.f32 %v5973_v9, %v571_v11 }
 0x53d   :  { %472 = vrot.lane.b32.xlu0 %v470_v10, %s6396_s25 }
 0x53e   :  { %575 = vrot.lane.b32.xlu1 %v573_v14, %s6396_s25 }
 0x5af   :  { %v473_v18 = vpop.permute.xlu0 %472 }
 0x5b0   :  { %v6705_v20 = vadd.f32 %v473_v18, %v465_v17  ;;  %v576_v21 = vpop.permute.xlu1 %575 }
 0x5b1   :  { %v6707_v22 = vadd.f32 %v576_v21, %v568_v19 }
 0x5b2   :  { %5974 = vtanh.f32 %v6705_v20 }
 0x5b3   :  { %5976 = vtanh.f32 %v6707_v22  ;;  %v780_v1 = vrot.slane %v6707_v22, 6 }
 0x5bc   :  { %v5975_v25 = vpop.eup %5974 }
 0x5bd   :  { %v5977_v26 = vpop.eup %5976  ;;  %478 = vrot.lane.b32.xlu0 %v5975_v25, %s6395_s0 }
 0x5be   :  { %581 = vrot.lane.b32.xlu1 %v5977_v26, %s6395_s0 }
 0x62f   :  { %v479_v27 = vpop.permute.xlu0 %478 }
 0x630   :  { %v481_v28 = vmul.f32 %v5971_v6, %v479_v27  ;;  %v582_v29 = vpop.permute.xlu1 %581 }
 0x631   :  { %v584_v30 = vmul.f32 %v5973_v9, %v582_v29 }
 0x632   :  { %v590_v31 = vrot.slane %v481_v28, 6 }
 0x633   :  { %586 = vrot.lane.b32.xlu0 %v584_v30, %s6396_s25  ;;  %v693_v32 = vrot.slane %v584_v30, 2 }
 0x634   :  { %591 = vrot.lane.b32.xlu1 %v590_v31, %s6395_s0 }
 0x637   :  { %694 = vrot.lane.b32.xlu0 %v693_v32, %s6396_s25 }
 0x6a5   :  { %v587_v33 = vpop.permute.xlu0 %586 }
 0x6a6   :  { %v592_v34 = vpop.permute.xlu1 %591 }
 0x6a7   :  { %v594_v35 = vsel %vm265_vm4, %v587_v33, %v592_v34 }
 0x6a8   :  { %v596_v36 = vrot.slane %v594_v35, 2 }
 0x6a9   :  { %v695_v37 = vpop.permute.xlu0 %694 }
 0x6aa   :  { %5089 = vmatmul.mubr.msk.f32.vlgmr.msra.gmra.mrb[4].mxu1 %vm384_vm5, %v596_v36  ;;  %5100 = vmatmul.mubr.msk.f32.vlgmr.msra.gmra.mrb[4].mxu0 %vm265_vm4, %v695_v37 }
 0x6ab   :  { %5639 = vmatpush3.bf16.msra.mxu0 %v6644_v39  ;;  %5651 = vmatpush3.bf16.msra.mxu1 %v6592_v7 }
 0x6ac   :  { %5640 = vmatprep.subr.bf16.mxu0 %v6392_v3  ;;  %5652 = vmatprep.subr.bf16.mxu1 %v6392_v3 }
 0x6ad   :  { %5118 = vmatprep.mubr.msk.f32.mxu0 %vm6394_vm0, %v6393_v12  ;;  %5129 = vmatprep.mubr.msk.f32.mxu1 %vm6394_vm0, %v6393_v12 }
 0x6af   :  { %5642 = vmatpush3.bf16.msra.mxu0 %v6650_v41  ;;  %5654 = vmatpush3.bf16.msra.mxu1 %v6602_v13 }
 0x6b0   :  { %5643 = vmatprep.subr.bf16.mxu0 %v6392_v3  ;;  %5655 = vmatprep.subr.bf16.mxu1 %v6392_v3 }
 0x6b3   :  { %5645 = vmatpush3.bf16.msra.mxu0 %v6660_v44 }
 0x6b4   :  { %5646 = vmatprep.subr.bf16.mxu0 %v6392_v3 }
 0x6b7   :  { %5648 = vmatpush3.bf16.msra.mxu0 %v6671_v48 }
 0x6b8   :  { %5667 = vmatprep.subr.bf16.mxu0 %v6392_v3 }
 0x77d   :  { %v665_v38 = vpop.f32.mrb[4].mxu1  ;;  %v764_v40 = vpop.f32.mrb[4].mxu0 }
 0x77e   :  { %v666_v42 = vadd.f32 %v6696_v53, %v665_v38  ;;  %v769_v43 = vrot.slane %v764_v40, 4  ;;  %v5090_v45 = vpop.f32.mrb[5].mxu1  ;;  %v5101_v46 = vpop.f32.mrb[5].mxu0 }
 0x780   :  { %5978 = vtanh.f32 %v666_v42  ;;  %v771_v47 = vadd.f32 %v769_v43, %v6627_v24  ;;  %v4649_v51 = vmul.f32 -1.442695, %v666_v42 }
 0x782   :  { %5980 = vtanh.f32 %v771_v47  ;;  %v4651_v52 = vmul.f32 -1.442695, %v771_v47 }
 0x783   :  { %5982 = vpow2.f32 %v4649_v51 }
 0x784   :  { %5984 = vpow2.f32 %v4651_v52 }
 0x78a   :  { %v5979_v49 = vpop.eup %5978 }
 0x78b   :  { %678 = vrot.lane.b32.xlu1 %v5979_v49, %s6395_s0 }
 0x78c   :  { %v5981_v50 = vpop.eup %5980 }
 0x78d   :  { %784 = vrot.lane.b32.xlu0 %v5981_v50, %s6395_s0  ;;  %v5983_v54 = vpop.eup %5982 }
 0x78e   :  { %v5985_v55 = vpop.eup %5984  ;;  %v672_v56 = vadd.f32 1.0, %v5983_v54 }
 0x78f   :  { %v775_v57 = vadd.f32 1.0, %v5985_v55 }
 0x790   :  { %5986 = vrcp.f32 %v672_v56 }
 0x791   :  { %5988 = vrcp.f32 %v775_v57 }
 0x79a   :  { %v5987_v58 = vpop.eup %5986 }
 0x79b   :  { %v5989_v61 = vpop.eup %5988  ;;  %v676_v0 = vmul.f32 %v5987_v58, %v6705_v20 }
 0x79c   :  { %v782_v5 = vmul.f32 %v5989_v61, %v780_v1 }
 0x7fd   :  { %v679_v59 = vpop.permute.xlu1 %678 }
 0x7fe   :  { %v681_v60 = vmul.f32 %v5987_v58, %v679_v59 }
 0x7ff   :  { %v785_v62 = vpop.permute.xlu0 %784 }
 0x800   :  { %683 = vrot.lane.b32.xlu1 %v681_v60, %s6396_s25  ;;  %v787_v63 = vmul.f32 %v5989_v61, %v785_v62 }
 0x802   :  { %789 = vrot.lane.b32.xlu0 %v787_v63, %s6396_s25 }
 0x872   :  { %v684_v2 = vpop.permute.xlu1 %683 }
 0x873   :  { %v6743_v4 = vadd.f32 %v684_v2, %v676_v0 }
 0x874   :  { %v790_v6 = vpop.permute.xlu0 %789 }
 0x875   :  { %5990 = vtanh.f32 %v6743_v4  ;;  %v6746_v8 = vadd.f32 %v790_v6, %v782_v5 }
 0x877   :  { %5992 = vtanh.f32 %v6746_v8  ;;  %v994_v52 = vrot.slane %v6746_v8, 6 }
 0x87f   :  { %v5991_v9 = vpop.eup %5990 }
 0x880   :  { %689 = vrot.lane.b32.xlu1 %v5991_v9, %s6395_s0 }
 0x881   :  { %v5993_v10 = vpop.eup %5992 }
 0x882   :  { %795 = vrot.lane.b32.xlu0 %v5993_v10, %s6395_s0 }
 0x8f2   :  { %v690_v11 = vpop.permute.xlu1 %689 }
 0x8f3   :  { %v692_v14 = vmul.f32 %v5987_v58, %v690_v11 }
 0x8f4   :  { %v796_v17 = vpop.permute.xlu0 %795 }
 0x8f5   :  { %v804_v15 = vrot.slane %v692_v14, 4  ;;  %v798_v18 = vmul.f32 %v5989_v61, %v796_v17 }
 0x8f7   :  { %805 = vrot.lane.b32.xlu0 %v804_v15, %s6395_s0  ;;  %800 = vrot.lane.b32.xlu1 %v798_v18, %s6396_s25  ;;  %v907_v19 = vrot.slane %v798_v18, 4 }
 0x8fb   :  { %908 = vrot.lane.b32.xlu1 %v907_v19, %s6396_s25 }
 0x969   :  { %v806_v20 = vpop.permute.xlu0 %805  ;;  %v801_v21 = vpop.permute.xlu1 %800 }
 0x96a   :  { %v808_v22 = vsel %vm265_vm4, %v801_v21, %v806_v20 }
 0x96b   :  { %v810_v25 = vrot.slane %v808_v22, 4 }
 0x96d   :  { %v909_v26 = vpop.permute.xlu1 %908  ;;  %5119 = vmatmul.mubr.msk.f32.vlgmr.msra.gmra.mrb[6].mxu0 %vm384_vm5, %v810_v25 }
 0x96e   :  { %5130 = vmatmul.mubr.msk.f32.vlgmr.msra.gmra.mrb[6].mxu1 %vm265_vm4, %v909_v26  ;;  %5669 = vmatpush3.bf16.msra.mxu0 %v6592_v7 }
 0x96f   :  { %5657 = vmatpush3.bf16.msra.mxu1 %v6644_v39  ;;  %5670 = vmatprep.subr.bf16.mxu0 %v6392_v3 }
 0x970   :  { %5658 = vmatprep.subr.bf16.mxu1 %v6392_v3  ;;  %5148 = vmatprep.mubr.msk.f32.mxu1 %vm6394_vm0, %v6393_v12 }
 0x971   :  { %5159 = vmatprep.mubr.msk.f32.mxu0 %vm6394_vm0, %v6393_v12 }
 0x972   :  { %5672 = vmatpush3.bf16.msra.mxu0 %v6602_v13 }
 0x973   :  { %5660 = vmatpush3.bf16.msra.mxu1 %v6650_v41  ;;  %5673 = vmatprep.subr.bf16.mxu0 %v6392_v3 }
 0x974   :  { %5661 = vmatprep.subr.bf16.mxu1 %v6392_v3 }
 0x977   :  { %5663 = vmatpush3.bf16.msra.mxu1 %v6660_v44 }
 0x978   :  { %5664 = vmatprep.subr.bf16.mxu1 %v6392_v3 }
 0x97b   :  { %5666 = vmatpush3.bf16.msra.mxu1 %v6671_v48 }
 0x97c   :  { %5685 = vmatprep.subr.bf16.mxu1 %v6392_v3 }
 0xa40   :  { %v879_v27 = vpop.f32.mrb[6].mxu0 }
 0xa41   :  { %v880_v28 = vadd.f32 %v6696_v53, %v879_v27  ;;  %v5120_v29 = vpop.f32.mrb[7].mxu0  ;;  %v978_v30 = vpop.f32.mrb[6].mxu1 }
 0xa42   :  { %v983_v31 = vrot.slane %v978_v30, 2  ;;  %v5131_v32 = vpop.f32.mrb[7].mxu1 }
 0xa43   :  { %5994 = vtanh.f32 %v880_v28  ;;  %v4653_v36 = vmul.f32 -1.442695, %v880_v28 }
 0xa44   :  { %v985_v33 = vadd.f32 %v983_v31, %v6627_v24 }
 0xa46   :  { %5996 = vtanh.f32 %v985_v33  ;;  %v4655_v37 = vmul.f32 -1.442695, %v985_v33 }
 0xa47   :  { %5998 = vpow2.f32 %v4653_v36 }
 0xa48   :  { %6000 = vpow2.f32 %v4655_v37 }
 0xa4d   :  { %v5995_v34 = vpop.eup %5994 }
 0xa4e   :  { %892 = vrot.lane.b32.xlu0 %v5995_v34, %s6395_s0 }
 0xa50   :  { %v5997_v35 = vpop.eup %5996 }
 0xa51   :  { %998 = vrot.lane.b32.xlu1 %v5997_v35, %s6395_s0  ;;  %v5999_v38 = vpop.eup %5998 }
 0xa52   :  { %v6001_v40 = vpop.eup %6000  ;;  %v886_v42 = vadd.f32 1.0, %v5999_v38 }
 0xa53   :  { %v989_v43 = vadd.f32 1.0, %v6001_v40 }
 0xa54   :  { %6002 = vrcp.f32 %v886_v42 }
 0xa55   :  { %6004 = vrcp.f32 %v989_v43 }
 0xa5e   :  { %v6003_v45 = vpop.eup %6002 }
 0xa5f   :  { %v6005_v47 = vpop.eup %6004  ;;  %v890_v51 = vmul.f32 %v6003_v45, %v6743_v4 }
 0xa60   :  { %v996_v56 = vmul.f32 %v6005_v47, %v994_v52 }
 0xac0   :  { %v893_v46 = vpop.permute.xlu0 %892 }
 0xac1   :  { %v895_v24 = vmul.f32 %v6003_v45, %v893_v46 }
 0xac3   :  { %v999_v49 = vpop.permute.xlu1 %998  ;;  %897 = vrot.lane.b32.xlu0 %v895_v24, %s6396_s25 }
 0xac4   :  { %v1001_v50 = vmul.f32 %v6005_v47, %v999_v49 }
 0xac6   :  { %1003 = vrot.lane.b32.xlu1 %v1001_v50, %s6396_s25 }
 0xb35   :  { %v898_v54 = vpop.permute.xlu0 %897 }
 0xb36   :  { %v6781_v55 = vadd.f32 %v898_v54, %v890_v51 }
 0xb38   :  { %6006 = vtanh.f32 %v6781_v55  ;;  %v1004_v57 = vpop.permute.xlu1 %1003 }
 0xb39   :  { %v6784_v58 = vadd.f32 %v1004_v57, %v996_v56 }
 0xb3b   :  { %6008 = vtanh.f32 %v6784_v58  ;;  %v1205_v35 = vrot.slane %v6784_v58, 6 }
 0xb42   :  { %v6007_v59 = vpop.eup %6006 }
 0xb43   :  { %903 = vrot.lane.b32.xlu0 %v6007_v59, %s6395_s0 }
 0xb45   :  { %v6009_v60 = vpop.eup %6008 }
 0xb46   :  { %1009 = vrot.lane.b32.xlu1 %v6009_v60, %s6395_s0 }
 0xbb5   :  { %v904_v61 = vpop.permute.xlu0 %903 }
 0xbb6   :  { %v906_v62 = vmul.f32 %v6003_v45, %v904_v61 }
 0xbb8   :  { %v1018_v63 = vrot.slane %v906_v62, 2  ;;  %v1010_v0 = vpop.permute.xlu1 %1009 }
 0xbb9   :  { %v1012_v1 = vmul.f32 %v6005_v47, %v1010_v0 }
 0xbba   :  { %1019 = vrot.lane.b32.xlu1 %v1018_v63, %s6395_s0 }
 0xbbb   :  { %1014 = vrot.lane.b32.xlu0 %v1012_v1, %s6396_s25  ;;  %v1121_v2 = vrot.slane %v1012_v1, 6 }
 0xbbf   :  { %1122 = vrot.lane.b32.xlu0 %v1121_v2, %s6396_s25 }
 0xc2c   :  { %v1020_v4 = vpop.permute.xlu1 %1019 }
 0xc2d   :  { %v1015_v5 = vpop.permute.xlu0 %1014 }
 0xc2e   :  { %v1022_v6 = vsel %vm265_vm4, %v1015_v5, %v1020_v4 }
 0xc2f   :  { %v1024_v8 = vrot.slane %v1022_v6, 6 }
 0xc31   :  { %5149 = vmatmul.mubr.msk.f32.vlgmr.msra.gmra.mrb[8].mxu1 %vm384_vm5, %v1024_v8  ;;  %v1123_v9 = vpop.permute.xlu0 %1122 }
 0xc32   :  { %5160 = vmatmul.mubr.msk.f32.vlgmr.msra.gmra.mrb[8].mxu0 %vm265_vm4, %v1123_v9  ;;  %5687 = vmatpush3.bf16.msra.mxu1 %v6592_v7 }
 0xc33   :  { %5675 = vmatpush3.bf16.msra.mxu0 %v6644_v39  ;;  %5688 = vmatprep.subr.bf16.mxu1 %v6392_v3 }
 0xc34   :  { %5676 = vmatprep.subr.bf16.mxu0 %v6392_v3  ;;  %5189 = vmatprep.mubr.msk.f32.mxu1 %vm6394_vm0, %v6393_v12 }
 0xc35   :  { %5178 = vmatprep.mubr.msk.f32.mxu0 %vm6394_vm0, %v6393_v12 }
 0xc36   :  { %5690 = vmatpush3.bf16.msra.mxu1 %v6602_v13 }
 0xc37   :  { %5678 = vmatpush3.bf16.msra.mxu0 %v6650_v41  ;;  %5691 = vmatprep.subr.bf16.mxu1 %v6392_v3 }
 0xc38   :  { %5679 = vmatprep.subr.bf16.mxu0 %v6392_v3 }
 0xc3b   :  { %5681 = vmatpush3.bf16.msra.mxu0 %v6660_v44 }
 0xc3c   :  { %5682 = vmatprep.subr.bf16.mxu0 %v6392_v3 }
 0xc3f   :  { %5684 = vmatpush3.bf16.msra.mxu0 %v6671_v48 }
 0xc40   :  { %5703 = vmatprep.subr.bf16.mxu0 %v6392_v3 }
 0xd04   :  { %v1093_v10 = vpop.f32.mrb[8].mxu1 }
 0xd05   :  { %v1094_v11 = vadd.f32 %v6696_v53, %v1093_v10  ;;  %v5150_v14 = vpop.f32.mrb[9].mxu1  ;;  %v1192_v15 = vpop.f32.mrb[8].mxu0 }
 0xd06   :  { %v1196_v17 = vadd.f32 %v6625_v23, %v1192_v15  ;;  %v5161_v18 = vpop.f32.mrb[9].mxu0 }
 0xd07   :  { %6010 = vtanh.f32 %v1094_v11  ;;  %v4657_v21 = vmul.f32 -1.442695, %v1094_v11 }
 0xd08   :  { %6012 = vtanh.f32 %v1196_v17  ;;  %v4659_v22 = vmul.f32 -1.442695, %v1196_v17 }
 0xd09   :  { %6014 = vpow2.f32 %v4657_v21 }
 0xd0a   :  { %6016 = vpow2.f32 %v4659_v22 }
 0xd11   :  { %v6011_v19 = vpop.eup %6010 }
 0xd12   :  { %v6013_v20 = vpop.eup %6012  ;;  %1106 = vrot.lane.b32.xlu0 %v6011_v19, %s6395_s0 }
 0xd13   :  { %1209 = vrot.lane.b32.xlu1 %v6013_v20, %s6395_s0  ;;  %v6015_v25 = vpop.eup %6014 }
 0xd14   :  { %v6017_v26 = vpop.eup %6016  ;;  %v1100_v27 = vadd.f32 1.0, %v6015_v25 }
 0xd15   :  { %v1200_v28 = vadd.f32 1.0, %v6017_v26 }
 0xd16   :  { %6018 = vrcp.f32 %v1100_v27 }
 0xd17   :  { %6020 = vrcp.f32 %v1200_v28 }
 0xd20   :  { %v6019_v29 = vpop.eup %6018 }
 0xd21   :  { %v6021_v31 = vpop.eup %6020  ;;  %v1104_v36 = vmul.f32 %v6019_v29, %v6781_v55 }
 0xd22   :  { %v1207_v38 = vmul.f32 %v6021_v31, %v1205_v35 }
 0xd84   :  { %v1107_v30 = vpop.permute.xlu0 %1106 }
 0xd85   :  { %v1109_v32 = vmul.f32 %v6019_v29, %v1107_v30  ;;  %v1210_v33 = vpop.permute.xlu1 %1209 }
 0xd86   :  { %v1212_v34 = vmul.f32 %v6021_v31, %v1210_v33 }
 0xd87   :  { %1111 = vrot.lane.b32.xlu0 %v1109_v32, %s6396_s25 }
 0xd88   :  { %1214 = vrot.lane.b32.xlu1 %v1212_v34, %s6396_s25 }
 0xdf9   :  { %v1112_v37 = vpop.permute.xlu0 %1111 }
 0xdfa   :  { %v6819_v40 = vadd.f32 %v1112_v37, %v1104_v36  ;;  %v1215_v42 = vpop.permute.xlu1 %1214 }
 0xdfb   :  { %v6821_v43 = vadd.f32 %v1215_v42, %v1207_v38 }
 0xdfc   :  { %6022 = vtanh.f32 %v6819_v40 }
 0xdfd   :  { %6024 = vtanh.f32 %v6821_v43  ;;  %v1414_v14 = vrot.slane %v6821_v43, 6 }
 0xe06   :  { %v6023_v45 = vpop.eup %6022 }
 0xe07   :  { %v6025_v46 = vpop.eup %6024  ;;  %1117 = vrot.lane.b32.xlu0 %v6023_v45, %s6395_s0 }
 0xe08   :  { %1220 = vrot.lane.b32.xlu1 %v6025_v46, %s6395_s0 }
 0xe79   :  { %v1118_v24 = vpop.permute.xlu0 %1117 }
 0xe7a   :  { %v1120_v47 = vmul.f32 %v6019_v29, %v1118_v24  ;;  %v1221_v49 = vpop.permute.xlu1 %1220 }
 0xe7b   :  { %v1223_v50 = vmul.f32 %v6021_v31, %v1221_v49 }
 0xe7c   :  { %1229 = vrot.lane.b32.xlu0 %v1120_v47, %s6395_s0 }
 0xe7d   :  { %1225 = vrot.lane.b32.xlu1 %v1223_v50, %s6396_s25 }
 0xeee   :  { %v1230_v51 = vpop.permute.xlu0 %1229 }
 0xeef   :  { %v1226_v52 = vpop.permute.xlu1 %1225 }
 0xef0   :  { %v1232_v54 = vsel %vm265_vm4, %v1226_v52, %v1230_v51  ;;  %5190 = vmatmul.mubr.msk.f32.vlgmr.msra.gmra.mrb[10].mxu1 %vm265_vm4, %v1226_v52 }
 0xef1   :  { %5179 = vmatmul.mubr.msk.f32.vlgmr.msra.gmra.mrb[10].mxu0 %vm384_vm5, %v1232_v54  ;;  %5693 = vmatpush3.bf16.msra.mxu1 %v6644_v39 }
 0xef2   :  { %5705 = vmatpush3.bf16.msra.mxu0 %v6592_v7  ;;  %5694 = vmatprep.subr.bf16.mxu1 %v6392_v3 }
 0xef3   :  { %5706 = vmatprep.subr.bf16.mxu0 %v6392_v3  ;;  %5219 = vmatprep.mubr.msk.f32.mxu0 %vm6394_vm0, %v6393_v12 }
 0xef4   :  { %5208 = vmatprep.mubr.msk.f32.mxu1 %vm6394_vm0, %v6393_v12 }
 0xef5   :  { %5696 = vmatpush3.bf16.msra.mxu1 %v6650_v41 }
 0xef6   :  { %5708 = vmatpush3.bf16.msra.mxu0 %v6602_v13  ;;  %5697 = vmatprep.subr.bf16.mxu1 %v6392_v3 }
 0xef7   :  { %5709 = vmatprep.subr.bf16.mxu0 %v6392_v3 }
 0xef9   :  { %5699 = vmatpush3.bf16.msra.mxu1 %v6660_v44 }
 0xefa   :  { %5700 = vmatprep.subr.bf16.mxu1 %v6392_v3 }
 0xefd   :  { %5702 = vmatpush3.bf16.msra.mxu1 %v6671_v48 }
 0xefe   :  { %5721 = vmatprep.subr.bf16.mxu1 %v6392_v3 }
 0xfc3   :  { %v1398_v7 = vpop.f32.mrb[10].mxu1 }
 0xfc4   :  { %v1403_v55 = vrot.slane %v1398_v7, 6  ;;  %v1302_v56 = vpop.f32.mrb[10].mxu0  ;;  %v5191_v57 = vpop.f32.mrb[11].mxu1 }
 0xfc5   :  { %v1303_v58 = vadd.f32 %v6696_v53, %v1302_v56  ;;  %v5180_v59 = vpop.f32.mrb[11].mxu0 }
 0xfc6   :  { %v1405_v13 = vadd.f32 %v6625_v23, %v1403_v55 }
 0xfc7   :  { %6026 = vtanh.f32 %v1303_v58  ;;  %v4661_v62 = vmul.f32 -1.442695, %v1303_v58 }
 0xfc8   :  { %6028 = vtanh.f32 %v1405_v13  ;;  %v4663_v63 = vmul.f32 -1.442695, %v1405_v13 }
 0xfc9   :  { %6030 = vpow2.f32 %v4661_v62  ;;  %v1757_v62 = vld [vmem:[%s7448_s1] sm:$0x3] }
 0xfca   :  { %6032 = vpow2.f32 %v4663_v63 }
 0xfd1   :  { %v6027_v60 = vpop.eup %6026 }
 0xfd2   :  { %v6029_v61 = vpop.eup %6028  ;;  %1315 = vrot.lane.b32.xlu0 %v6027_v60, %s6395_s0 }
 0xfd3   :  { %1418 = vrot.lane.b32.xlu1 %v6029_v61, %s6395_s0  ;;  %v6031_v0 = vpop.eup %6030 }
 0xfd4   :  { %v6033_v1 = vpop.eup %6032  ;;  %v1309_v2 = vadd.f32 1.0, %v6031_v0  ;;  %v1767_v0 = vld [vmem:[#allocation11] sm:$0xff] }
 0xfd5   :  { %v1409_v4 = vadd.f32 1.0, %v6033_v1  ;;  %v1768_v1 = vld [vmem:[#allocation11 + $0x8] sm:$0xff] }
 0xfd6   :  { %6034 = vrcp.f32 %v1309_v2  ;;  %v1769_v2 = vld [vmem:[#allocation11 + $0x10] sm:$0xff] }
 0xfd7   :  { %6036 = vrcp.f32 %v1409_v4  ;;  %v6901_v4 = vpack.c.bf16 %v1768_v1, %v1767_v0  ;;  %v1967_v0 = vld [vmem:[#allocation12 + $0x38] sm:$0xff] }
 0xfe0   :  { %v6035_v5 = vpop.eup %6034 }
 0xfe1   :  { %v6037_v8 = vpop.eup %6036  ;;  %v1313_v15 = vmul.f32 %v6035_v5, %v6819_v40 }
 0xfe2   :  { %v1416_v18 = vmul.f32 %v6037_v8, %v1414_v14 }
0x1044   :  { %v1316_v6 = vpop.permute.xlu0 %1315 }
0x1045   :  { %v1318_v9 = vmul.f32 %v6035_v5, %v1316_v6  ;;  %v1419_v10 = vpop.permute.xlu1 %1418 }
0x1046   :  { %v1421_v11 = vmul.f32 %v6037_v8, %v1419_v10 }
0x1047   :  { %1320 = vrot.lane.b32.xlu0 %v1318_v9, %s6396_s25 }
0x1048   :  { %1423 = vrot.lane.b32.xlu1 %v1421_v11, %s6396_s25 }
0x10b9   :  { %v1321_v17 = vpop.permute.xlu0 %1320 }
0x10ba   :  { %v6856_v19 = vadd.f32 %v1321_v17, %v1313_v15  ;;  %v1424_v20 = vpop.permute.xlu1 %1423  ;;  %v1764_v17 = vld [vmem:[#allocation9] sm:$0xff] }
0x10bb   :  { %v6858_v21 = vadd.f32 %v1424_v20, %v1416_v18  ;;  %v1765_v18 = vld [vmem:[#allocation9 + $0x8] sm:$0xff] }
0x10bc   :  { %6038 = vtanh.f32 %v6856_v19 }
0x10bd   :  { %6040 = vtanh.f32 %v6858_v21  ;;  %v1628_v55 = vrot.slane %v6858_v21, 6 }
0x10c6   :  { %v6039_v22 = vpop.eup %6038 }
0x10c7   :  { %v6041_v25 = vpop.eup %6040  ;;  %1326 = vrot.lane.b32.xlu0 %v6039_v22, %s6395_s0  ;;  %v6919_v22 = vld [vmem:[%s7460_s13] sm:$0xff] }
0x10c8   :  { %1429 = vrot.lane.b32.xlu1 %v6041_v25, %s6395_s0  ;;  %v1766_v25 = vld [vmem:[#allocation9 + $0x10] sm:$0xf] }
0x1139   :  { %v1327_v26 = vpop.permute.xlu0 %1326 }
0x113a   :  { %v1430_v27 = vpop.permute.xlu1 %1429  ;;  %v1329_v29 = vmul.f32 %v6035_v5, %v1327_v26  ;;  %v1770_v5 = vld [vmem:[#allocation11 + $0x18] sm:$0xff] }
0x113b   :  { %v1432_v28 = vmul.f32 %v6037_v8, %v1430_v27  ;;  %v6904_v6 = vpack.c.bf16 %v1770_v5, %v1769_v2 }
0x113c   :  { %v1438_v31 = vrot.slane %v1329_v29, 6 }
0x113d   :  { %v1541_v30 = vrot.slane %v1432_v28, 2  ;;  %1434 = vrot.lane.b32.xlu0 %v1432_v28, %s6396_s25 }
0x113f   :  { %1542 = vrot.lane.b32.xlu1 %v1541_v30, %s6396_s25 }
0x1143   :  { %1439 = vrot.lane.b32.xlu1 %v1438_v31, %s6395_s0 }
0x11af   :  { %v1435_v33 = vpop.permute.xlu0 %1434 }
0x11b1   :  { %v1543_v32 = vpop.permute.xlu1 %1542 }
0x11b2   :  { %5220 = vmatmul.mubr.msk.f32.vlgmr.msra.gmra.mrb[12].mxu0 %vm265_vm4, %v1543_v32 }
0x11b3   :  { %5711 = vmatpush3.bf16.msra.mxu0 %v6644_v39  ;;  %5238 = vmatprep.mubr.msk.f32.mxu0 %vm6394_vm0, %v6393_v12 }
0x11b4   :  { %5712 = vmatprep.subr.bf16.mxu0 %v6392_v3 }
0x11b5   :  { %v1440_v34 = vpop.permute.xlu1 %1439 }
0x11b6   :  { %v1442_v35 = vsel %vm265_vm4, %v1435_v33, %v1440_v34 }
0x11b7   :  { %v1444_v36 = vrot.slane %v1442_v35, 2  ;;  %5714 = vmatpush3.bf16.msra.mxu0 %v6650_v41 }
0x11b8   :  { %5715 = vmatprep.subr.bf16.mxu0 %v6392_v3 }
0x11b9   :  { %5209 = vmatmul.mubr.msk.f32.vlgmr.msra.gmra.mrb[12].mxu1 %vm384_vm5, %v1444_v36 }
0x11ba   :  { %5249 = vmatprep.mubr.msk.f32.mxu1 %vm6394_vm0, %v6393_v12  ;;  %5723 = vmatpush3.bf16.msra.mxu1 %v6901_v4 }
0x11bb   :  { %5717 = vmatpush3.bf16.msra.mxu0 %v6660_v44  ;;  %5724 = vmatprep.subr.bf16.mxu1 %v6392_v3 }
0x11bc   :  { %5718 = vmatprep.subr.bf16.mxu0 %v6392_v3 }
0x11be   :  { %5726 = vmatpush3.bf16.msra.mxu1 %v6904_v6 }
0x11bf   :  { %5720 = vmatpush3.bf16.msra.mxu0 %v6671_v48  ;;  %5727 = vmatprep.subr.bf16.mxu1 %v6392_v3 }
0x11c0   :  { %5730 = vmatprep.subr.bf16.mxu0 %v6392_v3 }
0x1285   :  { %v1612_v39 = vpop.f32.mrb[12].mxu0 }
0x1286   :  { %v1617_v37 = vrot.slane %v1612_v39, 4  ;;  %v5221_v38 = vpop.f32.mrb[13].mxu0 }
0x1288   :  { %v1619_v41 = vadd.f32 %v6625_v23, %v1617_v37 }
0x128a   :  { %6042 = vtanh.f32 %v1619_v41  ;;  %v4667_v48 = vmul.f32 -1.442695, %v1619_v41 }
0x128c   :  { %v1513_v40 = vpop.f32.mrb[12].mxu1 }
0x128d   :  { %v1514_v42 = vadd.f32 %v6696_v53, %v1513_v40  ;;  %v5210_v43 = vpop.f32.mrb[13].mxu1 }
0x128f   :  { %6044 = vtanh.f32 %v1514_v42  ;;  %v4665_v45 = vmul.f32 -1.442695, %v1514_v42 }
0x1290   :  { %6046 = vpow2.f32 %v4667_v48 }
0x1291   :  { %6048 = vpow2.f32 %v4665_v45 }
0x1294   :  { %v6043_v12 = vpop.eup %6042 }
0x1295   :  { %1632 = vrot.lane.b32.xlu0 %v6043_v12, %s6395_s0 }
0x1299   :  { %v6045_v44 = vpop.eup %6044 }
0x129a   :  { %1526 = vrot.lane.b32.xlu1 %v6045_v44, %s6395_s0  ;;  %v6047_v46 = vpop.eup %6046 }
0x129b   :  { %v1623_v24 = vadd.f32 1.0, %v6047_v46  ;;  %v6049_v47 = vpop.eup %6048 }
0x129c   :  { %v1520_v23 = vadd.f32 1.0, %v6049_v47 }
0x129d   :  { %6050 = vrcp.f32 %v1623_v24 }
0x129e   :  { %6052 = vrcp.f32 %v1520_v23 }
0x12a7   :  { %v6051_v49 = vpop.eup %6050 }
0x12a8   :  { %v6053_v52 = vpop.eup %6052  ;;  %v1630_v56 = vmul.f32 %v6051_v49, %v1628_v55  ;;  %v1962_v55 = vld [vmem:[#allocation12 + $0x10] sm:$0xff] }
0x12a9   :  { %v1524_v59 = vmul.f32 %v6053_v52, %v6856_v19  ;;  %v6912_v19 = vpack.c.bf16 %v1765_v18, %v1764_v17 }
0x1307   :  { %v1633_v50 = vpop.permute.xlu0 %1632 }
0x1308   :  { %v1635_v51 = vmul.f32 %v6051_v49, %v1633_v50 }
0x130a   :  { %1637 = vrot.lane.b32.xlu0 %v1635_v51, %s6396_s25 }
0x130c   :  { %v1527_v54 = vpop.permute.xlu1 %1526 }
0x130d   :  { %v1529_v7 = vmul.f32 %v6053_v52, %v1527_v54  ;;  %v1960_v54 = vld [vmem:[#allocation12] sm:$0xff] }
0x130f   :  { %1531 = vrot.lane.b32.xlu1 %v1529_v7, %s6396_s25  ;;  %v1961_v7 = vld [vmem:[#allocation12 + $0x8] sm:$0xff] }
0x137c   :  { %v1638_v57 = vpop.permute.xlu0 %1637 }
0x137d   :  { %v6889_v58 = vadd.f32 %v1638_v57, %v1630_v56  ;;  %v6945_v56 = vpack.c.bf16 %v1961_v7, %v1960_v54  ;;  %v1963_v57 = vld [vmem:[#allocation12 + $0x18] sm:$0xff] }
0x137f   :  { %6054 = vtanh.f32 %v6889_v58  ;;  %v1932_v24 = vrot.slane %v6889_v58, 4  ;;  %v6948_v58 = vpack.c.bf16 %v1963_v57, %v1962_v55  ;;  %v4681_v55 = vld [vmem:[%s7448_s1 + $0x2] sm:$0x3] }
0x1381   :  { %v1532_v13 = vpop.permute.xlu1 %1531 }
0x1382   :  { %v6893_v60 = vadd.f32 %v1532_v13, %v1524_v59  ;;  %v1964_v59 = vld [vmem:[#allocation12 + $0x20] sm:$0xff]  ;;  %v1965_v13 = vld [vmem:[#allocation12 + $0x28] sm:$0xff] }
0x1384   :  { %6056 = vtanh.f32 %v6893_v60 }
0x1389   :  { %v6055_v61 = vpop.eup %6054 }
0x138a   :  { %1643 = vrot.lane.b32.xlu0 %v6055_v61, %s6395_s0 }
0x138e   :  { %v6057_v63 = vpop.eup %6056  ;;  %1759 = vperm.xlu0 %5953, %v1757_v62  }
0x138f   :  { %1537 = vrot.lane.b32.xlu1 %v6057_v63, %s6395_s0  ;;  %v1966_v63 = vld [vmem:[#allocation12 + $0x30] sm:$0xff] }
0x1390   :  { %v6959_v1 = vpack.c.bf16 %v1967_v0, %v1966_v63 }
0x13fc   :  { %v1644_v8 = vpop.permute.xlu0 %1643 }
0x13fd   :  { %v1646_v9 = vmul.f32 %v6051_v49, %v1644_v8 }
0x13ff   :  { %v1771_v10 = vrot.slane %v1646_v9, 4  ;;  %1648 = vrot.lane.b32.xlu0 %v1646_v9, %s6396_s25 }
0x1401   :  { %v1538_v11 = vpop.permute.xlu1 %1537  ;;  %1772 = vrot.lane.b32.xlu1 %v1771_v10, %s6396_s25 }
0x1402   :  { %v1540_v14 = vmul.f32 %v6053_v52, %v1538_v11 }
0x1404   :  { %v1652_v15 = vrot.slane %v1540_v14, 4 }
0x1406   :  { %1653 = vrot.lane.b32.xlu1 %v1652_v15, %s6395_s0  ;;  %v6977_v15 = vld [vmem:[#allocation14] ss:$0 sm:$0xff] }
0x140d   :  { %v1760_v21 = vpop.permute.xlu0 %1759 }
0x140e   :  { %vm1761_vm7 = vcmp.eq.s32.totalorder %v6617_v16, %v1760_v21 }
0x140f   :  { %v4670_v30 = vsel %vm1761_vm7, 1.0, %v6919_v22 }
0x1471   :  { %v1649_v26 = vpop.permute.xlu0 %1648 }
0x1473   :  { %v1773_v20 = vpop.permute.xlu1 %1772 }
0x1474   :  { %5250 = vmatmul.mubr.msk.f32.vlgmr.msra.gmra.mrb[14].mxu1 %vm265_vm4, %v1773_v20 }
0x1475   :  { %5729 = vmatpush3.bf16.msra.mxu1 %v6912_v19  ;;  %5258 = vmatprep.mubr.msk.f32.mxu1 %vm6394_vm0, %v6919_v22 }
0x1476   :  { %5256 = vmatprep.subr.mxu1 %v6919_v22 }
0x1478   :  { %v1654_v27 = vpop.permute.xlu1 %1653 }
0x1479   :  { %v1656_v28 = vsel %vm265_vm4, %v1649_v26, %v1654_v27  ;;  %5257 = vmatpush3.msk.msra.mxu1 %vm1850_vm6, %v1766_v25 }
0x147a   :  { %v1658_v29 = vrot.slane %v1656_v28, 4  ;;  %5742 = vmatprep.subr.bf16.mxu1 %v6392_v3 }
0x147c   :  { %5239 = vmatmul.mubr.msk.f32.vlgmr.msra.gmra.mrb[14].mxu0 %vm384_vm5, %v1658_v29  ;;  %5259 = vmatmul.mubr.msk.f32.vlgmr.msra.gmra.mrb[14].mxu1 %vm1846_vm8, %v4670_v30 }
0x147d   :  { %5277 = vmatprep.mubr.msk.f32.mxu0 %vm6394_vm0, %v6919_v22  ;;  %5288 = vmatprep.mubr.msk.f32.mxu1 %vm6394_vm0, %v6919_v22 }
0x147e   :  { %5732 = vmatpush3.bf16.msra.mxu0 %v6945_v56 }
0x147f   :  { %5733 = vmatprep.subr.bf16.mxu0 %v6392_v3 }
0x1482   :  { %5735 = vmatpush3.bf16.msra.mxu0 %v6948_v58 }
0x1483   :  { %5736 = vmatprep.subr.bf16.mxu0 %v6392_v3 }
0x154f   :  { %v1727_v31 = vpop.f32.mrb[14].mxu0  ;;  %v1920_v32 = vpop.f32.mrb[14].mxu1 }
0x1550   :  { %v1728_v33 = vadd.f32 %v6696_v53, %v1727_v31  ;;  %6058 = vtanh.f32 %v1920_v32  ;;  %v5240_v34 = vpop.f32.mrb[15].mxu0  ;;  %v5260_v35 = vpop.f32.mrb[15].mxu1  ;;  %v4674_v37 = vmul.f32 -1.442695, %v1920_v32 }
0x1551   :  { %v2072_v34 = vld [vmem:[%s7458_s11] sm:$0xff]  ;;  %v2073_v35 = vld [vmem:[%s7458_s11 + $0x8] sm:$0xff] }
0x1552   :  { %6060 = vtanh.f32 %v1728_v33  ;;  %v4669_v38 = vmul.f32 -1.442695, %v1728_v33 }
0x1553   :  { %6062 = vpow2.f32 %v4674_v37  ;;  %v2075_v37 = vld [vmem:[%s7458_s11 + $0x18] sm:$0xff] }
0x1554   :  { %6064 = vpow2.f32 %v4669_v38 }
0x155a   :  { %v6059_v36 = vpop.eup %6058 }
0x155b   :  { %1936 = vrot.lane.b32.xlu1 %v6059_v36, %s6395_s0  ;;  %v2074_v36 = vld [vmem:[%s7458_s11 + $0x10] sm:$0xff] }
0x155c   :  { %v6061_v39 = vpop.eup %6060  ;;  %v7000_v38 = vpack.c.bf16 %v2075_v37, %v2074_v36 }
0x155d   :  { %1740 = vrot.lane.b32.xlu0 %v6061_v39, %s6395_s0  ;;  %v6063_v41 = vpop.eup %6062  ;;  %v6994_v39 = vpack.c.bf16 %v2073_v35, %v2072_v34 }
0x155e   :  { %v6065_v40 = vpop.eup %6064  ;;  %v1927_v42 = vadd.f32 1.0, %v6063_v41 }
0x155f   :  { %v1734_v43 = vadd.f32 1.0, %v6065_v40  ;;  %5744 = vmatpush3.bf16.msra.mxu1 %v6994_v39 }
0x1560   :  { %6066 = vrcp.f32 %v1927_v42  ;;  %5745 = vmatprep.subr.bf16.mxu1 %v6392_v3 }
0x1561   :  { %6068 = vrcp.f32 %v1734_v43 }
0x1563   :  { %5747 = vmatpush3.bf16.msra.mxu1 %v7000_v38 }
0x1564   :  { %5748 = vmatprep.subr.bf16.mxu1 %v6392_v3 }
0x156a   :  { %v6067_v53 = vpop.eup %6066 }
0x156b   :  { %v6069_v48 = vpop.eup %6068  ;;  %v1934_v47 = vmul.f32 %v6067_v53, %v1932_v24  ;;  %v7031_v24 = vcvt.s32.f32 %v6617_v16 }
0x156c   :  { %v1738_v50 = vmul.f32 %v6069_v48, %v6893_v60  ;;  %v6952_v60 = vpack.c.bf16 %v1965_v13, %v1964_v59 }
0x156e   :  { %5738 = vmatpush3.bf16.msra.mxu0 %v6952_v60 }
0x156f   :  { %5739 = vmatprep.subr.bf16.mxu0 %v6392_v3 }
0x1572   :  { %5741 = vmatpush3.bf16.msra.mxu0 %v6959_v1 }
0x1573   :  { %5757 = vmatprep.subr.bf16.mxu0 %v6392_v3 }
0x15cd   :  { %v1937_v12 = vpop.permute.xlu1 %1936 }
0x15ce   :  { %v1939_v44 = vmul.f32 %v6067_v53, %v1937_v12 }
0x15cf   :  { %v1741_v45 = vpop.permute.xlu0 %1740 }
0x15d0   :  { %v1743_v46 = vmul.f32 %v6069_v48, %v1741_v45  ;;  %1941 = vrot.lane.b32.xlu1 %v1939_v44, %s6396_s25 }
0x15d2   :  { %1745 = vrot.lane.b32.xlu0 %v1743_v46, %s6396_s25 }
0x1642   :  { %v1942_v23 = vpop.permute.xlu1 %1941 }
0x1643   :  { %v6941_v49 = vadd.f32 %v1942_v23, %v1934_v47 }
0x1644   :  { %v1746_v51 = vpop.permute.xlu0 %1745 }
0x1645   :  { %6070 = vtanh.f32 %v6941_v49  ;;  %v1748_v52 = vadd.f32 %v1746_v51, %v1738_v50  ;;  %v2187_v51 = vld [vmem:[#allocation9 + $0x10] sm:$0xf] }
0x1647   :  { %6072 = vtanh.f32 %v1748_v52 }
0x164f   :  { %v6071_v61 = vpop.eup %6070 }
0x1650   :  { %1947 = vrot.lane.b32.xlu1 %v6071_v61, %s6395_s0 }
0x1651   :  { %v6073_v62 = vpop.eup %6072 }
0x1652   :  { %1751 = vrot.lane.b32.xlu0 %v6073_v62, %s6395_s0 }
0x16c2   :  { %v1948_v2 = vpop.permute.xlu1 %1947 }
0x16c3   :  { %v1950_v5 = vmul.f32 %v6067_v53, %v1948_v2  ;;  %v7022_v53 = vld [vmem:[#allocation15] ss:$0 sm:$0xff] }
0x16c4   :  { %v1752_v8 = vpop.permute.xlu0 %1751 }
0x16c5   :  { %v1754_v9 = vmul.f32 %v6069_v48, %v1752_v8  ;;  %1952 = vrot.lane.b32.xlu0 %v1950_v5, %s6396_s25 }
0x16c7   :  { %1956 = vrot.lane.b32.xlu1 %v1754_v9, %s6395_s0 }
0x1737   :  { %v1953_v10 = vpop.permute.xlu0 %1952 }
0x1739   :  { %v1957_v11 = vpop.permute.xlu1 %1956 }
0x173a   :  { %v1959_v14 = vsel %vm265_vm4, %v1953_v10, %v1957_v11 }
0x173b   :  { %5278 = vmatmul.mubr.msk.f32.vlgmr.msra.gmra.mrb[16].mxu0 %vm384_vm5, %v1959_v14 }
0x173c   :  { %5759 = vmatpush3.bf16.msra.mxu0 %v6945_v56  ;;  %5327 = vmatprep.mubr.msk.f32.mxu0 %vm6394_vm0, %v6919_v22 }
0x173d   :  { %5760 = vmatprep.subr.bf16.mxu0 %v6392_v3 }
0x1740   :  { %5762 = vmatpush3.bf16.msra.mxu0 %v6948_v58 }
0x1741   :  { %5763 = vmatprep.subr.bf16.mxu0 %v6392_v3 }
0x1744   :  { %5765 = vmatpush3.bf16.msra.mxu0 %v6952_v60 }
0x1745   :  { %5766 = vmatprep.subr.bf16.mxu0 %v6392_v3 }
0x1748   :  { %5768 = vmatpush3.bf16.msra.mxu0 %v6959_v1 }
0x1749   :  { %5784 = vmatprep.subr.bf16.mxu0 %v6392_v3 }
0x180e   :  { %v2044_v17 = vpop.f32.mrb[16].mxu0 }
0x180f   :  { %v2045_v18 = vadd.f32 %v6977_v15, %v2044_v17  ;;  %v5279_v20 = vpop.f32.mrb[17].mxu0 }
0x1811   :  { %6074 = vtanh.f32 %v2045_v18  ;;  %v4677_v25 = vmul.f32 -1.442695, %v2045_v18 }
0x1813   :  { %6076 = vpow2.f32 %v4677_v25 }
0x181b   :  { %v6075_v21 = vpop.eup %6074 }
0x181c   :  { %2057 = vrot.lane.b32.xlu0 %v6075_v21, %s6395_s0 }
0x181d   :  { %v6077_v26 = vpop.eup %6076 }
0x181e   :  { %v2051_v27 = vadd.f32 1.0, %v6077_v26 }
0x1820   :  { %6078 = vrcp.f32 %v2051_v27 }
0x182a   :  { %v6079_v28 = vpop.eup %6078 }
0x182b   :  { %v2055_v31 = vmul.f32 %v6079_v28, %v1748_v52  ;;  %v2176_v52 = vstv %s2175_s20 }
0x182c   :  { %vm2177_vm11 = vcmp.eq.s32.totalorder %v2176_v52, 1 }
0x188e   :  { %v2058_v29 = vpop.permute.xlu0 %2057 }
0x188f   :  { %v2060_v30 = vmul.f32 %v6079_v28, %v2058_v29 }
0x1891   :  { %2062 = vrot.lane.b32.xlu1 %v2060_v30, %s6396_s25 }
0x1903   :  { %v2063_v32 = vpop.permute.xlu1 %2062 }
0x1904   :  { %v6982_v33 = vadd.f32 %v2063_v32, %v2055_v31 }
0x1906   :  { %6080 = vtanh.f32 %v6982_v33 }
0x1910   :  { %v6081_v41 = vpop.eup %6080 }
0x1911   :  { %2068 = vrot.lane.b32.xlu0 %v6081_v41, %s6395_s0 }
0x1983   :  { %v2069_v40 = vpop.permute.xlu0 %2068 }
0x1984   :  { %v7006_v42 = vmul.f32 %v6079_v28, %v2069_v40 }
0x1986   :  { %2084 = vrot.lane.b32.xlu1 %v7006_v42, %s6396_s25 }
0x19f8   :  { %v2085_v43 = vpop.permute.xlu1 %2084 }
0x19f9   :  { %5289 = vmatmul.mubr.msk.f32.vlgmr.msra.gmra.mrb[16].mxu1 %vm265_vm4, %v2085_v43 }
0x19fa   :  { %5750 = vmatpush3.bf16.msra.mxu1 %v6901_v4  ;;  %5299 = vmatprep.mubr.msk.f32.mxu1 %vm6394_vm0, %v6919_v22 }
0x19fb   :  { %5751 = vmatprep.subr.bf16.mxu1 %v6392_v3 }
0x19fe   :  { %5753 = vmatpush3.bf16.msra.mxu1 %v6904_v6 }
0x19ff   :  { %5754 = vmatprep.subr.bf16.mxu1 %v6392_v3 }
0x1a01   :  { %5300 = vmatmul.mubr.msk.f32.vlgmr.msra.gmra.mrb[18].mxu1 %vm265_vm4, %v1953_v10 }
0x1a02   :  { %5756 = vmatpush3.bf16.msra.mxu1 %v6912_v19  ;;  %5308 = vmatprep.mubr.msk.f32.mxu1 %vm6394_vm0, %v6919_v22 }
0x1a03   :  { %5306 = vmatprep.subr.mxu1 %v6919_v22 }
0x1a06   :  { %5307 = vmatpush3.msk.msra.mxu1 %vm1850_vm6, %v2187_v51 }
0x1a07   :  { %5769 = vmatprep.subr.bf16.mxu1 %v6392_v3 }
0x1acc   :  { %v2154_v12 = vpop.f32.mrb[16].mxu1 }
0x1acd   :  { %v2155_v44 = vadd.f32 %v7022_v53, %v2154_v12  ;;  %v5290_v48 = vpop.f32.mrb[17].mxu1 }
0x1acf   :  { %v2159_v45 = vsel %vm2158_vm9, %v2155_v44, 0.0  ;;  %v2162_v46 = vsel %vm2158_vm9, %v2155_v44, -inf }
0x1ad0   :  { %4680 = vst [vmem:[%s7460_s13 + $0x8] sm:$0xff] %v2159_v45  ;;  %2163 = vmax.xlane.f32.xlu0 %v2162_v46 }
0x1b5d   :  { %v2164_v47 = vpop.xlane.xlu0 %2163 }
0x1b5e   :  { %vm2165_vm10 = vcmp.eq.f32.partialorder %v2155_v44, %v2164_v47 }
0x1b5f   :  { %v2166_v23 = vsel %vm2165_vm10, %v7031_v24, 128.0 }
0x1b60   :  { %v2167_v50 = vsel %vm2158_vm9, %v2166_v23, inf }
0x1b61   :  { %2168 = vmin.xlane.f32.xlu1 %v2167_v50 }
0x1bee   :  { %v2169_v54 = vpop.xlane.xlu1 %2168 }
0x1bef   :  { %v5924_v7 = vtrunc.f32 %v2169_v54 }
0x1bf1   :  { %v5925_v57 = vcvt.f32.s32 %v5924_v7  ;;  %v2598_v7 = vld [vmem:[#allocation9 + $0x10] sm:$0xf] }
0x1bf3   :  { %v2178_v59 = vsel %vm2177_vm11, %v4681_v55, %v5925_v57  ;;  %v2587_v55 = vstv %s2586_s15  ;;  %s4732_s15 = sld [smem:[#allocation2 + $0x4]] }
0x1bf4   :  { %2180 = vperm.xlu0 %5953, %v2178_v59   ;;  %vm2588_vm14 = vcmp.eq.s32.totalorder %v2587_v55, 1 }
0x1bf9   :  { %p3816_p3 = scmp.ne.s32.totalorder %s4732_s15, 0 }
0x1bfb   :  { %s3819_s7 = scalar_select %p3816_p3, 1, 0 }
0x1c73   :  { %v2181_v13 = vpop.permute.xlu0 %2180 }
0x1c74   :  { %vm2182_vm12 = vcmp.eq.s32.totalorder %v6617_v16, %v2181_v13  ;;  %v4694_v13 = vld [vmem:[%s7448_s1 + $0x4] sm:$0x3] }
0x1c75   :  { %v4682_v61 = vsel %vm2182_vm12, 1.0, %v6919_v22 }
0x1c76   :  { %5309 = vmatmul.mubr.msk.f32.vlgmr.msra.gmra.mrb[18].mxu1 %vm1846_vm8, %v4682_v61 }
0x1c77   :  { %5771 = vmatpush3.bf16.msra.mxu1 %v6994_v39  ;;  %5338 = vmatprep.mubr.msk.f32.mxu1 %vm6394_vm0, %v6919_v22 }
0x1c78   :  { %5772 = vmatprep.subr.bf16.mxu1 %v6392_v3 }
0x1c7b   :  { %5774 = vmatpush3.bf16.msra.mxu1 %v7000_v38 }
0x1c7c   :  { %5775 = vmatprep.subr.bf16.mxu1 %v6392_v3 }
0x1d49   :  { %v2336_v62 = vpop.f32.mrb[18].mxu1 }
0x1d4a   :  { %6082 = vtanh.f32 %v2336_v62  ;;  %v5310_v63 = vpop.f32.mrb[19].mxu1  ;;  %v4686_v2 = vmul.f32 -1.442695, %v2336_v62 }
0x1d4c   :  { %6084 = vpow2.f32 %v4686_v2 }
0x1d54   :  { %v6083_v0 = vpop.eup %6082 }
0x1d55   :  { %2349 = vrot.lane.b32.xlu1 %v6083_v0, %s6395_s0 }
0x1d56   :  { %v6085_v5 = vpop.eup %6084 }
0x1d57   :  { %v2343_v8 = vadd.f32 1.0, %v6085_v5 }
0x1d59   :  { %6086 = vrcp.f32 %v2343_v8 }
0x1d63   :  { %v6087_v9 = vpop.eup %6086 }
0x1d64   :  { %v2347_v14 = vmul.f32 %v6087_v9, %v6941_v49 }
0x1dc7   :  { %v2350_v10 = vpop.permute.xlu1 %2349 }
0x1dc8   :  { %v2352_v11 = vmul.f32 %v6087_v9, %v2350_v10 }
0x1dca   :  { %2354 = vrot.lane.b32.xlu0 %v2352_v11, %s6396_s25 }
0x1e3c   :  { %v2355_v17 = vpop.permute.xlu0 %2354 }
0x1e3d   :  { %v7052_v18 = vadd.f32 %v2355_v17, %v2347_v14 }
0x1e3f   :  { %6088 = vtanh.f32 %v7052_v18 }
0x1e49   :  { %v6089_v20 = vpop.eup %6088 }
0x1e4a   :  { %2360 = vrot.lane.b32.xlu1 %v6089_v20, %s6395_s0 }
0x1e4e   :  { %2368 = vrot.lane.b32.xlu1 %v7006_v42, %s6395_s0 }
0x1ebc   :  { %v2361_v21 = vpop.permute.xlu1 %2360 }
0x1ebd   :  { %v2363_v25 = vmul.f32 %v6087_v9, %v2361_v21 }
0x1ebf   :  { %2365 = vrot.lane.b32.xlu0 %v2363_v25, %s6396_s25 }
0x1ec0   :  { %v2369_v26 = vpop.permute.xlu1 %2368 }
0x1f31   :  { %v2366_v27 = vpop.permute.xlu0 %2365 }
0x1f32   :  { %v2371_v28 = vsel %vm265_vm4, %v2366_v27, %v2369_v26 }
0x1f33   :  { %5328 = vmatmul.mubr.msk.f32.vlgmr.msra.gmra.mrb[18].mxu0 %vm384_vm5, %v2371_v28 }
0x1f34   :  { %5786 = vmatpush3.bf16.msra.mxu0 %v6945_v56  ;;  %5377 = vmatprep.mubr.msk.f32.mxu0 %vm6394_vm0, %v6919_v22 }
0x1f35   :  { %5787 = vmatprep.subr.bf16.mxu0 %v6392_v3 }
0x1f38   :  { %5789 = vmatpush3.bf16.msra.mxu0 %v6948_v58 }
0x1f39   :  { %5790 = vmatprep.subr.bf16.mxu0 %v6392_v3 }
0x1f3c   :  { %5792 = vmatpush3.bf16.msra.mxu0 %v6952_v60 }
0x1f3d   :  { %5793 = vmatprep.subr.bf16.mxu0 %v6392_v3 }
0x1f40   :  { %5795 = vmatpush3.bf16.msra.mxu0 %v6959_v1 }
0x1f41   :  { %5802 = vmatprep.subr.bf16.mxu0 %v6392_v3 }
0x2006   :  { %v2456_v49 = vpop.f32.mrb[18].mxu0 }
0x2007   :  { %v2457_v29 = vadd.f32 %v6977_v15, %v2456_v49  ;;  %v5329_v30 = vpop.f32.mrb[19].mxu0 }
0x2009   :  { %6090 = vtanh.f32 %v2457_v29  ;;  %v4689_v32 = vmul.f32 -1.442695, %v2457_v29 }
0x200b   :  { %6092 = vpow2.f32 %v4689_v32 }
0x2013   :  { %v6091_v31 = vpop.eup %6090 }
0x2014   :  { %2469 = vrot.lane.b32.xlu0 %v6091_v31, %s6395_s0 }
0x2015   :  { %v6093_v34 = vpop.eup %6092 }
0x2016   :  { %v2463_v35 = vadd.f32 1.0, %v6093_v34 }
0x2018   :  { %6094 = vrcp.f32 %v2463_v35 }
0x2022   :  { %v6095_v36 = vpop.eup %6094 }
0x2023   :  { %v2467_v40 = vmul.f32 %v6095_v36, %v6982_v33 }
0x2086   :  { %v2470_v37 = vpop.permute.xlu0 %2469 }
0x2087   :  { %v2472_v41 = vmul.f32 %v6095_v36, %v2470_v37 }
0x2089   :  { %2474 = vrot.lane.b32.xlu1 %v2472_v41, %s6396_s25 }
0x20fb   :  { %v2475_v42 = vpop.permute.xlu1 %2474 }
0x20fc   :  { %v7075_v43 = vadd.f32 %v2475_v42, %v2467_v40 }
0x20fe   :  { %6096 = vtanh.f32 %v7075_v43 }
0x2108   :  { %v6097_v12 = vpop.eup %6096 }
0x2109   :  { %2480 = vrot.lane.b32.xlu0 %v6097_v12, %s6395_s0 }
0x217b   :  { %v2481_v44 = vpop.permute.xlu0 %2480 }
0x217c   :  { %v7079_v48 = vmul.f32 %v6095_v36, %v2481_v44 }
0x217e   :  { %2496 = vrot.lane.b32.xlu1 %v7079_v48, %s6396_s25 }
0x21f0   :  { %v2497_v45 = vpop.permute.xlu1 %2496 }
0x21f1   :  { %5339 = vmatmul.mubr.msk.f32.vlgmr.msra.gmra.mrb[20].mxu1 %vm265_vm4, %v2497_v45 }
0x21f2   :  { %5777 = vmatpush3.bf16.msra.mxu1 %v6901_v4  ;;  %5349 = vmatprep.mubr.msk.f32.mxu1 %vm6394_vm0, %v6919_v22 }
0x21f3   :  { %5778 = vmatprep.subr.bf16.mxu1 %v6392_v3 }
0x21f6   :  { %5780 = vmatpush3.bf16.msra.mxu1 %v6904_v6 }
0x21f7   :  { %5781 = vmatprep.subr.bf16.mxu1 %v6392_v3 }
0x21f9   :  { %5350 = vmatmul.mubr.msk.f32.vlgmr.msra.gmra.mrb[22].mxu1 %vm265_vm4, %v2366_v27 }
0x21fa   :  { %5783 = vmatpush3.bf16.msra.mxu1 %v6912_v19  ;;  %5358 = vmatprep.mubr.msk.f32.mxu1 %vm6394_vm0, %v6919_v22 }
0x21fb   :  { %5356 = vmatprep.subr.mxu1 %v6919_v22 }
0x21fe   :  { %5357 = vmatpush3.msk.msra.mxu1 %vm1850_vm6, %v2598_v7 }
0x21ff   :  { %5796 = vmatprep.subr.bf16.mxu1 %v6392_v3 }
0x22c4   :  { %v2566_v33 = vpop.f32.mrb[20].mxu1 }
0x22c5   :  { %v2567_v46 = vadd.f32 %v7022_v53, %v2566_v33  ;;  %v5340_v47 = vpop.f32.mrb[21].mxu1 }
0x22c7   :  { %v2570_v23 = vsel %vm2158_vm9, %v2567_v46, 0.0  ;;  %v2573_v50 = vsel %vm2158_vm9, %v2567_v46, -inf }
0x22c8   :  { %4692 = vst [vmem:[%s7460_s13 + $0x10] sm:$0xff] %v2570_v23  ;;  %2574 = vmax.xlane.f32.xlu0 %v2573_v50 }
0x2355   :  { %v2575_v51 = vpop.xlane.xlu0 %2574 }
0x2356   :  { %vm2576_vm13 = vcmp.eq.f32.partialorder %v2567_v46, %v2575_v51 }
0x2357   :  { %v2577_v52 = vsel %vm2576_vm13, %v7031_v24, 128.0 }
0x2358   :  { %v2578_v54 = vsel %vm2158_vm9, %v2577_v52, inf  ;;  %v3009_v52 = vld [vmem:[#allocation9 + $0x10] sm:$0xf] }
0x2359   :  { %2579 = vmin.xlane.f32.xlu1 %v2578_v54  ;;  %v2998_v54 = vstv %s2997_s10  ;;  %s4745_s10 = sld [smem:[#allocation2 + $0x5]] }
0x235a   :  { %vm2999_vm2 = vcmp.eq.s32.totalorder %v2998_v54, 1 }
0x235f   :  { %p4227_p4 = scmp.ne.s32.totalorder %s4745_s10, 0 }
0x2361   :  { %s4230_s29 = scalar_select %p4227_p4, 1, 0 }
0x23e6   :  { %v2580_v57 = vpop.xlane.xlu1 %2579 }
0x23e7   :  { %v5926_v59 = vtrunc.f32 %v2580_v57  ;;  %v4707_v57 = vld [vmem:[%s7448_s1 + $0x6] sm:$0x3] }
0x23e9   :  { %v5927_v61 = vcvt.f32.s32 %v5926_v59 }
0x23eb   :  { %v2589_v62 = vsel %vm2588_vm14, %v4694_v13, %v5927_v61 }
0x23ec   :  { %2591 = vperm.xlu0 %5953, %v2589_v62  }
0x246b   :  { %v2592_v63 = vpop.permute.xlu0 %2591 }
0x246c   :  { %vm2593_vm15 = vcmp.eq.s32.totalorder %v6617_v16, %v2592_v63 }
0x246d   :  { %v4695_v0 = vsel %vm2593_vm15, 1.0, %v6919_v22 }
0x246e   :  { %5359 = vmatmul.mubr.msk.f32.vlgmr.msra.gmra.mrb[22].mxu1 %vm1846_vm8, %v4695_v0 }
0x246f   :  { %5798 = vmatpush3.bf16.msra.mxu1 %v6994_v39  ;;  %5388 = vmatprep.mubr.msk.f32.mxu1 %vm6394_vm0, %v6919_v22 }
0x2470   :  { %5799 = vmatprep.subr.bf16.mxu1 %v6392_v3 }
0x2473   :  { %5801 = vmatpush3.bf16.msra.mxu1 %v7000_v38 }
0x2474   :  { %5811 = vmatprep.subr.bf16.mxu1 %v6392_v3 }
0x2541   :  { %v2747_v2 = vpop.f32.mrb[22].mxu1 }
0x2542   :  { %6098 = vtanh.f32 %v2747_v2  ;;  %v5360_v5 = vpop.f32.mrb[23].mxu1  ;;  %v4699_v9 = vmul.f32 -1.442695, %v2747_v2 }
0x2544   :  { %6100 = vpow2.f32 %v4699_v9 }
0x254c   :  { %v6099_v8 = vpop.eup %6098 }
0x254d   :  { %2760 = vrot.lane.b32.xlu1 %v6099_v8, %s6395_s0 }
0x254e   :  { %v6101_v10 = vpop.eup %6100 }
0x254f   :  { %v2754_v11 = vadd.f32 1.0, %v6101_v10 }
0x2551   :  { %6102 = vrcp.f32 %v2754_v11 }
0x255b   :  { %v6103_v14 = vpop.eup %6102 }
0x255c   :  { %v2758_v21 = vmul.f32 %v6103_v14, %v7052_v18 }
0x25bf   :  { %v2761_v17 = vpop.permute.xlu1 %2760 }
0x25c0   :  { %v2763_v20 = vmul.f32 %v6103_v14, %v2761_v17 }
0x25c2   :  { %2765 = vrot.lane.b32.xlu0 %v2763_v20, %s6396_s25 }
0x2634   :  { %v2766_v25 = vpop.permute.xlu0 %2765 }
0x2635   :  { %v7120_v26 = vadd.f32 %v2766_v25, %v2758_v21 }
0x2637   :  { %6104 = vtanh.f32 %v7120_v26 }
0x2641   :  { %v6105_v27 = vpop.eup %6104 }
0x2642   :  { %2771 = vrot.lane.b32.xlu1 %v6105_v27, %s6395_s0 }
0x2646   :  { %2779 = vrot.lane.b32.xlu1 %v7079_v48, %s6395_s0 }
0x26b4   :  { %v2772_v28 = vpop.permute.xlu1 %2771 }
0x26b5   :  { %v2774_v49 = vmul.f32 %v6103_v14, %v2772_v28 }
0x26b7   :  { %2776 = vrot.lane.b32.xlu0 %v2774_v49, %s6396_s25 }
0x26b8   :  { %v2780_v29 = vpop.permute.xlu1 %2779 }
0x2729   :  { %v2777_v30 = vpop.permute.xlu0 %2776 }
0x272a   :  { %v2782_v31 = vsel %vm265_vm4, %v2777_v30, %v2780_v29 }
0x272b   :  { %5378 = vmatmul.mubr.msk.f32.vlgmr.msra.gmra.mrb[20].mxu0 %vm384_vm5, %v2782_v31 }
0x272c   :  { %5804 = vmatpush3.bf16.msra.mxu0 %v6901_v4  ;;  %5399 = vmatprep.mubr.msk.f32.mxu0 %vm6394_vm0, %v6919_v22 }
0x272d   :  { %5805 = vmatprep.subr.bf16.mxu0 %v6392_v3 }
0x2730   :  { %5807 = vmatpush3.bf16.msra.mxu0 %v6904_v6 }
0x2731   :  { %5808 = vmatprep.subr.bf16.mxu0 %v6392_v3 }
0x2733   :  { %5400 = vmatmul.mubr.msk.f32.vlgmr.msra.gmra.mrb[22].mxu0 %vm265_vm4, %v2777_v30 }
0x2734   :  { %5810 = vmatpush3.bf16.msra.mxu0 %v6912_v19  ;;  %5408 = vmatprep.mubr.msk.f32.mxu0 %vm6394_vm0, %v6919_v22 }
0x2735   :  { %5406 = vmatprep.subr.mxu0 %v6919_v22 }
0x2738   :  { %5407 = vmatpush3.msk.msra.mxu0 %vm1850_vm6, %v3009_v52 }
0x2739   :  { %5823 = vmatprep.subr.bf16.mxu0 %v6392_v3 }
0x27fe   :  { %v2867_v18 = vpop.f32.mrb[20].mxu0 }
0x27ff   :  { %v2868_v32 = vadd.f32 %v6977_v15, %v2867_v18  ;;  %v5379_v34 = vpop.f32.mrb[21].mxu0 }
0x2801   :  { %6106 = vtanh.f32 %v2868_v32  ;;  %v4702_v36 = vmul.f32 -1.442695, %v2868_v32 }
0x2803   :  { %6108 = vpow2.f32 %v4702_v36 }
0x280b   :  { %v6107_v35 = vpop.eup %6106 }
0x280c   :  { %2880 = vrot.lane.b32.xlu0 %v6107_v35, %s6395_s0 }
0x280d   :  { %v6109_v37 = vpop.eup %6108 }
0x280e   :  { %v2874_v41 = vadd.f32 1.0, %v6109_v37 }
0x2810   :  { %6110 = vrcp.f32 %v2874_v41 }
0x281a   :  { %v6111_v40 = vpop.eup %6110 }
0x281b   :  { %v2878_v12 = vmul.f32 %v6111_v40, %v7075_v43 }
0x287e   :  { %v2881_v19 = vpop.permute.xlu0 %2880 }
0x287f   :  { %v2883_v42 = vmul.f32 %v6111_v40, %v2881_v19 }
0x2881   :  { %2885 = vrot.lane.b32.xlu1 %v2883_v42, %s6396_s25 }
0x28f3   :  { %v2886_v44 = vpop.permute.xlu1 %2885 }
0x28f4   :  { %v7144_v48 = vadd.f32 %v2886_v44, %v2878_v12 }
0x28f6   :  { %6112 = vtanh.f32 %v7144_v48 }
0x2900   :  { %v6113_v45 = vpop.eup %6112 }
0x2901   :  { %2891 = vrot.lane.b32.xlu0 %v6113_v45, %s6395_s0 }
0x2973   :  { %v2892_v33 = vpop.permute.xlu0 %2891 }
0x2974   :  { %v7148_v46 = vmul.f32 %v6111_v40, %v2892_v33 }
0x2976   :  { %2907 = vrot.lane.b32.xlu1 %v7148_v46, %s6396_s25 }
0x29e8   :  { %v2908_v47 = vpop.permute.xlu1 %2907 }
0x29e9   :  { %5389 = vmatmul.mubr.msk.f32.vlgmr.msra.gmra.mrb[24].mxu1 %vm265_vm4, %v2908_v47 }
0x29ea   :  { %5813 = vmatpush3.bf16.msra.mxu1 %v6945_v56  ;;  %5427 = vmatprep.mubr.msk.f32.mxu1 %vm6394_vm0, %v6919_v22 }
0x29eb   :  { %5814 = vmatprep.subr.bf16.mxu1 %v6392_v3 }
0x29ee   :  { %5816 = vmatpush3.bf16.msra.mxu1 %v6948_v58 }
0x29ef   :  { %5817 = vmatprep.subr.bf16.mxu1 %v6392_v3 }
0x29f2   :  { %5819 = vmatpush3.bf16.msra.mxu1 %v6952_v60 }
0x29f3   :  { %5820 = vmatprep.subr.bf16.mxu1 %v6392_v3 }
0x29f6   :  { %5822 = vmatpush3.bf16.msra.mxu1 %v6959_v1 }
0x29f7   :  { %5829 = vmatprep.subr.bf16.mxu1 %v6392_v3 }
0x2abc   :  { %v2977_v43 = vpop.f32.mrb[24].mxu1 }
0x2abd   :  { %v2978_v56 = vadd.f32 %v7022_v53, %v2977_v43  ;;  %v5390_v23 = vpop.f32.mrb[25].mxu1 }
0x2abe   :  { %v3419_v23 = vld [vmem:[#allocation9 + $0x8] sm:$0xff] }
0x2abf   :  { %v2981_v50 = vsel %vm2158_vm9, %v2978_v56, 0.0  ;;  %v2984_v51 = vsel %vm2158_vm9, %v2978_v56, -inf }
0x2ac0   :  { %4705 = vst [vmem:[%s7460_s13 + $0x18] sm:$0xff] %v2981_v50  ;;  %2985 = vmax.xlane.f32.xlu0 %v2984_v51  ;;  %v3420_v50 = vld [vmem:[#allocation9 + $0x10] sm:$0xf]  ;;  %v3409_v51 = vstv %s3408_s26 }
0x2ac1   :  { %vm3410_vm10 = vcmp.eq.s32.totalorder %v3409_v51, 1  ;;  %v3717_v51 = vld [vmem:[%s7458_s11] sm:$0xff] }
0x2b4d   :  { %v2986_v58 = vpop.xlane.xlu0 %2985 }
0x2b4e   :  { %vm2987_vm1 = vcmp.eq.f32.partialorder %v2978_v56, %v2986_v58  ;;  %v3418_v56 = vld [vmem:[#allocation9] sm:$0xff] }
0x2b4f   :  { %v2988_v60 = vsel %vm2987_vm1, %v7031_v24, 128.0 }
0x2b50   :  { %v2989_v1 = vsel %vm2158_vm9, %v2988_v60, inf }
0x2b51   :  { %2990 = vmin.xlane.f32.xlu1 %v2989_v1  ;;  %v4720_v1 = vld [vmem:[%s7448_s1 + $0x8] sm:$0x3] }
0x2bde   :  { %v2991_v7 = vpop.xlane.xlu1 %2990 }
0x2bdf   :  { %v5928_v55 = vtrunc.f32 %v2991_v7 }
0x2be1   :  { %v5929_v59 = vcvt.f32.s32 %v5928_v55 }
0x2be3   :  { %v3000_v13 = vsel %vm2999_vm2, %v4707_v57, %v5929_v59 }
0x2be4   :  { %3002 = vperm.xlu0 %5953, %v3000_v13  }
0x2c63   :  { %v3003_v61 = vpop.permute.xlu0 %3002 }
0x2c64   :  { %vm3004_vm3 = vcmp.eq.s32.totalorder %v6617_v16, %v3003_v61 }
0x2c65   :  { %v4708_v62 = vsel %vm3004_vm3, 1.0, %v6919_v22 }
0x2c66   :  { %5409 = vmatmul.mubr.msk.f32.vlgmr.msra.gmra.mrb[22].mxu0 %vm1846_vm8, %v4708_v62 }
0x2c67   :  { %5825 = vmatpush3.bf16.msra.mxu0 %v6994_v39  ;;  %5438 = vmatprep.mubr.msk.f32.mxu0 %vm6394_vm0, %v6919_v22 }
0x2c68   :  { %5826 = vmatprep.subr.bf16.mxu0 %v6392_v3 }
0x2c6b   :  { %5828 = vmatpush3.bf16.msra.mxu0 %v7000_v38 }
0x2c6c   :  { %5838 = vmatprep.subr.bf16.mxu0 %v6392_v3 }
0x2d39   :  { %v3158_v63 = vpop.f32.mrb[22].mxu0 }
0x2d3a   :  { %6114 = vtanh.f32 %v3158_v63  ;;  %v5410_v0 = vpop.f32.mrb[23].mxu0  ;;  %v4712_v5 = vmul.f32 -1.442695, %v3158_v63 }
0x2d3c   :  { %6116 = vpow2.f32 %v4712_v5 }
0x2d44   :  { %v6115_v2 = vpop.eup %6114 }
0x2d45   :  { %3171 = vrot.lane.b32.xlu1 %v6115_v2, %s6395_s0 }
0x2d46   :  { %v6117_v8 = vpop.eup %6116 }
0x2d47   :  { %v3165_v9 = vadd.f32 1.0, %v6117_v8 }
0x2d49   :  { %6118 = vrcp.f32 %v3165_v9 }
0x2d53   :  { %v6119_v39 = vpop.eup %6118 }
0x2d54   :  { %v3169_v38 = vmul.f32 %v6119_v39, %v7120_v26 }
0x2db7   :  { %v3172_v10 = vpop.permute.xlu1 %3171 }
0x2db8   :  { %v3174_v11 = vmul.f32 %v6119_v39, %v3172_v10  ;;  %v3606_v10 = vld [vmem:[#allocation12 + $0x8] sm:$0xff] }
0x2dba   :  { %3176 = vrot.lane.b32.xlu0 %v3174_v11, %s6396_s25  ;;  %v3607_v11 = vld [vmem:[#allocation12 + $0x10] sm:$0xff] }
0x2e2c   :  { %v3177_v14 = vpop.permute.xlu0 %3176 }
0x2e2d   :  { %v7188_v17 = vadd.f32 %v3177_v14, %v3169_v38  ;;  %v3608_v14 = vld [vmem:[#allocation12 + $0x18] sm:$0xff] }
0x2e2f   :  { %6120 = vtanh.f32 %v7188_v17 }
0x2e39   :  { %v6121_v20 = vpop.eup %6120 }
0x2e3a   :  { %3182 = vrot.lane.b32.xlu1 %v6121_v20, %s6395_s0  ;;  %v7252_v20 = vpack.c.bf16 %v3608_v14, %v3607_v11  ;;  %v4733_v14 = vld [vmem:[%s7448_s1 + $0xa] sm:$0x3] }
0x2e3e   :  { %3190 = vrot.lane.b32.xlu1 %v7148_v46, %s6395_s0 }
0x2eac   :  { %v3183_v21 = vpop.permute.xlu1 %3182 }
0x2ead   :  { %v3185_v25 = vmul.f32 %v6119_v39, %v3183_v21  ;;  %v3605_v39 = vld [vmem:[#allocation12] sm:$0xff] }
0x2eae   :  { %v7249_v38 = vpack.c.bf16 %v3606_v10, %v3605_v39  ;;  %v3609_v21 = vld [vmem:[#allocation12 + $0x20] sm:$0xff]  ;;  %v3820_v39 = vstv %s3819_s7 }
0x2eaf   :  { %3187 = vrot.lane.b32.xlu0 %v3185_v25, %s6396_s25  ;;  %v3610_v25 = vld [vmem:[#allocation12 + $0x28] sm:$0xff]  ;;  %vm3821_vm13 = vcmp.eq.s32.totalorder %v3820_v39, 1 }
0x2eb0   :  { %v3191_v27 = vpop.permute.xlu1 %3190 }
0x2f21   :  { %v3188_v28 = vpop.permute.xlu0 %3187 }
0x2f22   :  { %v3193_v49 = vsel %vm265_vm4, %v3188_v28, %v3191_v27  ;;  %v3611_v27 = vld [vmem:[#allocation12 + $0x30] sm:$0xff] }
0x2f23   :  { %5428 = vmatmul.mubr.msk.f32.vlgmr.msra.gmra.mrb[26].mxu1 %vm384_vm5, %v3193_v49 }
0x2f24   :  { %5831 = vmatpush3.bf16.msra.mxu1 %v6901_v4  ;;  %5449 = vmatprep.mubr.msk.f32.mxu1 %vm6394_vm0, %v6919_v22 }
0x2f25   :  { %5832 = vmatprep.subr.bf16.mxu1 %v6392_v3 }
0x2f28   :  { %5834 = vmatpush3.bf16.msra.mxu1 %v6904_v6 }
0x2f29   :  { %5835 = vmatprep.subr.bf16.mxu1 %v6392_v3 }
0x2f2b   :  { %5450 = vmatmul.mubr.msk.f32.vlgmr.msra.gmra.mrb[28].mxu1 %vm265_vm4, %v3188_v28  ;;  %v3612_v28 = vld [vmem:[#allocation12 + $0x38] sm:$0xff] }
0x2f2c   :  { %5458 = vmatprep.mubr.msk.f32.mxu1 %vm6394_vm0, %v6919_v22 }
0x2ff6   :  { %v3278_v26 = vpop.f32.mrb[26].mxu1 }
0x2ff7   :  { %v3279_v29 = vadd.f32 %v6977_v15, %v3278_v26  ;;  %v5429_v30 = vpop.f32.mrb[27].mxu1  ;;  %v7261_v26 = vpack.c.bf16 %v3612_v28, %v3611_v27 }
0x2ff9   :  { %6122 = vtanh.f32 %v3279_v29  ;;  %v4715_v31 = vmul.f32 -1.442695, %v3279_v29 }
0x2ffb   :  { %6124 = vpow2.f32 %v4715_v31  ;;  %v3833_v31 = vld [vmem:[#allocation11 + $0x8] sm:$0xff] }
0x3003   :  { %v6123_v4 = vpop.eup %6122 }
0x3004   :  { %3291 = vrot.lane.b32.xlu0 %v6123_v4, %s6395_s0  ;;  %v3832_v4 = vld [vmem:[#allocation11] sm:$0xff] }
0x3005   :  { %v6125_v18 = vpop.eup %6124 }
0x3006   :  { %v3285_v32 = vadd.f32 1.0, %v6125_v18  ;;  %v7269_v18 = vpack.c.bf16 %v3833_v31, %v3832_v4 }
0x3008   :  { %6126 = vrcp.f32 %v3285_v32 }
0x3012   :  { %v6127_v6 = vpop.eup %6126 }
0x3013   :  { %v3289_v36 = vmul.f32 %v6127_v6, %v7144_v48 }
0x3076   :  { %v3292_v34 = vpop.permute.xlu0 %3291 }
0x3077   :  { %v3294_v35 = vmul.f32 %v6127_v6, %v3292_v34  ;;  %v3834_v34 = vld [vmem:[#allocation11 + $0x10] sm:$0xff] }
0x3079   :  { %3296 = vrot.lane.b32.xlu1 %v3294_v35, %s6396_s25  ;;  %v3835_v35 = vld [vmem:[#allocation11 + $0x18] sm:$0xff] }
0x30eb   :  { %v3297_v37 = vpop.permute.xlu1 %3296 }
0x30ec   :  { %v7210_v41 = vadd.f32 %v3297_v37, %v3289_v36  ;;  %v7274_v37 = vpack.c.bf16 %v3835_v35, %v3834_v34 }
0x30ee   :  { %6128 = vtanh.f32 %v7210_v41 }
0x30f8   :  { %v6129_v15 = vpop.eup %6128 }
0x30f9   :  { %3302 = vrot.lane.b32.xlu0 %v6129_v15, %s6395_s0  ;;  %v7279_v15 = vld [vmem:[%s7460_s13] sm:$0xff] }
0x316b   :  { %v3303_v40 = vpop.permute.xlu0 %3302 }
0x316c   :  { %v7214_v19 = vmul.f32 %v6127_v6, %v3303_v40  ;;  %v7291_v40 = vld [vmem:[#allocation14] ss:$0 sm:$0xff] }
0x316e   :  { %3318 = vrot.lane.b32.xlu1 %v7214_v19, %s6396_s25 }
0x31e0   :  { %v3319_v42 = vpop.permute.xlu1 %3318 }
0x31e1   :  { %5439 = vmatmul.mubr.msk.f32.vlgmr.msra.gmra.mrb[24].mxu0 %vm265_vm4, %v3319_v42 }
0x31e2   :  { %5477 = vmatprep.mubr.msk.f32.mxu0 %vm6394_vm0, %v6919_v22  ;;  %5840 = vmatpush3.bf16.msra.mxu0 %v7249_v38 }
0x31e3   :  { %5841 = vmatprep.subr.bf16.mxu0 %v6392_v3 }
0x31e6   :  { %5843 = vmatpush3.bf16.msra.mxu0 %v7252_v20 }
0x31e7   :  { %5844 = vmatprep.subr.bf16.mxu0 %v6392_v3 }
0x32b4   :  { %v3388_v12 = vpop.f32.mrb[24].mxu0 }
0x32b5   :  { %v3389_v44 = vadd.f32 %v7022_v53, %v3388_v12  ;;  %v5440_v48 = vpop.f32.mrb[25].mxu0  ;;  %v7229_v53 = vpack.c.bf16 %v3419_v23, %v3418_v56 }
0x32b7   :  { %v3392_v45 = vsel %vm2158_vm9, %v3389_v44, 0.0  ;;  %v3395_v33 = vsel %vm2158_vm9, %v3389_v44, -inf  ;;  %5837 = vmatpush3.bf16.msra.mxu1 %v7229_v53 }
0x32b8   :  { %4718 = vst [vmem:[%s7460_s13 + $0x20] sm:$0xff] %v3392_v45  ;;  %3396 = vmax.xlane.f32.xlu0 %v3395_v33  ;;  %5456 = vmatprep.subr.mxu1 %v6919_v22 }
0x32bb   :  { %5457 = vmatpush3.msk.msra.mxu1 %vm1850_vm6, %v3420_v50 }
0x32bc   :  { %5850 = vmatprep.subr.bf16.mxu1 %v6392_v3 }
0x3345   :  { %v3397_v46 = vpop.xlane.xlu0 %3396 }
0x3346   :  { %vm3398_vm7 = vcmp.eq.f32.partialorder %v3389_v44, %v3397_v46 }
0x3347   :  { %v3399_v47 = vsel %vm3398_vm7, %v7031_v24, 128.0 }
0x3348   :  { %v3400_v43 = vsel %vm2158_vm9, %v3399_v47, inf }
0x3349   :  { %3401 = vmin.xlane.f32.xlu1 %v3400_v43 }
0x33d6   :  { %v3402_v58 = vpop.xlane.xlu1 %3401 }
0x33d7   :  { %v5930_v60 = vtrunc.f32 %v3402_v58  ;;  %v3718_v58 = vld [vmem:[%s7458_s11 + $0x8] sm:$0xff] }
0x33d9   :  { %v5931_v52 = vcvt.f32.s32 %v5930_v60  ;;  %v3719_v60 = vld [vmem:[%s7458_s11 + $0x10] sm:$0xff] }
0x33db   :  { %v3411_v54 = vsel %vm3410_vm10, %v4720_v1, %v5931_v52  ;;  %v7309_v1 = vpack.c.bf16 %v3718_v58, %v3717_v51 }
0x33dc   :  { %3413 = vperm.xlu0 %5953, %v3411_v54  }
0x345b   :  { %v3414_v7 = vpop.permute.xlu0 %3413 }
0x345c   :  { %vm3415_vm11 = vcmp.eq.s32.totalorder %v6617_v16, %v3414_v7 }
0x345d   :  { %v4721_v55 = vsel %vm3415_vm11, 1.0, %v6919_v22 }
0x345e   :  { %5459 = vmatmul.mubr.msk.f32.vlgmr.msra.gmra.mrb[28].mxu1 %vm1846_vm8, %v4721_v55 }
0x345f   :  { %5488 = vmatprep.mubr.msk.f32.mxu1 %vm6394_vm0, %v6919_v22  ;;  %5852 = vmatpush3.bf16.msra.mxu1 %v7309_v1 }
0x3460   :  { %5853 = vmatprep.subr.bf16.mxu1 %v6392_v3 }
0x3531   :  { %v3569_v57 = vpop.f32.mrb[28].mxu1 }
0x3532   :  { %6130 = vtanh.f32 %v3569_v57  ;;  %v5460_v59 = vpop.f32.mrb[29].mxu1  ;;  %v4725_v61 = vmul.f32 -1.442695, %v3569_v57 }
0x3533   :  { %v7336_v59 = vld [vmem:[#allocation15] ss:$0 sm:$0xff] }
0x3534   :  { %6132 = vpow2.f32 %v4725_v61 }
0x353c   :  { %v6131_v13 = vpop.eup %6130 }
0x353d   :  { %3582 = vrot.lane.b32.xlu1 %v6131_v13, %s6395_s0 }
0x353e   :  { %v6133_v62 = vpop.eup %6132 }
0x353f   :  { %v3576_v63 = vadd.f32 1.0, %v6133_v62 }
0x3541   :  { %6134 = vrcp.f32 %v3576_v63 }
0x354b   :  { %v6135_v0 = vpop.eup %6134 }
0x354c   :  { %v3580_v8 = vmul.f32 %v6135_v0, %v7188_v17  ;;  %v7256_v17 = vpack.c.bf16 %v3610_v25, %v3609_v21 }
0x354e   :  { %5846 = vmatpush3.bf16.msra.mxu0 %v7256_v17 }
0x354f   :  { %5847 = vmatprep.subr.bf16.mxu0 %v6392_v3 }
0x3552   :  { %5849 = vmatpush3.bf16.msra.mxu0 %v7261_v26 }
0x3553   :  { %5856 = vmatprep.subr.bf16.mxu0 %v6392_v3 }
0x35af   :  { %v3583_v2 = vpop.permute.xlu1 %3582 }
0x35b0   :  { %v3585_v5 = vmul.f32 %v6135_v0, %v3583_v2 }
0x35b2   :  { %3587 = vrot.lane.b32.xlu0 %v3585_v5, %s6396_s25 }
0x3624   :  { %v3588_v9 = vpop.permute.xlu0 %3587 }
0x3625   :  { %v7246_v22 = vadd.f32 %v3588_v9, %v3580_v8  ;;  %v3831_v9 = vld [vmem:[#allocation9 + $0x10] sm:$0xf] }
0x3627   :  { %6136 = vtanh.f32 %v7246_v22 }
0x3631   :  { %v6137_v49 = vpop.eup %6136 }
0x3632   :  { %3593 = vrot.lane.b32.xlu1 %v6137_v49, %s6395_s0 }
0x3636   :  { %3601 = vrot.lane.b32.xlu1 %v7214_v19, %s6395_s0 }
0x36a4   :  { %v3594_v29 = vpop.permute.xlu1 %3593 }
0x36a5   :  { %v3596_v30 = vmul.f32 %v6135_v0, %v3594_v29 }
0x36a7   :  { %3598 = vrot.lane.b32.xlu0 %v3596_v30, %s6396_s25 }
0x36a8   :  { %v3602_v32 = vpop.permute.xlu1 %3601 }
0x3719   :  { %v3599_v6 = vpop.permute.xlu0 %3598 }
0x371a   :  { %v3604_v36 = vsel %vm265_vm4, %v3599_v6, %v3602_v32 }
0x371b   :  { %5478 = vmatmul.mubr.msk.f32.vlgmr.msra.gmra.mrb[26].mxu0 %vm384_vm5, %v3604_v36 }
0x371c   :  { %5858 = vmatpush3.bf16.msra.mxu0 %v7269_v18  ;;  %5499 = vmatprep.mubr.msk.f32.mxu0 %vm6394_vm0, %v7279_v15 }
0x371d   :  { %5859 = vmatprep.subr.bf16.mxu0 %v6392_v3 }
0x3720   :  { %5861 = vmatpush3.bf16.msra.mxu0 %v7274_v37 }
0x3721   :  { %5862 = vmatprep.subr.bf16.mxu0 %v6392_v3 }
0x3723   :  { %5500 = vmatmul.mubr.msk.f32.vlgmr.msra.gmra.mrb[28].mxu0 %vm265_vm4, %v3599_v6 }
0x3724   :  { %5864 = vmatpush3.bf16.msra.mxu0 %v7229_v53  ;;  %5508 = vmatprep.mubr.msk.f32.mxu0 %vm6394_vm0, %v7279_v15 }
0x3725   :  { %5506 = vmatprep.subr.mxu0 %v7279_v15 }
0x3728   :  { %5507 = vmatpush3.msk.msra.mxu0 %vm1850_vm6, %v3831_v9  ;;  %v4746_v9 = vld [vmem:[%s7448_s1 + $0xc] sm:$0x3] }
0x3729   :  { %5877 = vmatprep.subr.bf16.mxu0 %v6392_v3 }
0x37ee   :  { %v3689_v19 = vpop.f32.mrb[26].mxu0 }
0x37ef   :  { %v3690_v42 = vadd.f32 %v7291_v40, %v3689_v19  ;;  %v5479_v12 = vpop.f32.mrb[27].mxu0 }
0x37f1   :  { %6138 = vtanh.f32 %v3690_v42  ;;  %v4728_v48 = vmul.f32 -1.442695, %v3690_v42 }
0x37f3   :  { %6140 = vpow2.f32 %v4728_v48 }
0x37fb   :  { %v6139_v44 = vpop.eup %6138 }
0x37fc   :  { %3702 = vrot.lane.b32.xlu0 %v6139_v44, %s6395_s0 }
0x37fd   :  { %v6141_v45 = vpop.eup %6140 }
0x37fe   :  { %v3696_v33 = vadd.f32 1.0, %v6141_v45 }
0x3800   :  { %6142 = vrcp.f32 %v3696_v33 }
0x380a   :  { %v6143_v46 = vpop.eup %6142 }
0x380b   :  { %v3700_v56 = vmul.f32 %v6143_v46, %v7210_v41  ;;  %v3720_v41 = vld [vmem:[%s7458_s11 + $0x18] sm:$0xff] }
0x380c   :  { %v7315_v52 = vpack.c.bf16 %v3720_v41, %v3719_v60 }
0x380e   :  { %5855 = vmatpush3.bf16.msra.mxu1 %v7315_v52 }
0x380f   :  { %5865 = vmatprep.subr.bf16.mxu1 %v6392_v3 }
0x386e   :  { %v3703_v47 = vpop.permute.xlu0 %3702 }
0x386f   :  { %v3705_v43 = vmul.f32 %v6143_v46, %v3703_v47 }
0x3871   :  { %3707 = vrot.lane.b32.xlu1 %v3705_v43, %s6396_s25 }
0x38e3   :  { %v3708_v23 = vpop.permute.xlu1 %3707 }
0x38e4   :  { %v7297_v50 = vadd.f32 %v3708_v23, %v3700_v56 }
0x38e6   :  { %6144 = vtanh.f32 %v7297_v50 }
0x38f0   :  { %v6145_v54 = vpop.eup %6144 }
0x38f1   :  { %3713 = vrot.lane.b32.xlu0 %v6145_v54, %s6395_s0 }
0x3963   :  { %v3714_v7 = vpop.permute.xlu0 %3713 }
0x3964   :  { %v7321_v55 = vmul.f32 %v6143_v46, %v3714_v7 }
0x3966   :  { %3729 = vrot.lane.b32.xlu1 %v7321_v55, %s6396_s25 }
0x39d8   :  { %v3730_v57 = vpop.permute.xlu1 %3729 }
0x39d9   :  { %5489 = vmatmul.mubr.msk.f32.vlgmr.msra.gmra.mrb[30].mxu1 %vm265_vm4, %v3730_v57 }
0x39da   :  { %5867 = vmatpush3.bf16.msra.mxu1 %v7249_v38  ;;  %5527 = vmatprep.mubr.msk.f32.mxu1 %vm6394_vm0, %v7279_v15 }
0x39db   :  { %5868 = vmatprep.subr.bf16.mxu1 %v6392_v3 }
0x39de   :  { %5870 = vmatpush3.bf16.msra.mxu1 %v7252_v20 }
0x39df   :  { %5871 = vmatprep.subr.bf16.mxu1 %v6392_v3 }
0x39e2   :  { %5873 = vmatpush3.bf16.msra.mxu1 %v7256_v17 }
0x39e3   :  { %5874 = vmatprep.subr.bf16.mxu1 %v6392_v3 }
0x39e6   :  { %5876 = vmatpush3.bf16.msra.mxu1 %v7261_v26 }
0x39e7   :  { %5883 = vmatprep.subr.bf16.mxu1 %v6392_v3 }
0x3aac   :  { %v3799_v13 = vpop.f32.mrb[30].mxu1 }
0x3aad   :  { %v3800_v61 = vadd.f32 %v7336_v59, %v3799_v13  ;;  %v5490_v62 = vpop.f32.mrb[31].mxu1 }
0x3aaf   :  { %v3803_v63 = vsel %vm2158_vm9, %v3800_v61, 0.0  ;;  %v3806_v0 = vsel %vm2158_vm9, %v3800_v61, -inf }
0x3ab0   :  { %4731 = vst [vmem:[%s7460_s13 + $0x28] sm:$0xff] %v3803_v63  ;;  %3807 = vmax.xlane.f32.xlu0 %v3806_v0 }
0x3b3d   :  { %v3808_v2 = vpop.xlane.xlu0 %3807 }
0x3b3e   :  { %vm3809_vm12 = vcmp.eq.f32.partialorder %v3800_v61, %v3808_v2  ;;  %v4231_v2 = vstv %s4230_s29 }
0x3b3f   :  { %v3810_v5 = vsel %vm3809_vm12, %v7031_v24, 128.0  ;;  %vm4232_vm1 = vcmp.eq.s32.totalorder %v4231_v2, 1 }
0x3b40   :  { %v3811_v8 = vsel %vm2158_vm9, %v3810_v5, inf }
0x3b41   :  { %3812 = vmin.xlane.f32.xlu1 %v3811_v8 }
0x3bce   :  { %v3813_v10 = vpop.xlane.xlu1 %3812 }
0x3bcf   :  { %v5932_v11 = vtrunc.f32 %v3813_v10 }
0x3bd1   :  { %v5933_v21 = vcvt.f32.s32 %v5932_v11 }
0x3bd3   :  { %v3822_v25 = vsel %vm3821_vm13, %v4733_v14, %v5933_v21 }
0x3bd4   :  { %3824 = vperm.xlu0 %5953, %v3822_v25  }
0x3c53   :  { %v3825_v27 = vpop.permute.xlu0 %3824 }
0x3c54   :  { %vm3826_vm14 = vcmp.eq.s32.totalorder %v6617_v16, %v3825_v27 }
0x3c55   :  { %v4734_v28 = vsel %vm3826_vm14, 1.0, %v7279_v15 }
0x3c56   :  { %5509 = vmatmul.mubr.msk.f32.vlgmr.msra.gmra.mrb[28].mxu0 %vm1846_vm8, %v4734_v28 }
0x3c57   :  { %5879 = vmatpush3.bf16.msra.mxu0 %v7309_v1  ;;  %5538 = vmatprep.mubr.msk.f32.mxu0 %vm6394_vm0, %v7279_v15 }
0x3c58   :  { %5880 = vmatprep.subr.bf16.mxu0 %v6392_v3 }
0x3c5b   :  { %5882 = vmatpush3.bf16.msra.mxu0 %v7315_v52 }
0x3c5c   :  { %5892 = vmatprep.subr.bf16.mxu0 %v6392_v3 }
0x3d29   :  { %v3980_v49 = vpop.f32.mrb[28].mxu0 }
0x3d2a   :  { %6146 = vtanh.f32 %v3980_v49  ;;  %v5510_v29 = vpop.f32.mrb[29].mxu0  ;;  %v4738_v4 = vmul.f32 -1.442695, %v3980_v49 }
0x3d2c   :  { %6148 = vpow2.f32 %v4738_v4 }
0x3d34   :  { %v6147_v30 = vpop.eup %6146 }
0x3d35   :  { %3993 = vrot.lane.b32.xlu1 %v6147_v30, %s6395_s0 }
0x3d36   :  { %v6149_v31 = vpop.eup %6148 }
0x3d37   :  { %v3987_v32 = vadd.f32 1.0, %v6149_v31 }
0x3d39   :  { %6150 = vrcp.f32 %v3987_v32 }
0x3d43   :  { %v6151_v6 = vpop.eup %6150 }
0x3d44   :  { %v3991_v36 = vmul.f32 %v6151_v6, %v7246_v22 }
0x3da7   :  { %v3994_v34 = vpop.permute.xlu1 %3993 }
0x3da8   :  { %v3996_v35 = vmul.f32 %v6151_v6, %v3994_v34 }
0x3daa   :  { %3998 = vrot.lane.b32.xlu0 %v3996_v35, %s6396_s25 }
0x3e1c   :  { %v3999_v19 = vpop.permute.xlu0 %3998 }
0x3e1d   :  { %v7363_v42 = vadd.f32 %v3999_v19, %v3991_v36 }
0x3e1f   :  { %6152 = vtanh.f32 %v7363_v42 }
0x3e29   :  { %v6153_v12 = vpop.eup %6152 }
0x3e2a   :  { %4004 = vrot.lane.b32.xlu1 %v6153_v12, %s6395_s0 }
0x3e2e   :  { %4012 = vrot.lane.b32.xlu1 %v7321_v55, %s6395_s0 }
0x3e9c   :  { %v4005_v44 = vpop.permute.xlu1 %4004 }
0x3e9d   :  { %v4007_v48 = vmul.f32 %v6151_v6, %v4005_v44 }
0x3e9f   :  { %4009 = vrot.lane.b32.xlu0 %v4007_v48, %s6396_s25 }
0x3ea0   :  { %v4013_v45 = vpop.permute.xlu1 %4012 }
0x3f11   :  { %v4010_v33 = vpop.permute.xlu0 %4009 }
0x3f12   :  { %v4015_v46 = vsel %vm265_vm4, %v4010_v33, %v4013_v45 }
0x3f13   :  { %5528 = vmatmul.mubr.msk.f32.vlgmr.msra.gmra.mrb[32].mxu1 %vm384_vm5, %v4015_v46 }
0x3f14   :  { %5885 = vmatpush3.bf16.msra.mxu1 %v7269_v18  ;;  %5549 = vmatprep.mubr.msk.f32.mxu1 %vm6394_vm0, %v7279_v15 }
0x3f15   :  { %5886 = vmatprep.subr.bf16.mxu1 %v6392_v3 }
0x3f18   :  { %5888 = vmatpush3.bf16.msra.mxu1 %v7274_v37 }
0x3f19   :  { %5889 = vmatprep.subr.bf16.mxu1 %v6392_v3 }
0x3f1b   :  { %5550 = vmatmul.mubr.msk.f32.vlgmr.msra.gmra.mrb[34].mxu1 %vm265_vm4, %v4010_v33 }
0x3f1c   :  { %5891 = vmatpush3.bf16.msra.mxu1 %v7229_v53  ;;  %5558 = vmatprep.mubr.msk.f32.mxu1 %vm6394_vm0, %v7279_v15 }
0x3f1d   :  { %5556 = vmatprep.subr.mxu1 %v7279_v15 }
0x3fe6   :  { %v4100_v22 = vpop.f32.mrb[32].mxu1 }
0x3fe7   :  { %v4101_v18 = vadd.f32 %v7291_v40, %v4100_v22  ;;  %v5529_v47 = vpop.f32.mrb[33].mxu1 }
0x3fe9   :  { %6154 = vtanh.f32 %v4101_v18  ;;  %v4741_v37 = vmul.f32 -1.442695, %v4101_v18 }
0x3feb   :  { %6156 = vpow2.f32 %v4741_v37 }
0x3ff3   :  { %v6155_v43 = vpop.eup %6154 }
0x3ff4   :  { %4113 = vrot.lane.b32.xlu0 %v6155_v43, %s6395_s0 }
0x3ff5   :  { %v6157_v56 = vpop.eup %6156 }
0x3ff6   :  { %v4107_v23 = vadd.f32 1.0, %v6157_v56 }
0x3ff8   :  { %6158 = vrcp.f32 %v4107_v23 }
0x4002   :  { %v6159_v51 = vpop.eup %6158 }
0x4003   :  { %v4111_v60 = vmul.f32 %v6159_v51, %v7297_v50 }
0x4066   :  { %v4114_v53 = vpop.permute.xlu0 %4113 }
0x4067   :  { %v4116_v58 = vmul.f32 %v6159_v51, %v4114_v53 }
0x4069   :  { %4118 = vrot.lane.b32.xlu1 %v4116_v58, %s6396_s25 }
0x40db   :  { %v4119_v41 = vpop.permute.xlu1 %4118 }
0x40dc   :  { %v7387_v54 = vadd.f32 %v4119_v41, %v4111_v60 }
0x40de   :  { %6160 = vtanh.f32 %v7387_v54 }
0x40e8   :  { %v6161_v7 = vpop.eup %6160 }
0x40e9   :  { %4124 = vrot.lane.b32.xlu0 %v6161_v7, %s6395_s0 }
0x415b   :  { %v4125_v55 = vpop.permute.xlu0 %4124 }
0x415c   :  { %v7391_v57 = vmul.f32 %v6159_v51, %v4125_v55 }
0x415e   :  { %4140 = vrot.lane.b32.xlu1 %v7391_v57, %s6396_s25 }
0x41d0   :  { %v4141_v13 = vpop.permute.xlu1 %4140 }
0x41d1   :  { %5539 = vmatmul.mubr.msk.f32.vlgmr.msra.gmra.mrb[30].mxu0 %vm265_vm4, %v4141_v13 }
0x41d2   :  { %5894 = vmatpush3.bf16.msra.mxu0 %v7249_v38  ;;  %5577 = vmatprep.mubr.msk.f32.mxu0 %vm6394_vm0, %v7279_v15 }
0x41d3   :  { %5895 = vmatprep.subr.bf16.mxu0 %v6392_v3 }
0x41d6   :  { %5897 = vmatpush3.bf16.msra.mxu0 %v7252_v20 }
0x41d7   :  { %5898 = vmatprep.subr.bf16.mxu0 %v6392_v3 }
0x41da   :  { %5900 = vmatpush3.bf16.msra.mxu0 %v7256_v17 }
0x41db   :  { %5901 = vmatprep.subr.bf16.mxu0 %v6392_v3 }
0x41de   :  { %5903 = vmatpush3.bf16.msra.mxu0 %v7261_v26  ;;  %v4242_v26 = vld [vmem:[#allocation9 + $0x10] sm:$0xf] }
0x41df   :  { %5557 = vmatpush3.msk.msra.mxu1 %vm1850_vm6, %v4242_v26 }
0x41e0   :  { %5904 = vmatprep.subr.bf16.mxu1 %v6392_v3 }
0x42a4   :  { %v4210_v50 = vpop.f32.mrb[30].mxu0 }
0x42a5   :  { %v4211_v61 = vadd.f32 %v7336_v59, %v4210_v50  ;;  %v5540_v62 = vpop.f32.mrb[31].mxu0 }
0x42a7   :  { %v4214_v38 = vsel %vm2158_vm9, %v4211_v61, 0.0  ;;  %v4217_v63 = vsel %vm2158_vm9, %v4211_v61, -inf }
0x42a8   :  { %4744 = vst [vmem:[%s7460_s13 + $0x30] sm:$0xff] %v4214_v38  ;;  %4218 = vmax.xlane.f32.xlu0 %v4217_v63 }
0x4335   :  { %v4219_v20 = vpop.xlane.xlu0 %4218 }
0x4336   :  { %vm4220_vm15 = vcmp.eq.f32.partialorder %v4211_v61, %v4219_v20 }
0x4337   :  { %v4221_v17 = vsel %vm4220_vm15, %v7031_v24, 128.0 }
0x4338   :  { %v4222_v0 = vsel %vm2158_vm9, %v4221_v17, inf }
0x4339   :  { %4223 = vmin.xlane.f32.xlu1 %v4222_v0 }
0x43c6   :  { %v4224_v5 = vpop.xlane.xlu1 %4223 }
0x43c7   :  { %v5934_v8 = vtrunc.f32 %v4224_v5 }
0x43c9   :  { %v5935_v24 = vcvt.f32.s32 %v5934_v8 }
0x43cb   :  { %v4233_v39 = vsel %vm4232_vm1, %v4746_v9, %v5935_v24 }
0x43cc   :  { %4235 = vperm.xlu0 %5953, %v4233_v39  }
0x444b   :  { %v4236_v10 = vpop.permute.xlu0 %4235 }
0x444c   :  { %vm4237_vm2 = vcmp.eq.s32.totalorder %v6617_v16, %v4236_v10 }
0x444d   :  { %v4747_v11 = vsel %vm4237_vm2, 1.0, %v7279_v15 }
0x444e   :  { %5559 = vmatmul.mubr.msk.f32.vlgmr.msra.gmra.mrb[34].mxu1 %vm1846_vm8, %v4747_v11 }
0x444f   :  { %5906 = vmatpush3.bf16.msra.mxu1 %v7309_v1  ;;  %5588 = vmatprep.mubr.msk.f32.mxu1 %vm6394_vm0, %v7279_v15 }
0x4450   :  { %5907 = vmatprep.subr.bf16.mxu1 %v6392_v3 }
0x4453   :  { %5909 = vmatpush3.bf16.msra.mxu1 %v7315_v52 }
0x4521   :  { %v4391_v14 = vpop.f32.mrb[34].mxu1 }
0x4522   :  { %6162 = vtanh.f32 %v4391_v14  ;;  %v5560_v21 = vpop.f32.mrb[35].mxu1  ;;  %v4751_v16 = vmul.f32 -1.442695, %v4391_v14 }
0x4524   :  { %6164 = vpow2.f32 %v4751_v16 }
0x452c   :  { %v6163_v25 = vpop.eup %6162 }
0x452d   :  { %4404 = vrot.lane.b32.xlu1 %v6163_v25, %s6395_s0 }
0x452e   :  { %v6165_v27 = vpop.eup %6164 }
0x452f   :  { %v4398_v28 = vadd.f32 1.0, %v6165_v27 }
0x4531   :  { %6166 = vrcp.f32 %v4398_v28 }
0x453b   :  { %v6167_v49 = vpop.eup %6166 }
0x453c   :  { %v4402_v3 = vmul.f32 %v6167_v49, %v7363_v42 }
0x459f   :  { %v4405_v1 = vpop.permute.xlu1 %4404 }
0x45a0   :  { %v4407_v29 = vmul.f32 %v6167_v49, %v4405_v1 }
0x45a2   :  { %4409 = vrot.lane.b32.xlu0 %v4407_v29, %s6396_s25 }
0x4614   :  { %v4410_v15 = vpop.permute.xlu0 %4409 }
0x4615   :  { %v4412_v52 = vadd.f32 %v4410_v15, %v4402_v3 }
0x4617   :  { %6168 = vtanh.f32 %v4412_v52 }
0x4621   :  { %v6169_v30 = vpop.eup %6168 }
0x4622   :  { %4415 = vrot.lane.b32.xlu1 %v6169_v30, %s6395_s0 }
0x4626   :  { %4423 = vrot.lane.b32.xlu1 %v7391_v57, %s6395_s0 }
0x4694   :  { %v4416_v4 = vpop.permute.xlu1 %4415 }
0x4695   :  { %v4418_v31 = vmul.f32 %v6167_v49, %v4416_v4 }
0x4697   :  { %4420 = vrot.lane.b32.xlu0 %v4418_v31, %s6396_s25 }
0x4698   :  { %v4424_v32 = vpop.permute.xlu1 %4423 }
0x4709   :  { %v4421_v6 = vpop.permute.xlu0 %4420 }
0x470a   :  { %v4426_v34 = vsel %vm265_vm4, %v4421_v6, %v4424_v32 }
0x470b   :  { %5578 = vmatmul.mubr.msk.f32.vlgmr.msra.gmra.mrb[32].mxu0 %vm384_vm5, %v4426_v34 }
0x47de   :  { %v4511_v35 = vpop.f32.mrb[32].mxu0 }
0x47df   :  { %v4512_v36 = vadd.f32 %v7291_v40, %v4511_v35  ;;  %v5579_v19 = vpop.f32.mrb[33].mxu0 }
0x47e1   :  { %6170 = vtanh.f32 %v4512_v36  ;;  %v4754_v12 = vmul.f32 -1.442695, %v4512_v36 }
0x47e3   :  { %6172 = vpow2.f32 %v4754_v12 }
0x47eb   :  { %v6171_v42 = vpop.eup %6170 }
0x47ec   :  { %4524 = vrot.lane.b32.xlu0 %v6171_v42, %s6395_s0 }
0x47ed   :  { %v6173_v44 = vpop.eup %6172 }
0x47ee   :  { %v4518_v48 = vadd.f32 1.0, %v6173_v44 }
0x47f0   :  { %6174 = vrcp.f32 %v4518_v48 }
0x47fa   :  { %v6175_v45 = vpop.eup %6174 }
0x47fb   :  { %v4522_v22 = vmul.f32 %v6175_v45, %v7387_v54 }
0x485e   :  { %v4525_v33 = vpop.permute.xlu0 %4524 }
0x485f   :  { %v4527_v46 = vmul.f32 %v6175_v45, %v4525_v33 }
0x4861   :  { %4529 = vrot.lane.b32.xlu1 %v4527_v46, %s6396_s25 }
0x48d3   :  { %v4530_v18 = vpop.permute.xlu1 %4529 }
0x48d4   :  { %v4532_v47 = vadd.f32 %v4530_v18, %v4522_v22 }
0x48d6   :  { %6176 = vtanh.f32 %v4532_v47 }
0x48e0   :  { %v6177_v40 = vpop.eup %6176 }
0x48e1   :  { %4535 = vrot.lane.b32.xlu0 %v6177_v40, %s6395_s0 }
0x4953   :  { %v4536_v43 = vpop.permute.xlu0 %4535 }
0x4954   :  { %v4538_v37 = vmul.f32 %v6175_v45, %v4536_v43 }
0x4956   :  { %4551 = vrot.lane.b32.xlu1 %v4538_v37, %s6396_s25 }
0x49c8   :  { %v4552_v56 = vpop.permute.xlu1 %4551 }
0x49c9   :  { %5589 = vmatmul.mubr.msk.f32.vlgmr.msra.gmra.mrb[36].mxu1 %vm265_vm4, %v4552_v56 }
0x4a9c   :  { %v4621_v23 = vpop.f32.mrb[36].mxu1 }
0x4a9d   :  { %v4622_v51 = vadd.f32 %v7336_v59, %v4621_v23  ;;  %v5590_v53 = vpop.f32.mrb[37].mxu1 }
0x4a9f   :  { %v4625_v58 = vsel %vm2158_vm9, %v4622_v51, 0.0 }
0x4aa0   :  { %4757 = vst [vmem:[%s7460_s13 + $0x38] sm:$0xff] %v4625_v58 }
0x4aa1   :  { %4632 = vsyncpa [#allocation3], 1 }
0x4aa2   :  { %4633 = vsyncpa [#allocation7], 1 }
0x4aa3   :  { %4634 = vsyncpa [#allocation10], 1 }
0x4aa4   :  { %4635 = vsyncpa [#allocation13], 1 }
0x4aa5   :  { %4636 = vsyncpa [#allocation16], 1 }
0x4aa6   :  { %4637 = vsyncpa [#allocation4], 1 }

</bundles_post_ra>
